<compile_context>
chip_gen: v7x
topology: tpu7x:2x2x1
jax: 0.10.0
libtpu: 0.0.40
codegen_flags: <defaults>
</compile_context>

<pallas_src>
import functools

import jax
import jax.numpy as jnp
from jax.experimental import pallas as pl
from jax.experimental.pallas import tpu as pltpu

# High-precision f32 matmuls everywhere (kernel and reference) so the
# restructured math (fused projections, deferred normalization) stays within
# the 1e-4 comparison tolerance.
jax.config.update("jax_default_matmul_precision", "highest")

_VMEM_LIMIT_BYTES = 32 * 1024 * 1024  # fits v5e/v6e/v7x scoped-VMEM budgets
_NEG_INF = -1e30


# ----------------------------- Pallas kernels ------------------------------ #
def _transform_kernel(x_ref, w_ref, o_ref):
    # One wide matmul per dst-row tile: columns are [W | W@att_src | W@att_dst | 0-pad].
    o_ref[...] = jnp.dot(x_ref[...], w_ref[...],
                         precision=jax.lax.Precision.HIGHEST,
                         preferred_element_type=jnp.float32)


def _gat_attn_kernel(mask_ref, adst_ref, asrc_ref, wx_ref, bias_ref, out_ref, *,
                     heads, f_out, out_cols, negative_slope,
                     apply_relu, apply_log_softmax):
    # mask_ref : (TM, N) bf16 additive mask (0.0 where edge, -1e30 elsewhere)
    # adst_ref : (TM, H) f32 dst attention logits for this tile
    # asrc_ref : (H, N)  f32 src attention logits (replicated)
    # wx_ref   : (N, H*F_out) f32 transformed features (replicated)
    # bias_ref : (1, H*F_out)
    # out_ref  : (TM, out_cols) lane-dense (out_cols multiple of 128)
    mask = mask_ref[...].astype(jnp.float32)        # (TM, N)
    wx = wx_ref[...]                                # (N, H*F_out)

    for h in range(heads):                          # heads is small & static
        hs, he = h * f_out, (h + 1) * f_out
        a_dst = adst_ref[:, h:h + 1]                # (TM, 1)
        a_src = asrc_ref[h:h + 1, :]                # (1, N)

        # e[i, j] = LeakyReLU(a_dst[i] + a_src[j]) + mask[i, j]
        e = a_dst + a_src
        e = jnp.where(e > 0, e, negative_slope * e)
        e = e + mask

        # softmax over source nodes, normalization deferred past the matmul
        m = jnp.max(e, axis=-1, keepdims=True)
        p = jnp.exp(e - m)                          # masked entries -> exactly 0
        denom = jnp.sum(p, axis=-1, keepdims=True)

        num = jnp.dot(p, wx[:, hs:he],
                      precision=jax.lax.Precision.HIGHEST,
                      preferred_element_type=jnp.float32)       # (TM, F_out)
        out_h = num * pl.reciprocal(denom, approx=False)
        out_h = out_h + bias_ref[:, hs:he]

        if apply_relu:
            out_h = jnp.maximum(out_h, 0.0)
        if apply_log_softmax:                       # only used with heads == 1
            mx = jnp.max(out_h, axis=-1, keepdims=True)
            lse = jnp.log(jnp.sum(jnp.exp(out_h - mx), axis=-1,
                                  keepdims=True)) + mx
            out_h = out_h - lse

        out_ref[:, hs:he] = out_h

    # keep the lane padding exactly zero so it survives ReLU into the next layer
    c = heads * f_out
    if out_cols > c:
        out_ref[:, c:] = jnp.zeros((out_ref.shape[0], out_cols - c),
                                   out_ref.dtype)


# ------------------------------ layer wrapper ------------------------------ #
def _round_up(x, mult):
    return -(-x // mult) * mult


def _pad_cols(a, mult=128):
    pc = _round_up(a.shape[-1], mult)
    return a if pc == a.shape[-1] else jnp.pad(a, ((0, 0), (0, pc - a.shape[-1])))


def _pad_rows(a, rows):
    return a if a.shape[0] == rows else jnp.pad(a, ((0, rows - a.shape[0]), (0, 0)))


def _pick_block_m(n):
    # dst-row tile: multiple of 8 sublanes, and >= 2 grid steps so the
    # "parallel" axis can shard across v7x's 2 TensorCores.
    bm = 128
    while bm > 8 and pl.cdiv(n, bm) < 2:
        bm //= 2
    return bm


def gat_layer(x, w, att_src, att_dst, bias, mask, *, heads, f_out,
              apply_relu=False, apply_log_softmax=False, block_m=64):
    """One GATConv layer.  x is (n_pad, f_in) (row/lane padded, padding == 0)."""
    n_pad, f_in = x.shape
    assert n_pad % block_m == 0
    if apply_log_softmax:
        assert heads == 1, "log_softmax epilogue only supported with heads == 1"

    hf = heads * f_out
    # pad W rows to the (possibly lane-padded) input width; padded x cols are 0
    w = _pad_rows(w, f_in)                                   # (f_in, H*F_out)

    # fold attention-vector projections into the feature transform matmul
    w3 = w.reshape(f_in, heads, f_out)
    w_asrc = jnp.einsum("ihf,hf->ih", w3, att_src)           # (f_in, H)
    w_adst = jnp.einsum("ihf,hf->ih", w3, att_dst)           # (f_in, H)
    w_all = _pad_cols(jnp.concatenate([w, w_asrc, w_adst], axis=1))
    c_all = w_all.shape[1]                                   # multiple of 128

    grid = (n_pad // block_m,)
    cparams = pltpu.CompilerParams(dimension_semantics=("parallel",),
                                   vmem_limit_bytes=_VMEM_LIMIT_BYTES)

    # ---- kernel 1: fused feature transform + attention-logit projections ----
    proj = pl.pallas_call(
        _transform_kernel,
        out_shape=jax.ShapeDtypeStruct((n_pad, c_all), jnp.float32),
        grid=grid,
        in_specs=[pl.BlockSpec((block_m, f_in), lambda i: (i, 0)),
                  pl.BlockSpec((f_in, c_all), lambda i: (0, 0))],
        out_specs=pl.BlockSpec((block_m, c_all), lambda i: (i, 0)),
        compiler_params=cparams,
    )(x, w_all)

    wx = proj[:, :hf]                                        # (n_pad, H*F_out)
    asrc_t = proj[:, hf:hf + heads].T                        # (H, n_pad)
    adst = proj[:, hf + heads:hf + 2 * heads]                # (n_pad, H)

    out_cols = _round_up(hf, 128)                            # lane-dense output

    kernel = functools.partial(
        _gat_attn_kernel, heads=heads, f_out=f_out, out_cols=out_cols,
        negative_slope=0.2, apply_relu=apply_relu,
        apply_log_softmax=apply_log_softmax)

    # ---- kernel 2: masked softmax attention + aggregation per dst tile ------
    out = pl.pallas_call(
        kernel,
        out_shape=jax.ShapeDtypeStruct((n_pad, out_cols), jnp.float32),
        grid=grid,
        in_specs=[
            pl.BlockSpec((block_m, n_pad), lambda i: (i, 0)),    # mask tile
            pl.BlockSpec((block_m, heads), lambda i: (i, 0)),    # a_dst tile
            pl.BlockSpec((heads, n_pad), lambda i: (0, 0)),      # a_src (repl.)
            pl.BlockSpec((n_pad, hf), lambda i: (0, 0)),         # wx (repl.)
            pl.BlockSpec((1, hf), lambda i: (0, 0)),             # bias (repl.)
        ],
        out_specs=pl.BlockSpec((block_m, out_cols), lambda i: (i, 0)),
        compiler_params=cparams,
    )(mask, adst, asrc_t, wx, bias.reshape(1, hf))
    return out


# ------------------------------- glue / model ------------------------------ #
def build_adjacency(edge, num_nodes):
    """Dense mask: adj[dst, src] = 1.0, plus self loops (PyG add_self_loops)."""
    adj = jnp.zeros((num_nodes, num_nodes), jnp.float32)
    adj = adj.at[edge[1], edge[0]].set(1.0)
    adj = jnp.maximum(adj, jnp.eye(num_nodes, dtype=jnp.float32))
    return adj


def build_attention_mask(edge, n_pad):
    """bf16 additive mask: 0.0 on edges/self-loops, -1e30 elsewhere."""
    adj = build_adjacency(edge, n_pad)
    return jnp.where(adj > 0, 0.0, _NEG_INF).astype(jnp.bfloat16)


def init_gatconv_params(key, in_dim, out_dim, heads):
    kw, ks, kd = jax.random.split(key, 3)
    glorot_w = (6.0 / (in_dim + heads * out_dim)) ** 0.5
    glorot_a = (6.0 / (1 + out_dim)) ** 0.5
    return dict(
        w=jax.random.uniform(kw, (in_dim, heads * out_dim), jnp.float32,
                             -glorot_w, glorot_w),
        att_src=jax.random.uniform(ks, (heads, out_dim), jnp.float32,
                                   -glorot_a, glorot_a),
        att_dst=jax.random.uniform(kd, (heads, out_dim), jnp.float32,
                                   -glorot_a, glorot_a),
        bias=jnp.zeros((heads * out_dim,), jnp.float32),
    )


def init_gat_params(key, in_size, hid_size, out_size, num_heads, num_layers):
    keys = jax.random.split(key, num_layers)
    return dict(
        conv1=init_gatconv_params(keys[0], in_size, hid_size, num_heads),
        hidden=[init_gatconv_params(keys[1 + i], hid_size * num_heads,
                                    hid_size * num_heads, 1)
                for i in range(num_layers - 2)],
        conv2=init_gatconv_params(keys[-1], hid_size * num_heads, out_size, 1),
    )


def gat_forward(params, edge, features, *, hid_size, out_size, num_heads):
    n = features.shape[0]
    block_m = _pick_block_m(n)
    n_pad = _round_up(n, block_m)

    mask = build_attention_mask(edge, n_pad)     # shared across all layers
    h = _pad_rows(features, n_pad)

    p = params["conv1"]
    h = gat_layer(h, p["w"], p["att_src"], p["att_dst"], p["bias"], mask,
                  heads=num_heads, f_out=hid_size, apply_relu=True,
                  block_m=block_m)

    for p in params["hidden"]:
        h = gat_layer(h, p["w"], p["att_src"], p["att_dst"], p["bias"], mask,
                      heads=1, f_out=hid_size * num_heads, apply_relu=True,
                      block_m=block_m)
        # TODO(synk): F.dropout is identity here (eval mode); training-mode
        # RNG-exact dropout is not reproduced.

    p = params["conv2"]
    h = gat_layer(h, p["w"], p["att_src"], p["att_dst"], p["bias"], mask,
                  heads=1, f_out=out_size, apply_log_softmax=True,
                  block_m=block_m)
    return h[:n, :out_size]


# ------------------------------ pure-JAX reference ------------------------- #
def _ref_layer(x, p, adj, heads, f_out, relu=False, log_softmax=False):
    outs = []
    for h in range(heads):
        w_h = p["w"][:, h * f_out:(h + 1) * f_out]
        wx = x @ w_h
        a_src = (wx * p["att_src"][h][None, :]).sum(-1, keepdims=True)
        a_dst = (wx * p["att_dst"][h][None, :]).sum(-1, keepdims=True)
        e = a_dst + a_src.T
        e = jnp.where(e > 0, e, 0.2 * e)
        e = jnp.where(adj > 0, e, _NEG_INF)
        pmat = jnp.exp(e - e.max(-1, keepdims=True)) * adj
        alpha = pmat / pmat.sum(-1, keepdims=True)
        outs.append(alpha @ wx + p["bias"][h * f_out:(h + 1) * f_out][None, :])
    out = outs[0] if heads == 1 else jnp.concatenate(outs, -1)
    if relu:
        out = jnp.maximum(out, 0.0)
    if log_softmax:
        out = jax.nn.log_softmax(out, axis=1)
    return out


def gat_forward_ref(params, edge, features, *, hid_size, out_size, num_heads):
    adj = build_adjacency(edge, features.shape[0])
    h = _ref_layer(features, params["conv1"], adj, num_heads, hid_size, relu=True)
    for p in params["hidden"]:
        h = _ref_layer(h, p, adj, 1, hid_size * num_heads, relu=True)
    return _ref_layer(h, params["conv2"], adj, 1, out_size, log_softmax=True)


# ----------------------------------- main ---------------------------------- #
if __name__ == "__main__":
    N, E = 128, 512
    in_size, hid_size, out_size = 32, 16, 8
    num_heads, num_layers = 2, 3

    key = jax.random.PRNGKey(0)
    k_feat, k_src, k_off, k_params = jax.random.split(key, 4)

    features = jax.random.normal(k_feat, (N, in_size), jnp.float32)
    src = jax.random.randint(k_src, (E,), 0, N, jnp.int32)
    dst = (src + jax.random.randint(k_off, (E,), 1, N, jnp.int32)) % N  # no self loops
    edge = jnp.stack([src, dst], axis=0)                                 # [2, E]

    params = init_gat_params(k_params, in_size, hid_size, out_size,
                             num_heads, num_layers)

    fwd = jax.jit(functools.partial(gat_forward, hid_size=hid_size,
                                    out_size=out_size, num_heads=num_heads))
    out = fwd(params, edge, features)
    out = jax.block_until_ready(out)

    ref = gat_forward_ref(params, edge, features, hid_size=hid_size,
                          out_size=out_size, num_heads=num_heads)
    assert out.shape == (N, out_size)
    assert jnp.allclose(out, ref, atol=1e-4, rtol=1e-4), "mismatch vs reference"

    print("KERNEL_OK")
</pallas_src>

<mosaic_0001>
module attributes {stable_mosaic.version = 11 : i64} {
  func.func @_transform_kernel(%arg0: i32, %arg1: memref<64x32xf32, #tpu.memory_space<vmem>>, %arg2: memref<32x128xf32, #tpu.memory_space<vmem>>, %arg3: memref<64x128xf32, #tpu.memory_space<vmem>>) attributes {dimension_semantics = [#tpu.dimension_semantics<parallel>], iteration_bounds = array<i64: 2>, scalar_prefetch = 0 : i64, scratch_operands = 0 : i64, tpu.core_type = #tpu.core_type<tc>, window_params = [{transform_indices = @transform_0, window_bounds = array<i64: 64, 32>}, {pipeline_mode = #tpu.pipeline_mode<synchronous>, transform_indices = @transform_1, window_bounds = array<i64: 32, 128>}, {transform_indices = @transform_2, window_bounds = array<i64: 64, 128>}]} {
    %c0 = arith.constant 0 : index
    %c0_0 = arith.constant 0 : index
    %0 = vector.load %arg1[%c0, %c0_0] : memref<64x32xf32, #tpu.memory_space<vmem>>, vector<64x32xf32>
    %c0_1 = arith.constant 0 : index
    %c0_2 = arith.constant 0 : index
    %1 = vector.load %arg2[%c0_1, %c0_2] : memref<32x128xf32, #tpu.memory_space<vmem>>, vector<32x128xf32>
    %cst = arith.constant dense<0.000000e+00> : vector<64x128xf32>
    %2 = tpu.matmul %0, %1, %cst {dimension_numbers = #tpu.dot_dimension_numbers<[1], [0], [0], [1], [0, 0, 1, 1], [], []>, precision = #tpu.contract_precision<fp32>} : vector<64x32xf32>, vector<32x128xf32>, vector<64x128xf32> -> vector<64x128xf32>
    %c0_3 = arith.constant 0 : index
    %c0_4 = arith.constant 0 : index
    %3 = vector.load %arg3[%c0_3, %c0_4] : memref<64x128xf32, #tpu.memory_space<vmem>>, vector<64x128xf32>
    tpu.vector_store %arg3[%c0_3, %c0_4], %2 {strides = array<i32>} : memref<64x128xf32, #tpu.memory_space<vmem>>, vector<64x128xf32>,
    return
  }
  func.func @transform_0(%arg0: i32) -> (i32, i32) {
    %c0_i32 = arith.constant 0 : i32
    %c0_i32_0 = arith.constant 0 : i32
    return %arg0, %c0_i32 : i32, i32
  }
  func.func @transform_1(%arg0: i32) -> (i32, i32) {
    %c0_i32 = arith.constant 0 : i32
    %c0_i32_0 = arith.constant 0 : i32
    %c0_i32_1 = arith.constant 0 : i32
    return %c0_i32, %c0_i32_0 : i32, i32
  }
  func.func @transform_2(%arg0: i32) -> (i32, i32) {
    %c0_i32 = arith.constant 0 : i32
    %c0_i32_0 = arith.constant 0 : i32
    return %arg0, %c0_i32 : i32, i32
  }
}

module attributes {stable_mosaic.version = 11 : i64} {
  func.func @_gat_attn_kernel(%arg0: i32, %arg1: memref<64x128xbf16, #tpu.memory_space<vmem>>, %arg2: memref<64x2xf32, #tpu.memory_space<vmem>>, %arg3: memref<2x128xf32, #tpu.memory_space<vmem>>, %arg4: memref<128x32xf32, #tpu.memory_space<vmem>>, %arg5: memref<1x32xf32, #tpu.memory_space<vmem>>, %arg6: memref<64x128xf32, #tpu.memory_space<vmem>>) attributes {dimension_semantics = [#tpu.dimension_semantics<parallel>], iteration_bounds = array<i64: 2>, scalar_prefetch = 0 : i64, scratch_operands = 0 : i64, tpu.core_type = #tpu.core_type<tc>, window_params = [{transform_indices = @transform_0, window_bounds = array<i64: 64, 128>}, {transform_indices = @transform_1, window_bounds = array<i64: 64, 2>}, {pipeline_mode = #tpu.pipeline_mode<synchronous>, transform_indices = @transform_2, window_bounds = array<i64: 2, 128>}, {pipeline_mode = #tpu.pipeline_mode<synchronous>, transform_indices = @transform_3, window_bounds = array<i64: 128, 32>}, {pipeline_mode = #tpu.pipeline_mode<synchronous>, transform_indices = @transform_4, window_bounds = array<i64: 1, 32>}, {transform_indices = @transform_5, window_bounds = array<i64: 64, 128>}]} {
    %c0 = arith.constant 0 : index
    %c0_0 = arith.constant 0 : index
    %0 = vector.load %arg1[%c0, %c0_0] : memref<64x128xbf16, #tpu.memory_space<vmem>>, vector<64x128xbf16>
    %1 = arith.extf %0 : vector<64x128xbf16> to vector<64x128xf32>
    %c0_1 = arith.constant 0 : index
    %c0_2 = arith.constant 0 : index
    %2 = vector.load %arg4[%c0_1, %c0_2] : memref<128x32xf32, #tpu.memory_space<vmem>>, vector<128x32xf32>
    %c0_3 = arith.constant 0 : index
    %c0_4 = arith.constant 0 : index
    %3 = vector.load %arg2[%c0_3, %c0_4] : memref<64x2xf32, #tpu.memory_space<vmem>>, vector<64x1xf32>
    %c0_5 = arith.constant 0 : index
    %c0_6 = arith.constant 0 : index
    %4 = vector.load %arg3[%c0_5, %c0_6] : memref<2x128xf32, #tpu.memory_space<vmem>>, vector<1x128xf32>
    %5 = vector.broadcast %3 : vector<64x1xf32> to vector<64x128xf32>
    %6 = vector.broadcast %4 : vector<1x128xf32> to vector<64x128xf32>
    %7 = arith.addf %5, %6 : vector<64x128xf32>
    %cst = arith.constant 0.000000e+00 : f32
    %8 = vector.broadcast %cst : f32 to vector<64x128xf32>
    %9 = arith.cmpf ogt, %7, %8 : vector<64x128xf32>
    %cst_7 = arith.constant 2.000000e-01 : f32
    %10 = vector.broadcast %cst_7 : f32 to vector<64x128xf32>
    %11 = arith.mulf %10, %7 : vector<64x128xf32>
    %12 = arith.select %9, %7, %11 : vector<64x128xi1>, vector<64x128xf32>
    %13 = arith.addf %12, %1 : vector<64x128xf32>
    %cst_8 = arith.constant dense<0xFF800000> : vector<64xf32>
    %14 = vector.multi_reduction <maximumf>, %13, %cst_8 [1] : vector<64x128xf32> to vector<64xf32>
    %15 = vector.shape_cast %14 : vector<64xf32> to vector<64x1xf32>
    %16 = vector.broadcast %15 : vector<64x1xf32> to vector<64x128xf32>
    %17 = arith.subf %13, %16 : vector<64x128xf32>
    %18 = math.exp %17 : vector<64x128xf32>
    %cst_9 = arith.constant dense<0.000000e+00> : vector<64xf32>
    %19 = vector.multi_reduction <add>, %18, %cst_9 [1] : vector<64x128xf32> to vector<64xf32>
    %20 = vector.shape_cast %19 : vector<64xf32> to vector<64x1xf32>
    %21 = vector.extract_strided_slice %2 {offsets = [0, 0], sizes = [128, 16], strides = [1, 1]} : vector<128x32xf32> to vector<128x16xf32>
    %cst_10 = arith.constant dense<0.000000e+00> : vector<64x16xf32>
    %22 = tpu.matmul %18, %21, %cst_10 {dimension_numbers = #tpu.dot_dimension_numbers<[1], [0], [0], [1], [0, 0, 1, 1], [], []>, precision = #tpu.contract_precision<fp32>} : vector<64x128xf32>, vector<128x16xf32>, vector<64x16xf32> -> vector<64x16xf32>
    %23 = tpu.reciprocal %20 : vector<64x1xf32> -> vector<64x1xf32>
    %24 = vector.broadcast %23 : vector<64x1xf32> to vector<64x16xf32>
    %25 = arith.mulf %22, %24 : vector<64x16xf32>
    %c0_11 = arith.constant 0 : index
    %c0_12 = arith.constant 0 : index
    %26 = vector.load %arg5[%c0_11, %c0_12] : memref<1x32xf32, #tpu.memory_space<vmem>>, vector<1x16xf32>
    %27 = vector.broadcast %26 : vector<1x16xf32> to vector<64x16xf32>
    %28 = arith.addf %25, %27 : vector<64x16xf32>
    %cst_13 = arith.constant 0.000000e+00 : f32
    %29 = vector.broadcast %cst_13 : f32 to vector<64x16xf32>
    %30 = arith.maximumf %28, %29 : vector<64x16xf32>
    %c0_14 = arith.constant 0 : index
    %c0_15 = arith.constant 0 : index
    %31 = vector.load %arg6[%c0_14, %c0_15] : memref<64x128xf32, #tpu.memory_space<vmem>>, vector<64x16xf32>
    tpu.vector_store %arg6[%c0_14, %c0_15], %30 {strides = array<i32>} : memref<64x128xf32, #tpu.memory_space<vmem>>, vector<64x16xf32>,
    %c0_16 = arith.constant 0 : index
    %c1 = arith.constant 1 : index
    %32 = vector.load %arg2[%c0_16, %c1] : memref<64x2xf32, #tpu.memory_space<vmem>>, vector<64x1xf32>
    %c1_17 = arith.constant 1 : index
    %c0_18 = arith.constant 0 : index
    %33 = vector.load %arg3[%c1_17, %c0_18] : memref<2x128xf32, #tpu.memory_space<vmem>>, vector<1x128xf32>
    %34 = vector.broadcast %32 : vector<64x1xf32> to vector<64x128xf32>
    %35 = vector.broadcast %33 : vector<1x128xf32> to vector<64x128xf32>
    %36 = arith.addf %34, %35 : vector<64x128xf32>
    %cst_19 = arith.constant 0.000000e+00 : f32
    %37 = vector.broadcast %cst_19 : f32 to vector<64x128xf32>
    %38 = arith.cmpf ogt, %36, %37 : vector<64x128xf32>
    %cst_20 = arith.constant 2.000000e-01 : f32
    %39 = vector.broadcast %cst_20 : f32 to vector<64x128xf32>
    %40 = arith.mulf %39, %36 : vector<64x128xf32>
    %41 = arith.select %38, %36, %40 : vector<64x128xi1>, vector<64x128xf32>
    %42 = arith.addf %41, %1 : vector<64x128xf32>
    %cst_21 = arith.constant dense<0xFF800000> : vector<64xf32>
    %43 = vector.multi_reduction <maximumf>, %42, %cst_21 [1] : vector<64x128xf32> to vector<64xf32>
    %44 = vector.shape_cast %43 : vector<64xf32> to vector<64x1xf32>
    %45 = vector.broadcast %44 : vector<64x1xf32> to vector<64x128xf32>
    %46 = arith.subf %42, %45 : vector<64x128xf32>
    %47 = math.exp %46 : vector<64x128xf32>
    %cst_22 = arith.constant dense<0.000000e+00> : vector<64xf32>
    %48 = vector.multi_reduction <add>, %47, %cst_22 [1] : vector<64x128xf32> to vector<64xf32>
    %49 = vector.shape_cast %48 : vector<64xf32> to vector<64x1xf32>
    %50 = vector.extract_strided_slice %2 {offsets = [0, 16], sizes = [128, 16], strides = [1, 1]} : vector<128x32xf32> to vector<128x16xf32>
    %cst_23 = arith.constant dense<0.000000e+00> : vector<64x16xf32>
    %51 = tpu.matmul %47, %50, %cst_23 {dimension_numbers = #tpu.dot_dimension_numbers<[1], [0], [0], [1], [0, 0, 1, 1], [], []>, precision = #tpu.contract_precision<fp32>} : vector<64x128xf32>, vector<128x16xf32>, vector<64x16xf32> -> vector<64x16xf32>
    %52 = tpu.reciprocal %49 : vector<64x1xf32> -> vector<64x1xf32>
    %53 = vector.broadcast %52 : vector<64x1xf32> to vector<64x16xf32>
    %54 = arith.mulf %51, %53 : vector<64x16xf32>
    %c0_24 = arith.constant 0 : index
    %c16 = arith.constant 16 : index
    %55 = vector.load %arg5[%c0_24, %c16] : memref<1x32xf32, #tpu.memory_space<vmem>>, vector<1x16xf32>
    %56 = vector.broadcast %55 : vector<1x16xf32> to vector<64x16xf32>
    %57 = arith.addf %54, %56 : vector<64x16xf32>
    %cst_25 = arith.constant 0.000000e+00 : f32
    %58 = vector.broadcast %cst_25 : f32 to vector<64x16xf32>
    %59 = arith.maximumf %57, %58 : vector<64x16xf32>
    %c0_26 = arith.constant 0 : index
    %c16_27 = arith.constant 16 : index
    %60 = vector.load %arg6[%c0_26, %c16_27] : memref<64x128xf32, #tpu.memory_space<vmem>>, vector<64x16xf32>
    tpu.vector_store %arg6[%c0_26, %c16_27], %59 {strides = array<i32>} : memref<64x128xf32, #tpu.memory_space<vmem>>, vector<64x16xf32>,
    %cst_28 = arith.constant 0.000000e+00 : f32
    %61 = vector.broadcast %cst_28 : f32 to vector<64x96xf32>
    %c0_29 = arith.constant 0 : index
    %c32 = arith.constant 32 : index
    %62 = vector.load %arg6[%c0_29, %c32] : memref<64x128xf32, #tpu.memory_space<vmem>>, vector<64x96xf32>
    tpu.vector_store %arg6[%c0_29, %c32], %61 {strides = array<i32>} : memref<64x128xf32, #tpu.memory_space<vmem>>, vector<64x96xf32>,
    return
  }
  func.func @transform_0(%arg0: i32) -> (i32, i32) {
    %c0_i32 = arith.constant 0 : i32
    %c0_i32_0 = arith.constant 0 : i32
    return %arg0, %c0_i32 : i32, i32
  }
  func.func @transform_1(%arg0: i32) -> (i32, i32) {
    %c0_i32 = arith.constant 0 : i32
    %c0_i32_0 = arith.constant 0 : i32
    return %arg0, %c0_i32 : i32, i32
  }
  func.func @transform_2(%arg0: i32) -> (i32, i32) {
    %c0_i32 = arith.constant 0 : i32
    %c0_i32_0 = arith.constant 0 : i32
    %c0_i32_1 = arith.constant 0 : i32
    return %c0_i32, %c0_i32_0 : i32, i32
  }
  func.func @transform_3(%arg0: i32) -> (i32, i32) {
    %c0_i32 = arith.constant 0 : i32
    %c0_i32_0 = arith.constant 0 : i32
    %c0_i32_1 = arith.constant 0 : i32
    return %c0_i32, %c0_i32_0 : i32, i32
  }
  func.func @transform_4(%arg0: i32) -> (i32, i32) {
    %c0_i32 = arith.constant 0 : i32
    %c0_i32_0 = arith.constant 0 : i32
    %c0_i32_1 = arith.constant 0 : i32
    return %c0_i32, %c0_i32_0 : i32, i32
  }
  func.func @transform_5(%arg0: i32) -> (i32, i32) {
    %c0_i32 = arith.constant 0 : i32
    %c0_i32_0 = arith.constant 0 : i32
    return %arg0, %c0_i32 : i32, i32
  }
}

module attributes {stable_mosaic.version = 11 : i64} {
  func.func @_transform_kernel(%arg0: i32, %arg1: memref<64x128xf32, #tpu.memory_space<vmem>>, %arg2: memref<128x128xf32, #tpu.memory_space<vmem>>, %arg3: memref<64x128xf32, #tpu.memory_space<vmem>>) attributes {dimension_semantics = [#tpu.dimension_semantics<parallel>], iteration_bounds = array<i64: 2>, scalar_prefetch = 0 : i64, scratch_operands = 0 : i64, tpu.core_type = #tpu.core_type<tc>, window_params = [{transform_indices = @transform_0, window_bounds = array<i64: 64, 128>}, {pipeline_mode = #tpu.pipeline_mode<synchronous>, transform_indices = @transform_1, window_bounds = array<i64: 128, 128>}, {transform_indices = @transform_2, window_bounds = array<i64: 64, 128>}]} {
    %c0 = arith.constant 0 : index
    %c0_0 = arith.constant 0 : index
    %0 = vector.load %arg1[%c0, %c0_0] : memref<64x128xf32, #tpu.memory_space<vmem>>, vector<64x128xf32>
    %c0_1 = arith.constant 0 : index
    %c0_2 = arith.constant 0 : index
    %1 = vector.load %arg2[%c0_1, %c0_2] : memref<128x128xf32, #tpu.memory_space<vmem>>, vector<128x128xf32>
    %cst = arith.constant dense<0.000000e+00> : vector<64x128xf32>
    %2 = tpu.matmul %0, %1, %cst {dimension_numbers = #tpu.dot_dimension_numbers<[1], [0], [0], [1], [0, 0, 1, 1], [], []>, precision = #tpu.contract_precision<fp32>} : vector<64x128xf32>, vector<128x128xf32>, vector<64x128xf32> -> vector<64x128xf32>
    %c0_3 = arith.constant 0 : index
    %c0_4 = arith.constant 0 : index
    %3 = vector.load %arg3[%c0_3, %c0_4] : memref<64x128xf32, #tpu.memory_space<vmem>>, vector<64x128xf32>
    tpu.vector_store %arg3[%c0_3, %c0_4], %2 {strides = array<i32>} : memref<64x128xf32, #tpu.memory_space<vmem>>, vector<64x128xf32>,
    return
  }
  func.func @transform_0(%arg0: i32) -> (i32, i32) {
    %c0_i32 = arith.constant 0 : i32
    %c0_i32_0 = arith.constant 0 : i32
    return %arg0, %c0_i32 : i32, i32
  }
  func.func @transform_1(%arg0: i32) -> (i32, i32) {
    %c0_i32 = arith.constant 0 : i32
    %c0_i32_0 = arith.constant 0 : i32
    %c0_i32_1 = arith.constant 0 : i32
    return %c0_i32, %c0_i32_0 : i32, i32
  }
  func.func @transform_2(%arg0: i32) -> (i32, i32) {
    %c0_i32 = arith.constant 0 : i32
    %c0_i32_0 = arith.constant 0 : i32
    return %arg0, %c0_i32 : i32, i32
  }
}

module attributes {stable_mosaic.version = 11 : i64} {
  func.func @_gat_attn_kernel(%arg0: i32, %arg1: memref<64x128xbf16, #tpu.memory_space<vmem>>, %arg2: memref<64x1xf32, #tpu.memory_space<vmem>>, %arg3: memref<1x128xf32, #tpu.memory_space<vmem>>, %arg4: memref<128x32xf32, #tpu.memory_space<vmem>>, %arg5: memref<1x32xf32, #tpu.memory_space<vmem>>, %arg6: memref<64x128xf32, #tpu.memory_space<vmem>>) attributes {dimension_semantics = [#tpu.dimension_semantics<parallel>], iteration_bounds = array<i64: 2>, scalar_prefetch = 0 : i64, scratch_operands = 0 : i64, tpu.core_type = #tpu.core_type<tc>, window_params = [{transform_indices = @transform_0, window_bounds = array<i64: 64, 128>}, {transform_indices = @transform_1, window_bounds = array<i64: 64, 1>}, {pipeline_mode = #tpu.pipeline_mode<synchronous>, transform_indices = @transform_2, window_bounds = array<i64: 1, 128>}, {pipeline_mode = #tpu.pipeline_mode<synchronous>, transform_indices = @transform_3, window_bounds = array<i64: 128, 32>}, {pipeline_mode = #tpu.pipeline_mode<synchronous>, transform_indices = @transform_4, window_bounds = array<i64: 1, 32>}, {transform_indices = @transform_5, window_bounds = array<i64: 64, 128>}]} {
    %c0 = arith.constant 0 : index
    %c0_0 = arith.constant 0 : index
    %0 = vector.load %arg1[%c0, %c0_0] : memref<64x128xbf16, #tpu.memory_space<vmem>>, vector<64x128xbf16>
    %1 = arith.extf %0 : vector<64x128xbf16> to vector<64x128xf32>
    %c0_1 = arith.constant 0 : index
    %c0_2 = arith.constant 0 : index
    %2 = vector.load %arg4[%c0_1, %c0_2] : memref<128x32xf32, #tpu.memory_space<vmem>>, vector<128x32xf32>
    %c0_3 = arith.constant 0 : index
    %c0_4 = arith.constant 0 : index
    %3 = vector.load %arg2[%c0_3, %c0_4] : memref<64x1xf32, #tpu.memory_space<vmem>>, vector<64x1xf32>
    %c0_5 = arith.constant 0 : index
    %c0_6 = arith.constant 0 : index
    %4 = vector.load %arg3[%c0_5, %c0_6] : memref<1x128xf32, #tpu.memory_space<vmem>>, vector<1x128xf32>
    %5 = vector.broadcast %3 : vector<64x1xf32> to vector<64x128xf32>
    %6 = vector.broadcast %4 : vector<1x128xf32> to vector<64x128xf32>
    %7 = arith.addf %5, %6 : vector<64x128xf32>
    %cst = arith.constant 0.000000e+00 : f32
    %8 = vector.broadcast %cst : f32 to vector<64x128xf32>
    %9 = arith.cmpf ogt, %7, %8 : vector<64x128xf32>
    %cst_7 = arith.constant 2.000000e-01 : f32
    %10 = vector.broadcast %cst_7 : f32 to vector<64x128xf32>
    %11 = arith.mulf %10, %7 : vector<64x128xf32>
    %12 = arith.select %9, %7, %11 : vector<64x128xi1>, vector<64x128xf32>
    %13 = arith.addf %12, %1 : vector<64x128xf32>
    %cst_8 = arith.constant dense<0xFF800000> : vector<64xf32>
    %14 = vector.multi_reduction <maximumf>, %13, %cst_8 [1] : vector<64x128xf32> to vector<64xf32>
    %15 = vector.shape_cast %14 : vector<64xf32> to vector<64x1xf32>
    %16 = vector.broadcast %15 : vector<64x1xf32> to vector<64x128xf32>
    %17 = arith.subf %13, %16 : vector<64x128xf32>
    %18 = math.exp %17 : vector<64x128xf32>
    %cst_9 = arith.constant dense<0.000000e+00> : vector<64xf32>
    %19 = vector.multi_reduction <add>, %18, %cst_9 [1] : vector<64x128xf32> to vector<64xf32>
    %20 = vector.shape_cast %19 : vector<64xf32> to vector<64x1xf32>
    %cst_10 = arith.constant dense<0.000000e+00> : vector<64x32xf32>
    %21 = tpu.matmul %18, %2, %cst_10 {dimension_numbers = #tpu.dot_dimension_numbers<[1], [0], [0], [1], [0, 0, 1, 1], [], []>, precision = #tpu.contract_precision<fp32>} : vector<64x128xf32>, vector<128x32xf32>, vector<64x32xf32> -> vector<64x32xf32>
    %22 = tpu.reciprocal %20 : vector<64x1xf32> -> vector<64x1xf32>
    %23 = vector.broadcast %22 : vector<64x1xf32> to vector<64x32xf32>
    %24 = arith.mulf %21, %23 : vector<64x32xf32>
    %c0_11 = arith.constant 0 : index
    %c0_12 = arith.constant 0 : index
    %25 = vector.load %arg5[%c0_11, %c0_12] : memref<1x32xf32, #tpu.memory_space<vmem>>, vector<1x32xf32>
    %26 = vector.broadcast %25 : vector<1x32xf32> to vector<64x32xf32>
    %27 = arith.addf %24, %26 : vector<64x32xf32>
    %cst_13 = arith.constant 0.000000e+00 : f32
    %28 = vector.broadcast %cst_13 : f32 to vector<64x32xf32>
    %29 = arith.maximumf %27, %28 : vector<64x32xf32>
    %c0_14 = arith.constant 0 : index
    %c0_15 = arith.constant 0 : index
    %30 = vector.load %arg6[%c0_14, %c0_15] : memref<64x128xf32, #tpu.memory_space<vmem>>, vector<64x32xf32>
    tpu.vector_store %arg6[%c0_14, %c0_15], %29 {strides = array<i32>} : memref<64x128xf32, #tpu.memory_space<vmem>>, vector<64x32xf32>,
    %cst_16 = arith.constant 0.000000e+00 : f32
    %31 = vector.broadcast %cst_16 : f32 to vector<64x96xf32>
    %c0_17 = arith.constant 0 : index
    %c32 = arith.constant 32 : index
    %32 = vector.load %arg6[%c0_17, %c32] : memref<64x128xf32, #tpu.memory_space<vmem>>, vector<64x96xf32>
    tpu.vector_store %arg6[%c0_17, %c32], %31 {strides = array<i32>} : memref<64x128xf32, #tpu.memory_space<vmem>>, vector<64x96xf32>,
    return
  }
  func.func @transform_0(%arg0: i32) -> (i32, i32) {
    %c0_i32 = arith.constant 0 : i32
    %c0_i32_0 = arith.constant 0 : i32
    return %arg0, %c0_i32 : i32, i32
  }
  func.func @transform_1(%arg0: i32) -> (i32, i32) {
    %c0_i32 = arith.constant 0 : i32
    %c0_i32_0 = arith.constant 0 : i32
    return %arg0, %c0_i32 : i32, i32
  }
  func.func @transform_2(%arg0: i32) -> (i32, i32) {
    %c0_i32 = arith.constant 0 : i32
    %c0_i32_0 = arith.constant 0 : i32
    %c0_i32_1 = arith.constant 0 : i32
    return %c0_i32, %c0_i32_0 : i32, i32
  }
  func.func @transform_3(%arg0: i32) -> (i32, i32) {
    %c0_i32 = arith.constant 0 : i32
    %c0_i32_0 = arith.constant 0 : i32
    %c0_i32_1 = arith.constant 0 : i32
    return %c0_i32, %c0_i32_0 : i32, i32
  }
  func.func @transform_4(%arg0: i32) -> (i32, i32) {
    %c0_i32 = arith.constant 0 : i32
    %c0_i32_0 = arith.constant 0 : i32
    %c0_i32_1 = arith.constant 0 : i32
    return %c0_i32, %c0_i32_0 : i32, i32
  }
  func.func @transform_5(%arg0: i32) -> (i32, i32) {
    %c0_i32 = arith.constant 0 : i32
    %c0_i32_0 = arith.constant 0 : i32
    return %arg0, %c0_i32 : i32, i32
  }
}

module attributes {stable_mosaic.version = 11 : i64} {
  func.func @_gat_attn_kernel(%arg0: i32, %arg1: memref<64x128xbf16, #tpu.memory_space<vmem>>, %arg2: memref<64x1xf32, #tpu.memory_space<vmem>>, %arg3: memref<1x128xf32, #tpu.memory_space<vmem>>, %arg4: memref<128x8xf32, #tpu.memory_space<vmem>>, %arg5: memref<1x8xf32, #tpu.memory_space<vmem>>, %arg6: memref<64x128xf32, #tpu.memory_space<vmem>>) attributes {dimension_semantics = [#tpu.dimension_semantics<parallel>], iteration_bounds = array<i64: 2>, scalar_prefetch = 0 : i64, scratch_operands = 0 : i64, tpu.core_type = #tpu.core_type<tc>, window_params = [{transform_indices = @transform_0, window_bounds = array<i64: 64, 128>}, {transform_indices = @transform_1, window_bounds = array<i64: 64, 1>}, {pipeline_mode = #tpu.pipeline_mode<synchronous>, transform_indices = @transform_2, window_bounds = array<i64: 1, 128>}, {pipeline_mode = #tpu.pipeline_mode<synchronous>, transform_indices = @transform_3, window_bounds = array<i64: 128, 8>}, {pipeline_mode = #tpu.pipeline_mode<synchronous>, transform_indices = @transform_4, window_bounds = array<i64: 1, 8>}, {transform_indices = @transform_5, window_bounds = array<i64: 64, 128>}]} {
    %c0 = arith.constant 0 : index
    %c0_0 = arith.constant 0 : index
    %0 = vector.load %arg1[%c0, %c0_0] : memref<64x128xbf16, #tpu.memory_space<vmem>>, vector<64x128xbf16>
    %1 = arith.extf %0 : vector<64x128xbf16> to vector<64x128xf32>
    %c0_1 = arith.constant 0 : index
    %c0_2 = arith.constant 0 : index
    %2 = vector.load %arg4[%c0_1, %c0_2] : memref<128x8xf32, #tpu.memory_space<vmem>>, vector<128x8xf32>
    %c0_3 = arith.constant 0 : index
    %c0_4 = arith.constant 0 : index
    %3 = vector.load %arg2[%c0_3, %c0_4] : memref<64x1xf32, #tpu.memory_space<vmem>>, vector<64x1xf32>
    %c0_5 = arith.constant 0 : index
    %c0_6 = arith.constant 0 : index
    %4 = vector.load %arg3[%c0_5, %c0_6] : memref<1x128xf32, #tpu.memory_space<vmem>>, vector<1x128xf32>
    %5 = vector.broadcast %3 : vector<64x1xf32> to vector<64x128xf32>
    %6 = vector.broadcast %4 : vector<1x128xf32> to vector<64x128xf32>
    %7 = arith.addf %5, %6 : vector<64x128xf32>
    %cst = arith.constant 0.000000e+00 : f32
    %8 = vector.broadcast %cst : f32 to vector<64x128xf32>
    %9 = arith.cmpf ogt, %7, %8 : vector<64x128xf32>
    %cst_7 = arith.constant 2.000000e-01 : f32
    %10 = vector.broadcast %cst_7 : f32 to vector<64x128xf32>
    %11 = arith.mulf %10, %7 : vector<64x128xf32>
    %12 = arith.select %9, %7, %11 : vector<64x128xi1>, vector<64x128xf32>
    %13 = arith.addf %12, %1 : vector<64x128xf32>
    %cst_8 = arith.constant dense<0xFF800000> : vector<64xf32>
    %14 = vector.multi_reduction <maximumf>, %13, %cst_8 [1] : vector<64x128xf32> to vector<64xf32>
    %15 = vector.shape_cast %14 : vector<64xf32> to vector<64x1xf32>
    %16 = vector.broadcast %15 : vector<64x1xf32> to vector<64x128xf32>
    %17 = arith.subf %13, %16 : vector<64x128xf32>
    %18 = math.exp %17 : vector<64x128xf32>
    %cst_9 = arith.constant dense<0.000000e+00> : vector<64xf32>
    %19 = vector.multi_reduction <add>, %18, %cst_9 [1] : vector<64x128xf32> to vector<64xf32>
    %20 = vector.shape_cast %19 : vector<64xf32> to vector<64x1xf32>
    %cst_10 = arith.constant dense<0.000000e+00> : vector<64x8xf32>
    %21 = tpu.matmul %18, %2, %cst_10 {dimension_numbers = #tpu.dot_dimension_numbers<[1], [0], [0], [1], [0, 0, 1, 1], [], []>, precision = #tpu.contract_precision<fp32>} : vector<64x128xf32>, vector<128x8xf32>, vector<64x8xf32> -> vector<64x8xf32>
    %22 = tpu.reciprocal %20 : vector<64x1xf32> -> vector<64x1xf32>
    %23 = vector.broadcast %22 : vector<64x1xf32> to vector<64x8xf32>
    %24 = arith.mulf %21, %23 : vector<64x8xf32>
    %c0_11 = arith.constant 0 : index
    %c0_12 = arith.constant 0 : index
    %25 = vector.load %arg5[%c0_11, %c0_12] : memref<1x8xf32, #tpu.memory_space<vmem>>, vector<1x8xf32>
    %26 = vector.broadcast %25 : vector<1x8xf32> to vector<64x8xf32>
    %27 = arith.addf %24, %26 : vector<64x8xf32>
    %cst_13 = arith.constant dense<0xFF800000> : vector<64xf32>
    %28 = vector.multi_reduction <maximumf>, %27, %cst_13 [1] : vector<64x8xf32> to vector<64xf32>
    %29 = vector.shape_cast %28 : vector<64xf32> to vector<64x1xf32>
    %30 = vector.broadcast %29 : vector<64x1xf32> to vector<64x8xf32>
    %31 = arith.subf %27, %30 : vector<64x8xf32>
    %32 = math.exp %31 : vector<64x8xf32>
    %cst_14 = arith.constant dense<0.000000e+00> : vector<64xf32>
    %33 = vector.multi_reduction <add>, %32, %cst_14 [1] : vector<64x8xf32> to vector<64xf32>
    %34 = vector.shape_cast %33 : vector<64xf32> to vector<64x1xf32>
    %35 = math.log %34 : vector<64x1xf32>
    %36 = arith.addf %35, %29 : vector<64x1xf32>
    %37 = vector.broadcast %36 : vector<64x1xf32> to vector<64x8xf32>
    %38 = arith.subf %27, %37 : vector<64x8xf32>
    %c0_15 = arith.constant 0 : index
    %c0_16 = arith.constant 0 : index
    %39 = vector.load %arg6[%c0_15, %c0_16] : memref<64x128xf32, #tpu.memory_space<vmem>>, vector<64x8xf32>
    tpu.vector_store %arg6[%c0_15, %c0_16], %38 {strides = array<i32>} : memref<64x128xf32, #tpu.memory_space<vmem>>, vector<64x8xf32>,
    %cst_17 = arith.constant 0.000000e+00 : f32
    %40 = vector.broadcast %cst_17 : f32 to vector<64x120xf32>
    %c0_18 = arith.constant 0 : index
    %c8 = arith.constant 8 : index
    %41 = vector.load %arg6[%c0_18, %c8] : memref<64x128xf32, #tpu.memory_space<vmem>>, vector<64x120xf32>
    tpu.vector_store %arg6[%c0_18, %c8], %40 {strides = array<i32>} : memref<64x128xf32, #tpu.memory_space<vmem>>, vector<64x120xf32>,
    return
  }
  func.func @transform_0(%arg0: i32) -> (i32, i32) {
    %c0_i32 = arith.constant 0 : i32
    %c0_i32_0 = arith.constant 0 : i32
    return %arg0, %c0_i32 : i32, i32
  }
  func.func @transform_1(%arg0: i32) -> (i32, i32) {
    %c0_i32 = arith.constant 0 : i32
    %c0_i32_0 = arith.constant 0 : i32
    return %arg0, %c0_i32 : i32, i32
  }
  func.func @transform_2(%arg0: i32) -> (i32, i32) {
    %c0_i32 = arith.constant 0 : i32
    %c0_i32_0 = arith.constant 0 : i32
    %c0_i32_1 = arith.constant 0 : i32
    return %c0_i32, %c0_i32_0 : i32, i32
  }
  func.func @transform_3(%arg0: i32) -> (i32, i32) {
    %c0_i32 = arith.constant 0 : i32
    %c0_i32_0 = arith.constant 0 : i32
    %c0_i32_1 = arith.constant 0 : i32
    return %c0_i32, %c0_i32_0 : i32, i32
  }
  func.func @transform_4(%arg0: i32) -> (i32, i32) {
    %c0_i32 = arith.constant 0 : i32
    %c0_i32_0 = arith.constant 0 : i32
    %c0_i32_1 = arith.constant 0 : i32
    return %c0_i32, %c0_i32_0 : i32, i32
  }
  func.func @transform_5(%arg0: i32) -> (i32, i32) {
    %c0_i32 = arith.constant 0 : i32
    %c0_i32_0 = arith.constant 0 : i32
    return %arg0, %c0_i32 : i32, i32
  }
}

</mosaic_0001>

<bundles_post_ra>
// kernel: gat_forward.8
= control target key start
LH: loop header
LB: loop body
LE: loop exit
PB: predicated region body
PF: predicated region fallthrough
CT: control target
= control target key end

     0   :  { %s1859_s9 = smov 0   ;;  %s2295_s0 = inlined_call_operand.vmem [shape: f32[128,128], index: 0, kind: input, shape index: {}]   ;;  %s2296_s1 = inlined_call_operand.vmem [shape: f32[128,128], index: 1, kind: input, shape index: {}]   ;;  %s2297_s2 = inlined_call_operand.vmem [shape: f32[128,128], index: 2, kind: output, shape index: {}]  }
   0x1 LB: > { %s1177_s10 = sadd.s32 4294967295, %s1842_s9   ;;  %p1181_p0 = scmp.ge.s32.totalorder %s1842_s9, 1  ;;  %s1842_s9 = sphi %s1859_s9, %s12_s9  }
   0x2   : > { %p113_p1 = scmp.lt.s32.totalorder %s1842_s9, 3 }
   0x4   : > { %p114_p2 = pnand %p1181_p0, %p113_p1 }
   0x6   : > { %117 = sbr.rel (%p114_p2) target bundleno = 342 (0x156), region = 28 }
   0xd   : > { %v155_v0 = vld [vmem:[%s2296_s1] sm:$0xff]  ;;  %v156_v1 = vld [vmem:[%s2296_s1 + $0x8] sm:$0xff]  ;;  %v157_v2 = vld [vmem:[%s2296_s1 + $0x10] sm:$0xff]  ;;  %s1182_s17 = sshll.u32 %s1177_s10, 3 }
   0xe   : > { %v172_v3 = vand.u32 4294901760, %v155_v0  ;;  %v175_v4 = vand.u32 4294901760, %v156_v1  ;;  %v1879_v5 = vld [vmem:[%s2296_s1 + $0x18] sm:$0xff]  ;;  %v178_v6 = vand.u32 4294901760, %v157_v2  ;;  %v1884_v7 = vld [vmem:[%s2296_s1 + $0x20] sm:$0xff]  ;;  %v1889_v8 = vld [vmem:[%s2296_s1 + $0x28] sm:$0xff] }
   0xf   : > { %v181_v9 = vand.u32 4294901760, %v1879_v5  ;;  %v184_v11 = vand.u32 4294901760, %v1884_v7  ;;  %v187_v12 = vand.u32 4294901760, %v1889_v8  ;;  %v1901_v14 = vld [vmem:[%s2296_s1 + $0x30] sm:$0xff]  ;;  %v1906_v15 = vld [vmem:[%s2296_s1 + $0x38] sm:$0xff]  ;;  %p136_p3 = scmp.lt.s32.totalorder %s1182_s17, 15 }
  0x10   : > { %v1892_v10 = vpack.c.bf16 %v175_v4, %v172_v3  ;;  %v190_v17 = vand.u32 4294901760, %v1901_v14  ;;  %v193_v18 = vand.u32 4294901760, %v1906_v15  ;;  %v1927_v19 = vld [vmem:[%s2296_s1 + $0x40] sm:$0xff]  ;;  %v1932_v20 = vld [vmem:[%s2296_s1 + $0x48] sm:$0xff]  ;;  %v1958_v25 = vld [vmem:[%s2296_s1 + $0x50] sm:$0xff]  ;;  %v1970_v29 = vsub.f32 %v155_v0, %v172_v3 }
  0x11   : > { %v1896_v13 = vpack.c.bf16 %v181_v9, %v178_v6  ;;  %s2350_s17 = smov (!%p136_p3, %s1182_s17), 15  ;;  %v1920_v16 = vpack.c.bf16 %v187_v12, %v184_v11  ;;  %v196_v23 = vand.u32 4294901760, %v1927_v19  ;;  %v199_v24 = vand.u32 4294901760, %v1932_v20  ;;  %v1965_v27 = vld [vmem:[%s2296_s1 + $0x58] sm:$0xff]  ;;  %v1990_v35 = vld [vmem:[%s2296_s1 + $0x60] sm:$0xff]  ;;  %v1995_v36 = vld [vmem:[%s2296_s1 + $0x68] sm:$0xff] }
  0x12   : > { %1597 = vmatprep.subr.bf16.mxu1 %v1892_v10  ;;  %1693 = vmatprep.subr.bf16.mxu0 %v1892_v10  ;;  %s1183_s4 = sshll.u32 %s2350_s17, 3  ;;  %v1951_v22 = vpack.c.bf16 %v193_v18, %v190_v17  ;;  %v1972_v30 = vsub.f32 %v156_v1, %v175_v4  ;;  %v202_v32 = vand.u32 4294901760, %v1958_v25  ;;  %v2303_v34 = vand.u32 4294901760, %v1965_v27  ;;  %v2005_v40 = vld [vmem:[%s2296_s1 + $0x70] sm:$0xff]  ;;  %v2010_v41 = vld [vmem:[%s2296_s1 + $0x78] sm:$0xff] }
  0x13   : > { %1599 = vmatpush3.bf16.msra.mxu1 %v1892_v10  ;;  %1695 = vmatpush3.bf16.msra.mxu0 %v1892_v10  ;;  %s1940_s7 = scalar_lea.vmem %s2295_s0, %s1183_s4  ;;  %v1984_v33 = vpack.c.bf16 %v199_v24, %v196_v23  ;;  %v1998_v38 = vsub.f32 %v157_v2, %v178_v6  ;;  %v335_v43 = vand.u32 4294901760, %v1970_v29  ;;  %v2301_v46 = vand.u32 4294901760, %v1990_v35  ;;  %s2282_s24 = scalar_lea.vmem %s2297_s2, %s1183_s4 }
  0x14   : > { %1601 = vmatprep.subr.bf16.mxu1 %v1896_v13  ;;  %1697 = vmatprep.subr.bf16.mxu0 %v1896_v13  ;;  %v147_v21 = vld [vmem:[%s1940_s7] sm:$0xff]  ;;  %2322 = vst [vmem:[#allocation2_spill] sm:$0xff] %v1951_v22  ;;  %v148_v31 = vld [vmem:[%s1940_s7 + $0x8] sm:$0xff]  ;;  %v342_v44 = vand.u32 4294901760, %v1972_v30  ;;  %v149_v45 = vld [vmem:[%s1940_s7 + $0x10] sm:$0xff]  ;;  %v2300_v47 = vand.u32 4294901760, %v1995_v36  ;;  %v2021_v48 = vsub.f32 %v1879_v5, %v181_v9  ;;  %v2030_v50 = vpack.c.bf16 %v2303_v34, %v202_v32 }
  0x15   : > { %v1960_v26 = vand.u32 4294901760, %v147_v21  ;;  %2324 = vst [vmem:[#allocation4_spill] sm:$0xff] %v1984_v33  ;;  %v2000_v39 = vand.u32 4294901760, %v148_v31  ;;  %v150_v49 = vld [vmem:[%s1940_s7 + $0x18] sm:$0xff]  ;;  %v349_v52 = vand.u32 4294901760, %v1998_v38  ;;  %v2299_v53 = vand.u32 4294901760, %v2005_v40 }
  0x16   : > { %2325 = vst [vmem:[#allocation5_spill] sm:$0xff] %v2030_v50  ;;  %v2298_v54 = vand.u32 4294901760, %v2010_v41  ;;  %v2038_v56 = vand.u32 4294901760, %v149_v45  ;;  %v336_v57 = vsub.f32 %v1970_v29, %v335_v43  ;;  %v343_v58 = vsub.f32 %v1972_v30, %v342_v44  ;;  %v151_v60 = vld [vmem:[%s1940_s7 + $0x20] sm:$0xff] }
  0x17   : > { %1603 = vmatpush3.bf16.msra.mxu1 %v1896_v13  ;;  %1699 = vmatpush3.bf16.msra.mxu0 %v1896_v13  ;;  %v1968_v28 = vsub.f32 %v147_v21, %v1960_v26  ;;  %v2036_v55 = vsub.f32 %v148_v31, %v2000_v39  ;;  %v2042_v59 = vand.u32 4294901760, %v150_v49  ;;  %v2051_v61 = vpack.c.bf16 %v2300_v47, %v2301_v46  ;;  %v153_v31 = vld [vmem:[%s1940_s7 + $0x30] sm:$0xff] }
  0x18   : > { %1605 = vmatprep.subr.bf16.mxu1 %v1920_v16  ;;  %1701 = vmatprep.subr.bf16.mxu0 %v1920_v16  ;;  %v356_v62 = vand.u32 4294901760, %v2021_v48  ;;  %v2057_v63 = vsub.f32 %v1884_v7, %v184_v11  ;;  %v350_v0 = vsub.f32 %v1998_v38, %v349_v52  ;;  %v2065_v1 = vsub.f32 %v1889_v8, %v187_v12  ;;  %v152_v12 = vld [vmem:[%s1940_s7 + $0x28] sm:$0xff] }
  0x19   : > { %2323 = vst [vmem:[#allocation3_spill] sm:$0xff] %v1968_v28  ;;  %v254_v37 = vand.u32 4294901760, %v1968_v28  ;;  %2326 = vst [vmem:[#allocation6_spill] sm:$0xff] %v2051_v61  ;;  %v2070_v2 = vsub.f32 %v1901_v14, %v190_v17  ;;  %v2076_v3 = vpack.c.bf16 %v2298_v54, %v2299_v53  ;;  %v2302_v4 = vand.u32 4294901760, %v2036_v55 }
  0x1a   : > { %v2080_v5 = vsub.f32 %v149_v45, %v2038_v56  ;;  %v2082_v6 = vand.u32 4294901760, %v151_v60  ;;  %v337_v7 = vand.u32 4294901760, %v336_v57  ;;  %v344_v8 = vand.u32 4294901760, %v343_v58 }
  0x1b   : > { %1607 = vmatpush3.bf16.msra.mxu1 %v1920_v16  ;;  %1703 = vmatpush3.bf16.msra.mxu0 %v1920_v16  ;;  %v255_v42 = vsub.f32 %v1968_v28, %v254_v37  ;;  %2327 = vst [vmem:[#allocation7_spill] sm:$0xff] %v2076_v3  ;;  %v2087_v9 = vsub.f32 %v1906_v15, %v193_v18  ;;  %v351_v15 = vand.u32 4294901760, %v350_v0  ;;  %v363_v18 = vand.u32 4294901760, %v2057_v63 }
  0x1c   : > { %1609 = vmatprep.subr.bf16.mxu1 %v1951_v22  ;;  %1705 = vmatprep.subr.bf16.mxu0 %v1951_v22  ;;  %2328 = vst [vmem:[#allocation8_spill] sm:$0xff] %v2080_v5  ;;  %v2090_v11 = vsub.f32 %v150_v49, %v2042_v59  ;;  %v1724_v14 = vpack.c.bf16 %v342_v44, %v335_v43  ;;  %v274_v44 = vand.u32 4294901760, %v2080_v5  ;;  %v2111_v49 = vand.u32 4294901760, %v152_v12 }
  0x1d   : > { %1496 = vmatprep.mubr.f32.mxu0 %v254_v37  ;;  %v256_v51 = vand.u32 4294901760, %v255_v42  ;;  %v357_v17 = vsub.f32 %v2021_v48, %v356_v62  ;;  %v2096_v21 = vpack.c.bf16 %v356_v62, %v349_v52  ;;  %v370_v37 = vand.u32 4294901760, %v2065_v1 }
  0x1e   : > { %2329 = vst [vmem:[#allocation9_spill] sm:$0xff] %v2090_v11  ;;  %v2304_v42 = vand.u32 4294901760, %v2070_v2  ;;  %v265_v43 = vsub.f32 %v2036_v55, %v2302_v4  ;;  %v2109_v45 = vsub.f32 %v151_v60, %v2082_v6  ;;  %v1628_v52 = vpack.c.bf16 %v344_v8, %v337_v7 }
  0x1f   : > { %1611 = vmatpush3.bf16.msra.mxu1 %v1951_v22  ;;  %1707 = vmatpush3.bf16.msra.mxu0 %v1951_v22  ;;  %v384_v57 = vand.u32 4294901760, %v2087_v9  ;;  %v284_v58 = vand.u32 4294901760, %v2090_v11  ;;  %v2116_v62 = vand.u32 4294901760, %v153_v31  ;;  %v358_v0 = vand.u32 4294901760, %v357_v17 }
  0x20   : > { %1613 = vmatprep.subr.bf16.mxu1 %v1984_v33  ;;  %1709 = vmatprep.subr.bf16.mxu0 %v1984_v33  ;;  %v2123_v60 = vsub.f32 %v1927_v19, %v196_v23  ;;  %v2128_v7 = vsub.f32 %v1932_v20, %v199_v24  ;;  %v2131_v8 = vsub.f32 %v152_v12, %v2111_v49  ;;  %v266_v53 = vand.u32 4294901760, %v265_v43 }
  0x21   : > { %1364 = vmatprep.mubr.f32.mxu1 %v256_v51  ;;  %v154_v51 = vld [vmem:[%s1940_s7 + $0x38] sm:$0xff]  ;;  %2330 = vst [vmem:[#allocation10_spill] sm:$0xff] %v2116_v62  ;;  %v364_v54 = vsub.f32 %v2057_v63, %v363_v18  ;;  %v371_v17 = vsub.f32 %v2065_v1, %v370_v37  ;;  %v378_v19 = vsub.f32 %v2070_v2, %v2304_v42  ;;  %v294_v24 = vand.u32 4294901760, %v2109_v45 }
  0x22   : > { %v2140_v23 = vand.u32 4294901760, %v154_v51  ;;  %v275_v20 = vsub.f32 %v2080_v5, %v274_v44  ;;  %v2145_v12 = vsub.f32 %v153_v31, %v2116_v62  ;;  %v385_v47 = vsub.f32 %v2087_v9, %v384_v57 }
  0x23   : > { %1615 = vmatpush3.bf16.msra.mxu1 %v1984_v33  ;;  %1711 = vmatpush3.bf16.msra.mxu0 %v1984_v33  ;;  %v285_v46 = vsub.f32 %v2090_v11, %v284_v58  ;;  %v304_v4 = vand.u32 4294901760, %v2131_v8  ;;  %v391_v43 = vand.u32 4294901760, %v2123_v60  ;;  %v398_v42 = vand.u32 4294901760, %v2128_v7 }
  0x24   : > { %1617 = vmatprep.subr.bf16.mxu1 %v2030_v50  ;;  %1713 = vmatprep.subr.bf16.mxu0 %v2030_v50  ;;  %2331 = vst [vmem:[#allocation11_spill] sm:$0xff] %v2140_v23  ;;  %v2151_v34 = vsub.f32 %v154_v51, %v2140_v23  ;;  %v2160_v31 = vsub.f32 %v1958_v25, %v202_v32  ;;  %v2332_v11 = vand.u32 4294901760, %v1965_v27  ;;  %v379_v28 = vand.u32 4294901760, %v378_v19 }
  0x25   : > { %v1632_v51 = vpack.c.bf16 %v358_v0, %v351_v15  ;;  %v276_v33 = vand.u32 4294901760, %v275_v20  ;;  %v295_v23 = vsub.f32 %v2109_v45, %v294_v24  ;;  %v314_v62 = vand.u32 4294901760, %v2145_v12 }
  0x26   : > { %v2165_v5 = vsub.f32 %v1965_v27, %v2332_v11  ;;  %v2333_v25 = vand.u32 4294901760, %v2036_v55  ;;  %v386_v32 = vand.u32 4294901760, %v385_v47  ;;  %v286_v22 = vand.u32 4294901760, %v285_v46 }
  0x27   : > { %1619 = vmatpush3.bf16.msra.mxu1 %v2030_v50  ;;  %1715 = vmatpush3.bf16.msra.mxu0 %v2030_v50  ;;  %v372_v50 = vand.u32 4294901760, %v371_v17  ;;  %v305_v27 = vsub.f32 %v2131_v8, %v304_v4  ;;  %v324_v11 = vand.u32 4294901760, %v2151_v34  ;;  %v399_v15 = vsub.f32 %v2128_v7, %v398_v42 }
  0x28   : > { %1621 = vmatprep.subr.bf16.mxu1 %v2051_v61  ;;  %1717 = vmatprep.subr.bf16.mxu0 %v2051_v61  ;;  %v2334_v46 = vand.u32 4294901760, %v1990_v35  ;;  %v296_v0 = vand.u32 4294901760, %v295_v23  ;;  %v315_v17 = vsub.f32 %v2145_v12, %v314_v62  ;;  %v1640_v19 = vpack.c.bf16 %v386_v32, %v379_v28 }
  0x29   : > { %v2336_v20 = vand.u32 4294901760, %v2070_v2  ;;  %v2338_v23 = vand.u32 4294901760, %v2010_v41 }
  0x2a   : > { %v2181_v47 = vsub.f32 %v1990_v35, %v2334_v46  ;;  %v325_v35 = vsub.f32 %v2151_v34, %v324_v11 }
  0x2b   : > { %1623 = vmatpush3.bf16.msra.mxu1 %v2051_v61  ;;  %1719 = vmatpush3.bf16.msra.mxu0 %v2051_v61  ;;  %v365_v61 = vand.u32 4294901760, %v364_v54  ;;  %v392_v54 = vsub.f32 %v2123_v60, %v391_v43 }
  0x2c   : > { %1625 = vmatprep.subr.bf16.mxu1 %v2076_v3  ;;  %1721 = vmatprep.subr.bf16.mxu0 %v2076_v3  ;;  %v419_v28 = vand.u32 4294901760, %v2181_v47  ;;  %v326_v32 = vand.u32 4294901760, %v325_v35 }
  0x2f   : > { %1627 = vmatpush3.bf16.msra.mxu1 %v2076_v3  ;;  %1723 = vmatpush3.bf16.msra.mxu0 %v2076_v3  ;;  %v1732_v3 = vpack.c.bf16 %v370_v37, %v363_v18  ;;  %v405_v18 = vand.u32 4294901760, %v2160_v31  ;;  %v412_v37 = vand.u32 4294901760, %v2165_v5 }
  0x30   : > { %1629 = vmatprep.subr.bf16.mxu1 %v1628_v52  ;;  %1725 = vmatprep.subr.bf16.mxu0 %v1724_v14 }
  0x32   : > { %1365 = vmatmul.mubr.f32.vlgmr.msra.gmra.mrb[0].mxu1 %v266_v53  ;;  %1497 = vmatmul.mubr.f32.vlgmr.msra.gmra.mrb[0].mxu0 %v2333_v25  ;;  %v1636_v53 = vpack.c.bf16 %v372_v50, %v365_v61  ;;  %v1736_v25 = vpack.c.bf16 %v384_v57, %v2336_v20  ;;  %v306_v50 = vand.u32 4294901760, %v305_v27  ;;  %v393_v61 = vand.u32 4294901760, %v392_v54 }
  0x33   : > { %1631 = vmatpush3.bf16.msra.mxu1 %v1628_v52  ;;  %1727 = vmatpush3.bf16.msra.mxu0 %v1724_v14  ;;  %v2335_v52 = vand.u32 4294901760, %v1995_v36  ;;  %v1740_v54 = vpack.c.bf16 %v398_v42, %v391_v43  ;;  %v1660_v20 = vpack.c.bf16 %v1972_v30, %v1970_v29  ;;  %v1668_v29 = vpack.c.bf16 %v2065_v1, %v2057_v63  ;;  %v2339_v30 = vld [vmem:[#allocation2_spill] sm:$0xff]  ;;  %v2342_v63 = vld [vmem:[#allocation4_spill] sm:$0xff]  ;;  %v2343_v1 = vld [vmem:[#allocation3_spill] sm:$0xff] }
  0x34   : > { %1633 = vmatprep.subr.bf16.mxu1 %v1632_v51  ;;  %1729 = vmatprep.subr.bf16.mxu0 %v2096_v21 }
  0x35   : > { %v2186_v14 = vsub.f32 %v1995_v36, %v2335_v52  ;;  %1367 = vmatprep.mubr.f32.mxu1 %v276_v33  ;;  %1499 = vmatprep.mubr.f32.mxu0 %v274_v44  ;;  %v400_v36 = vand.u32 4294901760, %v399_v15  ;;  %v406_v33 = vsub.f32 %v2160_v31, %v405_v18  ;;  %v413_v44 = vsub.f32 %v2165_v5, %v412_v37 }
  0x36   : > { %1368 = vmatmul.mubr.f32.gmra.mrb[2].mxu1 %v286_v22  ;;  %1500 = vmatmul.mubr.f32.gmra.mrb[2].mxu0 %v284_v58  ;;  %v2337_v22 = vand.u32 4294901760, %v2005_v40 }
  0x37   : > { %1635 = vmatpush3.bf16.msra.mxu1 %v1632_v51  ;;  %1731 = vmatpush3.bf16.msra.mxu0 %v2096_v21  ;;  %v426_v57 = vand.u32 4294901760, %v2186_v14  ;;  %v2205_v21 = vsub.f32 %v2010_v41, %v2338_v23  ;;  %v316_v51 = vand.u32 4294901760, %v315_v17  ;;  %v1644_v27 = vpack.c.bf16 %v400_v36, %v393_v61 }
  0x38   : > { %1637 = vmatprep.subr.bf16.mxu1 %v1636_v53  ;;  %1733 = vmatprep.subr.bf16.mxu0 %v1732_v3  ;;  %v2200_v58 = vsub.f32 %v2005_v40, %v2337_v22  ;;  %v407_v15 = vand.u32 4294901760, %v406_v33  ;;  %v414_v46 = vand.u32 4294901760, %v413_v44  ;;  %v420_v40 = vsub.f32 %v2181_v47, %v419_v28 }
  0x39   : > { %1370 = vmatprep.mubr.f32.mxu1 %v296_v0  ;;  %1502 = vmatprep.mubr.f32.mxu0 %v294_v24  ;;  %v427_v52 = vsub.f32 %v2186_v14, %v426_v57  ;;  %v440_v24 = vand.u32 4294901760, %v2205_v21 }
  0x3a   : > { %1371 = vmatmul.mubr.f32.gmra.mrb[4].mxu1 %v306_v50  ;;  %1503 = vmatmul.mubr.f32.gmra.mrb[4].mxu0 %v304_v4  ;;  %v433_v41 = vand.u32 4294901760, %v2200_v58  ;;  %v1744_v4 = vpack.c.bf16 %v412_v37, %v405_v18  ;;  %v421_v42 = vand.u32 4294901760, %v420_v40 }
  0x3b   : > { %1639 = vmatpush3.bf16.msra.mxu1 %v1636_v53  ;;  %1735 = vmatpush3.bf16.msra.mxu0 %v1732_v3  ;;  %v1648_v3 = vpack.c.bf16 %v414_v46, %v407_v15  ;;  %v428_v43 = vand.u32 4294901760, %v427_v52  ;;  %v441_v0 = vsub.f32 %v2205_v21, %v440_v24 }
  0x3c   : > { %1641 = vmatprep.subr.bf16.mxu1 %v1640_v19  ;;  %1737 = vmatprep.subr.bf16.mxu0 %v1736_v25  ;;  %v434_v53 = vsub.f32 %v2200_v58, %v433_v41 }
  0x3d   : > { %1373 = vmatprep.mubr.f32.mxu1 %v316_v51  ;;  %1505 = vmatprep.mubr.f32.mxu0 %v314_v62  ;;  %v1652_v62 = vpack.c.bf16 %v428_v43, %v421_v42  ;;  %v442_v18 = vand.u32 4294901760, %v441_v0 }
  0x3e   : > { %1374 = vmatmul.mubr.f32.gmra.mrb[6].mxu1 %v326_v32  ;;  %1506 = vmatmul.mubr.f32.gmra.mrb[6].mxu0 %v324_v11  ;;  %v1748_v11 = vpack.c.bf16 %v426_v57, %v419_v28  ;;  %v435_v17 = vand.u32 4294901760, %v434_v53 }
  0x3f   : > { %1643 = vmatpush3.bf16.msra.mxu1 %v1640_v19  ;;  %1739 = vmatpush3.bf16.msra.mxu0 %v1736_v25  ;;  %v1752_v19 = vpack.c.bf16 %v440_v24, %v433_v41  ;;  %v1664_v25 = vpack.c.bf16 %v2021_v48, %v1998_v38  ;;  %v2340_v38 = vld [vmem:[#allocation10_spill] sm:$0xff]  ;;  %v2341_v48 = vld [vmem:[#allocation11_spill] sm:$0xff] }
  0x40   : > { %1645 = vmatprep.subr.bf16.mxu1 %v1644_v27  ;;  %1741 = vmatprep.subr.bf16.mxu0 %v1740_v54  ;;  %v1656_v37 = vpack.c.bf16 %v442_v18, %v435_v17 }
  0x41   : > { %1408 = vmatprep.mubr.f32.mxu1 %v1960_v26  ;;  %1540 = vmatprep.mubr.f32.mxu0 %v1960_v26 }
  0x43   : > { %1647 = vmatpush3.bf16.msra.mxu1 %v1644_v27  ;;  %1743 = vmatpush3.bf16.msra.mxu0 %v1740_v54 }
  0x44   : > { %1649 = vmatprep.subr.bf16.mxu1 %v1648_v3  ;;  %1745 = vmatprep.subr.bf16.mxu0 %v1744_v4 }
  0x47   : > { %1651 = vmatpush3.bf16.msra.mxu1 %v1648_v3  ;;  %1747 = vmatpush3.bf16.msra.mxu0 %v1744_v4 }
  0x48   : > { %1653 = vmatprep.subr.bf16.mxu1 %v1652_v62  ;;  %1749 = vmatprep.subr.bf16.mxu0 %v1748_v11 }
  0x4b   : > { %1655 = vmatpush3.bf16.msra.mxu1 %v1652_v62  ;;  %1751 = vmatpush3.bf16.msra.mxu0 %v1748_v11 }
  0x4c   : > { %1657 = vmatprep.subr.bf16.mxu1 %v1656_v37  ;;  %1753 = vmatprep.subr.bf16.mxu0 %v1752_v19 }
  0x4f   : > { %1659 = vmatpush3.bf16.msra.mxu1 %v1656_v37  ;;  %1755 = vmatpush3.bf16.msra.mxu0 %v1752_v19 }
  0x50   : > { %1661 = vmatprep.subr.bf16.mxu1 %v1660_v20  ;;  %1757 = vmatprep.subr.bf16.mxu0 %v1892_v10 }
  0x52   : > { %1409 = vmatmul.mubr.f32.vlgmr.msra.gmra.mrb[0].mxu1 %v2000_v39  ;;  %1541 = vmatmul.mubr.f32.vlgmr.msra.gmra.mrb[0].mxu0 %v2000_v39 }
  0x53   : > { %1663 = vmatpush3.bf16.msra.mxu1 %v1660_v20  ;;  %1759 = vmatpush3.bf16.msra.mxu0 %v1892_v10  ;;  %v1672_v10 = vpack.c.bf16 %v2087_v9, %v2070_v2  ;;  %v2344_v2 = vld [vmem:[#allocation5_spill] sm:$0xff]  ;;  %v1684_v9 = vpack.c.bf16 %v2186_v14, %v2181_v47 }
  0x54   : > { %1665 = vmatprep.subr.bf16.mxu1 %v1664_v25  ;;  %1761 = vmatprep.subr.bf16.mxu0 %v1896_v13 }
  0x55   : > { %1411 = vmatprep.mubr.f32.mxu1 %v2038_v56  ;;  %1543 = vmatprep.mubr.f32.mxu0 %v2038_v56 }
  0x56   : > { %1412 = vmatmul.mubr.f32.gmra.mrb[2].mxu1 %v2042_v59  ;;  %1544 = vmatmul.mubr.f32.gmra.mrb[2].mxu0 %v2042_v59 }
  0x57   : > { %1667 = vmatpush3.bf16.msra.mxu1 %v1664_v25  ;;  %1763 = vmatpush3.bf16.msra.mxu0 %v1896_v13  ;;  %v1676_v13 = vpack.c.bf16 %v2128_v7, %v2123_v60  ;;  %v2345_v60 = vld [vmem:[#allocation6_spill] sm:$0xff]  ;;  %v2347_v7 = vld [vmem:[#allocation8_spill] sm:$0xff] }
  0x58   : > { %1669 = vmatprep.subr.bf16.mxu1 %v1668_v29  ;;  %1765 = vmatprep.subr.bf16.mxu0 %v1920_v16 }
  0x59   : > { %1414 = vmatprep.mubr.f32.mxu1 %v2082_v6  ;;  %1546 = vmatprep.mubr.f32.mxu0 %v2082_v6 }
  0x5a   : > { %1415 = vmatmul.mubr.f32.gmra.mrb[4].mxu1 %v2111_v49  ;;  %1547 = vmatmul.mubr.f32.gmra.mrb[4].mxu0 %v2111_v49 }
  0x5b   : > { %1671 = vmatpush3.bf16.msra.mxu1 %v1668_v29  ;;  %1767 = vmatpush3.bf16.msra.mxu0 %v1920_v16  ;;  %v1680_v16 = vpack.c.bf16 %v2165_v5, %v2160_v31  ;;  %v1688_v5 = vpack.c.bf16 %v2205_v21, %v2200_v58  ;;  %v2348_v31 = vld [vmem:[#allocation9_spill] sm:$0xff] }
  0x5c   : > { %1673 = vmatprep.subr.bf16.mxu1 %v1672_v10  ;;  %1769 = vmatprep.subr.bf16.mxu0 %v2339_v30 }
  0x5d   : > { %1417 = vmatprep.mubr.f32.mxu1 %v2340_v38  ;;  %1549 = vmatprep.mubr.f32.mxu0 %v2340_v38 }
  0x5e   : > { %1418 = vmatmul.mubr.f32.gmra.mrb[6].mxu1 %v2341_v48  ;;  %1550 = vmatmul.mubr.f32.gmra.mrb[6].mxu0 %v2341_v48 }
  0x5f   : > { %1675 = vmatpush3.bf16.msra.mxu1 %v1672_v10  ;;  %1771 = vmatpush3.bf16.msra.mxu0 %v2339_v30 }
  0x60   : > { %1677 = vmatprep.subr.bf16.mxu1 %v1676_v13  ;;  %1773 = vmatprep.subr.bf16.mxu0 %v2342_v63 }
  0x61   : > { %1452 = vmatprep.mubr.f32.mxu1 %v2343_v1  ;;  %1584 = vmatprep.mubr.f32.mxu0 %v1960_v26  ;;  %v2346_v26 = vld [vmem:[#allocation7_spill] sm:$0xff] }
  0x63   : > { %1679 = vmatpush3.bf16.msra.mxu1 %v1676_v13  ;;  %1775 = vmatpush3.bf16.msra.mxu0 %v2342_v63 }
  0x64   : > { %1681 = vmatprep.subr.bf16.mxu1 %v1680_v16  ;;  %1777 = vmatprep.subr.bf16.mxu0 %v2344_v2 }
  0x67   : > { %1683 = vmatpush3.bf16.msra.mxu1 %v1680_v16  ;;  %1779 = vmatpush3.bf16.msra.mxu0 %v2344_v2 }
  0x68   : > { %1685 = vmatprep.subr.bf16.mxu1 %v1684_v9  ;;  %1781 = vmatprep.subr.bf16.mxu0 %v2345_v60 }
  0x6b   : > { %1687 = vmatpush3.bf16.msra.mxu1 %v1684_v9  ;;  %1783 = vmatpush3.bf16.msra.mxu0 %v2345_v60 }
  0x6c   : > { %1689 = vmatprep.subr.bf16.mxu1 %v1688_v5  ;;  %1785 = vmatprep.subr.bf16.mxu0 %v2346_v26 }
  0x6f   : > { %1691 = vmatpush3.bf16.msra.mxu1 %v1688_v5  ;;  %1787 = vmatpush3.bf16.msra.mxu0 %v2346_v26 }
  0x72   : > { %1453 = vmatmul.mubr.f32.vlgmr.msra.gmra.mrb[0].mxu1 %v2036_v55  ;;  %1585 = vmatmul.mubr.f32.vlgmr.msra.gmra.mrb[0].mxu0 %v2000_v39 }
  0x73   : > { %1455 = vmatprep.mubr.f32.mxu1 %v2347_v7  ;;  %1587 = vmatprep.mubr.f32.mxu0 %v2038_v56 }
  0x76   : > { %1456 = vmatmul.mubr.f32.gmra.mrb[2].mxu1 %v2348_v31  ;;  %1588 = vmatmul.mubr.f32.gmra.mrb[2].mxu0 %v2042_v59 }
  0x77   : > { %1458 = vmatprep.mubr.f32.mxu1 %v2109_v45  ;;  %1590 = vmatprep.mubr.f32.mxu0 %v2082_v6 }
  0x7a   : > { %1459 = vmatmul.mubr.f32.gmra.mrb[4].mxu1 %v2131_v8  ;;  %1591 = vmatmul.mubr.f32.gmra.mrb[4].mxu0 %v2111_v49 }
  0x7b   : > { %1461 = vmatprep.mubr.f32.mxu1 %v2145_v12  ;;  %1593 = vmatprep.mubr.f32.mxu0 %v2340_v38 }
  0x7e   : > { %1462 = vmatmul.mubr.f32.gmra.mrb[6].mxu1 %v2151_v34  ;;  %1594 = vmatmul.mubr.f32.gmra.mrb[6].mxu0 %v2341_v48 }
 0x145   : > { %v1454_v39 = vpop.f32.mrb[0].mxu1  ;;  %v1586_v55 = vpop.f32.mrb[0].mxu0 }
 0x146   : > { %v1788_v56 = vadd.f32 %v1586_v55, %v1454_v39  ;;  %v625_v59 = vpop.f32.mrb[1].mxu1  ;;  %v1067_v6 = vpop.f32.mrb[1].mxu0 }
 0x147   : > { %v1789_v45 = vadd.f32 %v1067_v6, %v625_v59 }
 0x148   : > { %1114 = vst [vmem:[%s2282_s24 + $0x8] sm:$0xff] %v1788_v56 }
 0x149   : > { %1113 = vst [vmem:[%s2282_s24] sm:$0xff] %v1789_v45  ;;  %v1457_v34 = vpop.f32.mrb[2].mxu1  ;;  %v1589_v49 = vpop.f32.mrb[2].mxu0 }
 0x14a   : > { %v1790_v8 = vadd.f32 %v1589_v49, %v1457_v34  ;;  %v639_v12 = vpop.f32.mrb[3].mxu1  ;;  %v1079_v47 = vpop.f32.mrb[3].mxu0 }
 0x14b   : > { %v1791_v14 = vadd.f32 %v1079_v47, %v639_v12 }
 0x14c   : > { %1116 = vst [vmem:[%s2282_s24 + $0x18] sm:$0xff] %v1790_v8 }
 0x14d   : > { %1115 = vst [vmem:[%s2282_s24 + $0x10] sm:$0xff] %v1791_v14  ;;  %v1460_v50 = vpop.f32.mrb[4].mxu1  ;;  %v1592_v35 = vpop.f32.mrb[4].mxu0 }
 0x14e   : > { %v1792_v61 = vadd.f32 %v1592_v35, %v1460_v50  ;;  %v653_v36 = vpop.f32.mrb[5].mxu1  ;;  %v1091_v33 = vpop.f32.mrb[5].mxu0 }
 0x14f   : > { %v1793_v44 = vadd.f32 %v1091_v33, %v653_v36 }
 0x150   : > { %1118 = vst [vmem:[%s2282_s24 + $0x28] sm:$0xff] %v1792_v61 }
 0x151   : > { %1117 = vst [vmem:[%s2282_s24 + $0x20] sm:$0xff] %v1793_v44  ;;  %v1463_v28 = vpop.f32.mrb[6].mxu1  ;;  %v1595_v57 = vpop.f32.mrb[6].mxu0 }
 0x152   : > { %v1794_v22 = vadd.f32 %v1595_v57, %v1463_v28  ;;  %v667_v58 = vpop.f32.mrb[7].mxu1  ;;  %v1103_v23 = vpop.f32.mrb[7].mxu0 }
 0x153   : > { %v1795_v21 = vadd.f32 %v1103_v23, %v667_v58 }
 0x154   : > { %1120 = vst [vmem:[%s2282_s24 + $0x38] sm:$0xff] %v1794_v22 }
 0x155   : > { %1119 = vst [vmem:[%s2282_s24 + $0x30] sm:$0xff] %v1795_v21 }
 0x156 PF: > { %s12_s9 = sadd.s32 1, %s1842_s9  }
 0x157   : > { %p9_p4 = scmp.ge.s32.totalorder %s12_s9, 4  }
 0x159   :  { %11 = sbr.rel (!%p9_p4) target bundleno = 1 (0x1), region = 58 }

// kernel: gat_forward.6
= control target key start
LH: loop header
LB: loop body
LE: loop exit
PB: predicated region body
PF: predicated region fallthrough
CT: control target
= control target key end

     0   :  { %s1356_s9 = smov 0   ;;  %s1527_s0 = inlined_call_operand.vmem [shape: f32[128,32], index: 0, kind: input, shape index: {}]   ;;  %s1528_s1 = inlined_call_operand.vmem [shape: f32[32,128], index: 1, kind: input, shape index: {}]   ;;  %s1529_s2 = inlined_call_operand.vmem [shape: f32[128,128], index: 2, kind: output, shape index: {}]  }
   0x1 LB: > { %s1034_s10 = sadd.s32 4294967295, %s1339_s9   ;;  %p1038_p0 = scmp.ge.s32.totalorder %s1339_s9, 1  ;;  %s1339_s9 = sphi %s1356_s9, %s12_s9  }
   0x2   : > { %p113_p1 = scmp.lt.s32.totalorder %s1339_s9, 3 }
   0x4   : > { %p114_p2 = pnand %p1038_p0, %p113_p1 }
   0x5   : > { %v155_v0 = vld [vmem:[%s1528_s1] sm:$0xff] (!%p114_p2)  ;;  %v156_v1 = vld [vmem:[%s1528_s1 + $0x8] sm:$0xff] (!%p114_p2)  ;;  %v157_v2 = vld [vmem:[%s1528_s1 + $0x10] sm:$0xff] (!%p114_p2)  ;;  %s1039_s17 = sshll.u32 (!%p114_p2), %s1034_s10, 3  ;;  %vm159_vm0 = vcmask (!%p114_p2), 261120  }
   0x6   : > { %117 = sbr.rel (%p114_p2) target bundleno = 289 (0x121), region = 28  ;;  %v185_v3 = vand.u32 (!%p114_p2), 4294901760, %v155_v0  ;;  %v188_v4 = vand.u32 (!%p114_p2), 4294901760, %v156_v1  ;;  %v158_v5 = vld [vmem:[%s1528_s1 + $0x18] sm:$0xff] (!%p114_p2)  ;;  %v191_v6 = vand.u32 (!%p114_p2), 4294901760, %v157_v2  ;;  %p136_p3 = scmp.lt.s32.totalorder (!%p114_p2), %s1039_s17, 15 }
   0x7   : > { %v194_v7 = vand.u32 (!%p114_p2), 4294901760, %v158_v5 }
   0x8   : > { %v1376_v8 = vpack.c.bf16 (!%p114_p2), %v188_v4, %v185_v3  ;;  %v1380_v9 = vsub.f32 (!%p114_p2), %v155_v0, %v185_v3  ;;  %v1382_v10 = vsub.f32 (!%p114_p2), %v156_v1, %v188_v4  ;;  %v1384_v11 = vsub.f32 (!%p114_p2), %v157_v2, %v191_v6 }
   0x9   : > { %v1386_v12 = vpack.c.bf16 (!%p114_p2), %v194_v7, %v191_v6  ;;  %v1388_v13 = vsub.f32 (!%p114_p2), %v158_v5, %v194_v7 }
   0xa   : > { %1262 = vmatprep.subr.bf16.mxu0 (!%p114_p2), %v1376_v8  ;;  %1238 = vmatprep.subr.bf16.mxu1 (!%p114_p2), %v1376_v8  ;;  %v336_v14 = vand.u32 (!%p114_p2), 4294901760, %v1380_v9  ;;  %v343_v15 = vand.u32 (!%p114_p2), 4294901760, %v1382_v10  ;;  %v350_v16 = vand.u32 (!%p114_p2), 4294901760, %v1384_v11 }
   0xb   : > { %1264 = vmatpush3.bf16.msra.mxu0 (!%p114_p2), %v1376_v8  ;;  %1240 = vmatpush3.bf16.msra.mxu1 (!%p114_p2), %v1376_v8  ;;  %v357_v23 = vand.u32 (!%p114_p2), 4294901760, %v1388_v13 }
   0xc   : > { %1266 = vmatprep.subr.bf16.mxu0 (!%p114_p2), %v1386_v12  ;;  %1242 = vmatprep.subr.bf16.mxu1 (!%p114_p2), %v1386_v12  ;;  %v337_v19 = vsub.f32 (!%p114_p2), %v1380_v9, %v336_v14  ;;  %v344_v20 = vsub.f32 (!%p114_p2), %v1382_v10, %v343_v15  ;;  %v1269_v22 = vpack.c.bf16 (!%p114_p2), %v343_v15, %v336_v14 }
   0xd   : > { %s1531_s17 = smov (!%p136_p3, %s1039_s17), 15  ;;  %v351_v30 = vsub.f32 %v1384_v11, %v350_v16  ;;  %v358_v51 = vsub.f32 %v1388_v13, %v357_v23  ;;  %v1273_v14 = vpack.c.bf16 %v357_v23, %v350_v16  ;;  %v1253_v16 = vpack.c.bf16 %v1382_v10, %v1380_v9 }
   0xe   : > { %s1040_s20 = sshll.u32 %s1531_s17, 3  ;;  %v338_v33 = vand.u32 4294901760, %v337_v19  ;;  %v345_v34 = vand.u32 4294901760, %v344_v20  ;;  %v1257_v9 = vpack.c.bf16 %v1388_v13, %v1384_v11 }
   0xf   : > { %s1403_s23 = scalar_lea.vmem %s1527_s0, %s1040_s20  ;;  %1268 = vmatpush3.bf16.msra.mxu0 %v1386_v12  ;;  %1244 = vmatpush3.bf16.msra.mxu1 %v1386_v12  ;;  %v352_v47 = vand.u32 4294901760, %v351_v30  ;;  %v359_v59 = vand.u32 4294901760, %v358_v51  ;;  %s145_s26 = scalar_lea.vmem %s1529_s2, %s1040_s20 }
  0x10   : > { %v147_v17 = vld [vmem:[%s1403_s23] sm:$0xff]  ;;  %v148_v18 = vld [vmem:[%s1403_s23 + $0x8] sm:$0xff]  ;;  %v149_v21 = vld [vmem:[%s1403_s23 + $0x10] sm:$0xff]  ;;  %v1245_v41 = vpack.c.bf16 %v345_v34, %v338_v33  ;;  %1270 = vmatprep.subr.bf16.mxu0 %v1269_v22 }
  0x11   : > { %v161_v24 = vsel %vm159_vm0, %v147_v17, 0  ;;  %v164_v25 = vsel %vm159_vm0, %v148_v18, 0  ;;  %v167_v26 = vsel %vm159_vm0, %v149_v21, 0  ;;  %v150_v27 = vld [vmem:[%s1403_s23 + $0x18] sm:$0xff]  ;;  %v151_v28 = vld [vmem:[%s1403_s23 + $0x20] sm:$0xff]  ;;  %v152_v29 = vld [vmem:[%s1403_s23 + $0x28] sm:$0xff]  ;;  %v1249_v6 = vpack.c.bf16 %v359_v59, %v352_v47 }
  0x12   : > { %v1422_v31 = vand.u32 4294901760, %v161_v24  ;;  %v1424_v32 = vand.u32 4294901760, %v164_v25  ;;  %v1428_v35 = vand.u32 4294901760, %v167_v26  ;;  %v170_v36 = vsel %vm159_vm0, %v150_v27, 0  ;;  %v153_v43 = vld [vmem:[%s1403_s23 + $0x30] sm:$0xff]  ;;  %1246 = vmatprep.subr.bf16.mxu1 %v1245_v41  ;;  %v154_v0 = vld [vmem:[%s1403_s23 + $0x38] sm:$0xff] }
  0x13   : > { %v173_v37 = vsel %vm159_vm0, %v151_v28, 0  ;;  %v176_v38 = vsel %vm159_vm0, %v152_v29, 0  ;;  %v1439_v42 = vand.u32 4294901760, %v170_v36  ;;  %v179_v55 = vsel %vm159_vm0, %v153_v43, 0 }
  0x14   : > { %v1434_v39 = vsub.f32 %v161_v24, %v1422_v31  ;;  %v1437_v40 = vsub.f32 %v164_v25, %v1424_v32  ;;  %v1443_v44 = vsub.f32 %v167_v26, %v1428_v35  ;;  %v1445_v45 = vand.u32 4294901760, %v173_v37 }
  0x15   : > { %v1447_v46 = vand.u32 4294901760, %v176_v38  ;;  %v1452_v50 = vsub.f32 %v170_v36, %v1439_v42  ;;  %v1469_v63 = vand.u32 4294901760, %v179_v55  ;;  %v182_v15 = vsel %vm159_vm0, %v154_v0, 0 }
  0x16   : > { %v255_v48 = vand.u32 4294901760, %v1434_v39  ;;  %v265_v49 = vand.u32 4294901760, %v1437_v40  ;;  %v275_v52 = vand.u32 4294901760, %v1443_v44  ;;  %v1457_v53 = vsub.f32 %v173_v37, %v1445_v45 }
  0x17   : > { %v1460_v54 = vsub.f32 %v176_v38, %v1447_v46  ;;  %v285_v58 = vand.u32 4294901760, %v1452_v50  ;;  %v1475_v7 = vsub.f32 %v179_v55, %v1469_v63  ;;  %v323_v20 = vand.u32 4294901760, %v182_v15 }
  0x18   : > { %1185 = vmatprep.mubr.f32.mxu0 %v255_v48  ;;  %v256_v56 = vsub.f32 %v1434_v39, %v255_v48  ;;  %v266_v57 = vsub.f32 %v1437_v40, %v265_v49  ;;  %v276_v60 = vsub.f32 %v1443_v44, %v275_v52  ;;  %v295_v61 = vand.u32 4294901760, %v1457_v53 }
  0x19   : > { %1186 = vmatmul.mubr.f32.vlgmr.msra.gmra.mrb[0].mxu0 %v265_v49  ;;  %v305_v62 = vand.u32 4294901760, %v1460_v54  ;;  %v286_v3 = vsub.f32 %v1452_v50, %v285_v58  ;;  %v315_v18 = vand.u32 4294901760, %v1475_v7 }
  0x1a   : > { %v257_v1 = vand.u32 4294901760, %v256_v56  ;;  %1188 = vmatprep.mubr.f32.mxu0 %v275_v52  ;;  %v267_v2 = vand.u32 4294901760, %v266_v57  ;;  %1272 = vmatpush3.bf16.msra.mxu0 %v1269_v22  ;;  %v277_v4 = vand.u32 4294901760, %v276_v60  ;;  %v296_v5 = vsub.f32 %v1457_v53, %v295_v61 }
  0x1b   : > { %v287_v17 = vand.u32 4294901760, %v286_v3  ;;  %v306_v19 = vsub.f32 %v1460_v54, %v305_v62  ;;  %v324_v22 = vsub.f32 %v182_v15, %v323_v20  ;;  %v316_v24 = vsub.f32 %v1475_v7, %v315_v18  ;;  %1274 = vmatprep.subr.bf16.mxu0 %v1273_v14 }
  0x1c   : > { %1125 = vmatprep.mubr.f32.mxu1 %v257_v1  ;;  %v297_v21 = vand.u32 4294901760, %v296_v5 }
  0x1d   : > { %1126 = vmatmul.mubr.f32.vlgmr.msra.gmra.mrb[0].mxu1 %v267_v2  ;;  %1189 = vmatmul.mubr.f32.gmra.mrb[2].mxu0 %v285_v58  ;;  %v307_v23 = vand.u32 4294901760, %v306_v19  ;;  %v325_v25 = vand.u32 4294901760, %v324_v22  ;;  %v317_v26 = vand.u32 4294901760, %v316_v24 }
  0x1e   : > { %1248 = vmatpush3.bf16.msra.mxu1 %v1245_v41  ;;  %1128 = vmatprep.mubr.f32.mxu1 %v277_v4 }
  0x1f   : > { %1191 = vmatprep.mubr.f32.mxu0 %v295_v61  ;;  %1250 = vmatprep.subr.bf16.mxu1 %v1249_v6  ;;  %v326_v27 = vsub.f32 %v324_v22, %v325_v25 }
  0x20   : > { %1276 = vmatpush3.bf16.msra.mxu0 %v1273_v14 }
  0x21   : > { %1129 = vmatmul.mubr.f32.gmra.mrb[2].mxu1 %v287_v17  ;;  %1192 = vmatmul.mubr.f32.gmra.mrb[4].mxu0 %v305_v62  ;;  %v327_v28 = vand.u32 4294901760, %v326_v27 }
  0x22   : > { %1131 = vmatprep.mubr.f32.mxu1 %v297_v21  ;;  %1194 = vmatprep.mubr.f32.mxu0 %v315_v18 }
  0x23   : > { %1252 = vmatpush3.bf16.msra.mxu1 %v1249_v6  ;;  %1278 = vmatprep.subr.bf16.mxu0 %v1376_v8 }
  0x24   : > { %1254 = vmatprep.subr.bf16.mxu1 %v1253_v16 }
  0x25   : > { %1132 = vmatmul.mubr.f32.gmra.mrb[4].mxu1 %v307_v23  ;;  %1195 = vmatmul.mubr.f32.gmra.mrb[6].mxu0 %v325_v25 }
  0x26   : > { %1134 = vmatprep.mubr.f32.mxu1 %v317_v26  ;;  %1205 = vmatprep.mubr.f32.mxu0 %v1422_v31 }
  0x29   : > { %1135 = vmatmul.mubr.f32.gmra.mrb[6].mxu1 %v327_v28  ;;  %1206 = vmatmul.mubr.f32.vlgmr.msra.gmra.mrb[0].mxu0 %v1424_v32 }
  0x2a   : > { %1145 = vmatprep.mubr.f32.mxu1 %v1422_v31  ;;  %1208 = vmatprep.mubr.f32.mxu0 %v1428_v35 }
  0x2b   : > { %1280 = vmatpush3.bf16.msra.mxu0 %v1376_v8 }
  0x2c   : > { %1282 = vmatprep.subr.bf16.mxu0 %v1386_v12 }
  0x2d   : > { %1146 = vmatmul.mubr.f32.vlgmr.msra.gmra.mrb[0].mxu1 %v1424_v32  ;;  %1209 = vmatmul.mubr.f32.gmra.mrb[2].mxu0 %v1439_v42 }
  0x2e   : > { %1256 = vmatpush3.bf16.msra.mxu1 %v1253_v16  ;;  %1148 = vmatprep.mubr.f32.mxu1 %v1428_v35 }
  0x2f   : > { %1211 = vmatprep.mubr.f32.mxu0 %v1445_v45  ;;  %1258 = vmatprep.subr.bf16.mxu1 %v1257_v9 }
  0x30   : > { %1284 = vmatpush3.bf16.msra.mxu0 %v1386_v12 }
  0x31   : > { %1149 = vmatmul.mubr.f32.gmra.mrb[2].mxu1 %v1439_v42  ;;  %1212 = vmatmul.mubr.f32.gmra.mrb[4].mxu0 %v1447_v46 }
  0x32   : > { %1151 = vmatprep.mubr.f32.mxu1 %v1445_v45  ;;  %1214 = vmatprep.mubr.f32.mxu0 %v1469_v63 }
  0x33   : > { %1260 = vmatpush3.bf16.msra.mxu1 %v1257_v9 }
  0x35   : > { %1152 = vmatmul.mubr.f32.gmra.mrb[4].mxu1 %v1447_v46  ;;  %1215 = vmatmul.mubr.f32.gmra.mrb[6].mxu0 %v323_v20 }
  0x36   : > { %1154 = vmatprep.mubr.f32.mxu1 %v1469_v63  ;;  %1225 = vmatprep.mubr.f32.mxu0 %v1422_v31 }
  0x39   : > { %1155 = vmatmul.mubr.f32.gmra.mrb[6].mxu1 %v323_v20  ;;  %1226 = vmatmul.mubr.f32.vlgmr.msra.gmra.mrb[0].mxu0 %v1424_v32 }
  0x3a   : > { %1165 = vmatprep.mubr.f32.mxu1 %v1434_v39  ;;  %1228 = vmatprep.mubr.f32.mxu0 %v1428_v35 }
  0x3d   : > { %1166 = vmatmul.mubr.f32.vlgmr.msra.gmra.mrb[0].mxu1 %v1437_v40  ;;  %1229 = vmatmul.mubr.f32.gmra.mrb[2].mxu0 %v1439_v42 }
  0x3e   : > { %1168 = vmatprep.mubr.f32.mxu1 %v1443_v44  ;;  %1231 = vmatprep.mubr.f32.mxu0 %v1445_v45 }
  0x41   : > { %1169 = vmatmul.mubr.f32.gmra.mrb[2].mxu1 %v1452_v50  ;;  %1232 = vmatmul.mubr.f32.gmra.mrb[4].mxu0 %v1447_v46 }
  0x42   : > { %1171 = vmatprep.mubr.f32.mxu1 %v1457_v53  ;;  %1234 = vmatprep.mubr.f32.mxu0 %v1469_v63 }
  0x45   : > { %1172 = vmatmul.mubr.f32.gmra.mrb[4].mxu1 %v1460_v54  ;;  %1235 = vmatmul.mubr.f32.gmra.mrb[6].mxu0 %v323_v20 }
  0x46   : > { %1174 = vmatprep.mubr.f32.mxu1 %v1475_v7 }
  0x49   : > { %1175 = vmatmul.mubr.f32.gmra.mrb[6].mxu1 %v324_v22 }
 0x10c   : > { %v1227_v8 = vpop.f32.mrb[0].mxu0 }
 0x10d   : > { %v924_v10 = vpop.f32.mrb[1].mxu0 }
 0x110   : > { %v1167_v11 = vpop.f32.mrb[0].mxu1  ;;  %v1230_v12 = vpop.f32.mrb[2].mxu0 }
 0x111   : > { %v1285_v13 = vadd.f32 %v1227_v8, %v1167_v11  ;;  %v542_v29 = vpop.f32.mrb[1].mxu1  ;;  %v936_v30 = vpop.f32.mrb[3].mxu0 }
 0x112   : > { %v1286_v31 = vadd.f32 %v924_v10, %v542_v29 }
 0x113   : > { %971 = vst [vmem:[%s145_s26 + $0x8] sm:$0xff] %v1285_v13 }
 0x114   : > { %970 = vst [vmem:[%s145_s26] sm:$0xff] %v1286_v31  ;;  %v1170_v32 = vpop.f32.mrb[2].mxu1  ;;  %v1233_v33 = vpop.f32.mrb[4].mxu0 }
 0x115   : > { %v1287_v34 = vadd.f32 %v1230_v12, %v1170_v32  ;;  %v556_v35 = vpop.f32.mrb[3].mxu1  ;;  %v948_v36 = vpop.f32.mrb[5].mxu0 }
 0x116   : > { %v1288_v37 = vadd.f32 %v936_v30, %v556_v35 }
 0x117   : > { %973 = vst [vmem:[%s145_s26 + $0x18] sm:$0xff] %v1287_v34 }
 0x118   : > { %972 = vst [vmem:[%s145_s26 + $0x10] sm:$0xff] %v1288_v37  ;;  %v1173_v38 = vpop.f32.mrb[4].mxu1  ;;  %v1236_v39 = vpop.f32.mrb[6].mxu0 }
 0x119   : > { %v1289_v40 = vadd.f32 %v1233_v33, %v1173_v38  ;;  %v570_v41 = vpop.f32.mrb[5].mxu1  ;;  %v960_v42 = vpop.f32.mrb[7].mxu0 }
 0x11a   : > { %v1290_v43 = vadd.f32 %v948_v36, %v570_v41 }
 0x11b   : > { %975 = vst [vmem:[%s145_s26 + $0x28] sm:$0xff] %v1289_v40 }
 0x11c   : > { %974 = vst [vmem:[%s145_s26 + $0x20] sm:$0xff] %v1290_v43  ;;  %v1176_v44 = vpop.f32.mrb[6].mxu1 }
 0x11d   : > { %v1291_v45 = vadd.f32 %v1236_v39, %v1176_v44  ;;  %v584_v46 = vpop.f32.mrb[7].mxu1 }
 0x11e   : > { %v1292_v47 = vadd.f32 %v960_v42, %v584_v46 }
 0x11f   : > { %977 = vst [vmem:[%s145_s26 + $0x38] sm:$0xff] %v1291_v45 }
 0x120   : > { %976 = vst [vmem:[%s145_s26 + $0x30] sm:$0xff] %v1292_v47 }
 0x121 PF: > { %s12_s9 = sadd.s32 1, %s1339_s9  }
 0x122   : > { %p9_p4 = scmp.ge.s32.totalorder %s12_s9, 4  }
 0x124   :  { %11 = sbr.rel (!%p9_p4) target bundleno = 1 (0x1), region = 58 }

// kernel: gat_forward.9
= control target key start
LH: loop header
LB: loop body
LE: loop exit
PB: predicated region body
PF: predicated region fallthrough
CT: control target
= control target key end

     0   :  { %s2258_s18 = smov 0   ;;  %s2798_s0 = inlined_call_operand.vmem [shape: bf16[128,128], index: 0, kind: input, shape index: {}]   ;;  %s2799_s1 = inlined_call_operand.vmem [shape: f32[128,1], index: 1, kind: input, shape index: {}]   ;;  %s2800_s2 = inlined_call_operand.vmem [shape: f32[1,128], index: 2, kind: input, shape index: {}]   ;;  %s2801_s3 = inlined_call_operand.vmem [shape: f32[128,32], index: 3, kind: input, shape index: {}]   ;;  %s2802_s4 = inlined_call_operand.vmem [shape: f32[1,32], index: 4, kind: input, shape index: {}]   ;;  %s2803_s5 = inlined_call_operand.vmem [shape: f32[128,128], index: 5, kind: output, shape index: {}]  }
   0x1 LB: > { %s1500_s19 = sadd.s32 4294967295, %s2224_s18   ;;  %p1504_p0 = scmp.ge.s32.totalorder %s2224_s18, 1  ;;  %s2224_s18 = sphi %s2258_s18, %s15_s18  }
   0x2   : > { %p199_p1 = scmp.lt.s32.totalorder %s2224_s18, 3 }
   0x4   : > { %p200_p2 = pnand %p1504_p0, %p199_p1 }
   0x5   : > { %s1505_s20 = sshll.u32 (!%p200_p2), %s1500_s19, 3  ;;  %v2226_v0 = vmov (!%p200_p2), 0   ;;  %v2277_v9 = vld [vmem:[%s2801_s3] sm:$0xff] (!%p200_p2)  ;;  %v2282_v10 = vld [vmem:[%s2801_s3 + $0x8] sm:$0xff] (!%p200_p2)  ;;  %v2287_v11 = vld [vmem:[%s2801_s3 + $0x10] sm:$0xff] (!%p200_p2)  ;;  %vm1414_vm8 = vcmask (!%p200_p2), 261120  }
   0x6   : > { %203 = sbr.rel (%p200_p2) target bundleno = 624 (0x270), region = 40  ;;  %2184 = vset.pattern.permute.xlu0 (!%p200_p2), %v2226_v0  ;;  %p233_p3 = scmp.lt.s32.totalorder (!%p200_p2), %s1505_s20, 15  ;;  %2185 = vset.pattern.permute.xlu1 (!%p200_p2), %v2226_v0  ;;  %v434_v12 = vand.u32 (!%p200_p2), 4294901760, %v2277_v9  ;;  %v437_v13 = vand.u32 (!%p200_p2), 4294901760, %v2282_v10  ;;  %v2294_v14 = vld [vmem:[%s2801_s3 + $0x18] sm:$0xff] (!%p200_p2)  ;;  %v440_v15 = vand.u32 (!%p200_p2), 4294901760, %v2287_v11 }
   0x7   : > { %v443_v16 = vand.u32 (!%p200_p2), 4294901760, %v2294_v14  ;;  %v1511_v19 = vld [vmem:[%s2800_s2] ss:$0 sm:$0xff] (!%p200_p2)  ;;  %vm1423_vm9 = vcmask (!%p200_p2), 1047808  }
   0x8   : > { %v2302_v17 = vpack.c.bf16 (!%p200_p2), %v437_v13, %v434_v12 }
   0x9   : > { %v2308_v18 = vpack.c.bf16 (!%p200_p2), %v443_v16, %v440_v15 }
   0xa   : > { %2039 = vmatprep.subr.bf16.mxu0 (!%p200_p2), %v2302_v17  ;;  %1943 = vmatprep.subr.bf16.mxu1 (!%p200_p2), %v2302_v17 }
   0xb   : > { %2041 = vmatpush3.bf16.msra.mxu0 (!%p200_p2), %v2302_v17  ;;  %1945 = vmatpush3.bf16.msra.mxu1 (!%p200_p2), %v2302_v17 }
   0xc   : > { %2043 = vmatprep.subr.bf16.mxu0 (!%p200_p2), %v2308_v18  ;;  %1947 = vmatprep.subr.bf16.mxu1 (!%p200_p2), %v2308_v18 }
   0xd   : > { %s2805_s20 = smov (!%p233_p3, %s1505_s20), 15 }
   0xe   : > { %s1508_s21 = sshll.u32 %s2805_s20, 3  ;;  %s1506_s8 = sshll.u32 %s2805_s20, 2 }
   0xf   : > { %s242_s24 = scalar_lea.vmem %s2799_s1, %s1508_s21  ;;  %2045 = vmatpush3.bf16.msra.mxu0 %v2308_v18  ;;  %1949 = vmatpush3.bf16.msra.mxu1 %v2308_v18  ;;  %s2322_s11 = scalar_lea.vmem %s2798_s0, %s1506_s8 }
  0x10   : > { %v282_v1 = vld [vmem:[%s242_s24] sm:$0xff]  ;;  %v284_v2 = vld [vmem:[%s242_s24 + $0x10] sm:$0xff]  ;;  %v283_v3 = vld [vmem:[%s242_s24 + $0x8] sm:$0xff]  ;;  %s2754_s23 = scalar_lea.vmem %s2803_s5, %s1508_s21 }
  0x11   : > { %293 = vperm.xlu0 %2184, %v282_v1   ;;  %303 = vperm.xlu1 %2185, %v284_v2   ;;  %v285_v4 = vld [vmem:[%s242_s24 + $0x18] sm:$0xff]  ;;  %v286_v5 = vld [vmem:[%s242_s24 + $0x20] sm:$0xff]  ;;  %v287_v6 = vld [vmem:[%s242_s24 + $0x28] sm:$0xff] }
  0x12   : > { %v288_v7 = vld [vmem:[%s242_s24 + $0x30] sm:$0xff]  ;;  %v289_v8 = vld [vmem:[%s242_s24 + $0x38] sm:$0xff]  ;;  %v1516_v20 = vld [vmem:[%s2322_s11] sm:$0xff]  }
  0x13   : > { %v1531_v25 = vld [vmem:[%s2322_s11 + $0x8] sm:$0xff]   ;;  %v1517_v26 = vunpack.c.l.bf16 %v1516_v20  ;;  %v1518_v37 = vunpack.c.h.bf16 %v1516_v20  ;;  %v1532_v38 = vld [vmem:[%s2322_s11 + $0x10] sm:$0xff]   ;;  %v1533_v51 = vld [vmem:[%s2322_s11 + $0x18] sm:$0xff]  }
  0x14   : > { %v1521_v31 = vunpack.c.l.bf16 %v1531_v25  ;;  %v1522_v44 = vunpack.c.h.bf16 %v1531_v25  ;;  %v1525_v50 = vunpack.c.l.bf16 %v1532_v38  ;;  %v1526_v57 = vunpack.c.h.bf16 %v1532_v38 }
  0x15   : > { %298 = vperm.xlu0 %2184, %v283_v3   ;;  %308 = vperm.xlu1 %2185, %v285_v4   ;;  %v1529_v63 = vunpack.c.l.bf16 %v1533_v51  ;;  %v1530_v3 = vunpack.c.h.bf16 %v1533_v51  ;;  %v2482_v51 = vsub.f32 %v2277_v9, %v434_v12 }
  0x19   : > { %313 = vperm.xlu0 %2184, %v286_v5   ;;  %318 = vperm.xlu1 %2185, %v287_v6   ;;  %v2351_v6 = vld [vmem:[%s2801_s3 + $0x20] sm:$0xff] }
  0x1d   : > { %323 = vperm.xlu0 %2184, %v288_v7   ;;  %328 = vperm.xlu1 %2185, %v289_v8   ;;  %v2356_v7 = vld [vmem:[%s2801_s3 + $0x28] sm:$0xff] }
  0x1e   : > { %v449_v20 = vand.u32 4294901760, %v2356_v7 }
  0x90   : > { %v294_v21 = vpop.permute.xlu0 %293  ;;  %v304_v22 = vpop.permute.xlu1 %303 }
  0x91   : > { %v337_v23 = vadd.f32 %v1511_v19, %v294_v21  ;;  %v339_v24 = vadd.f32 %v1511_v19, %v304_v22 }
  0x93   : > { %v353_v27 = vmul.f32 0.2, %v337_v23  ;;  %v355_v28 = vmul.f32 0.2, %v339_v24  ;;  %vm345_vm0 = vcmp.gt.f32.partialorder %v337_v23, 0.0  ;;  %vm347_vm1 = vcmp.gt.f32.partialorder %v339_v24, 0.0 }
  0x94   : > { %v299_v29 = vpop.permute.xlu0 %298  ;;  %v309_v30 = vpop.permute.xlu1 %308 }
  0x95   : > { %v338_v32 = vadd.f32 %v1511_v19, %v299_v29  ;;  %v340_v33 = vadd.f32 %v1511_v19, %v309_v30  ;;  %v361_v34 = vsel %vm345_vm0, %v337_v23, %v353_v27  ;;  %v363_v35 = vsel %vm347_vm1, %v339_v24, %v355_v28  ;;  %v2377_v23 = vld [vmem:[%s2801_s3 + $0x30] sm:$0xff]  ;;  %v2382_v24 = vld [vmem:[%s2801_s3 + $0x38] sm:$0xff]  ;;  %v2394_v28 = vld [vmem:[%s2801_s3 + $0x40] sm:$0xff] }
  0x96   : > { %v2329_v36 = vadd.f32 %v1517_v26, %v361_v34  ;;  %v2333_v43 = vadd.f32 %v1521_v31, %v363_v35  ;;  %v452_v25 = vand.u32 4294901760, %v2377_v23  ;;  %v455_v26 = vand.u32 4294901760, %v2382_v24  ;;  %v2399_v29 = vld [vmem:[%s2801_s3 + $0x48] sm:$0xff]  ;;  %v2421_v34 = vld [vmem:[%s2801_s3 + $0x58] sm:$0xff] }
  0x97   : > { %v354_v39 = vmul.f32 0.2, %v338_v32  ;;  %v356_v40 = vmul.f32 0.2, %v340_v33  ;;  %vm346_vm2 = vcmp.gt.f32.partialorder %v338_v32, 0.0  ;;  %vm348_vm3 = vcmp.gt.f32.partialorder %v340_v33, 0.0 }
  0x98   : > { %v314_v41 = vpop.permute.xlu0 %313  ;;  %377 = vmax.xlane.f32.xlu0 %v2329_v36  ;;  %v319_v42 = vpop.permute.xlu1 %318  ;;  %v2389_v27 = vpack.c.bf16 %v455_v26, %v452_v25  ;;  %v458_v30 = vand.u32 4294901760, %v2394_v28  ;;  %v461_v31 = vand.u32 4294901760, %v2399_v29 }
  0x99   : > { %v341_v45 = vadd.f32 %v1511_v19, %v314_v41  ;;  %v342_v46 = vadd.f32 %v1511_v19, %v319_v42  ;;  %v362_v47 = vsel %vm346_vm2, %v338_v32, %v354_v39  ;;  %v364_v48 = vsel %vm348_vm3, %v340_v33, %v356_v40  ;;  %v2416_v33 = vld [vmem:[%s2801_s3 + $0x50] sm:$0xff]  ;;  %v2438_v39 = vld [vmem:[%s2801_s3 + $0x60] sm:$0xff]  ;;  %v2443_v40 = vld [vmem:[%s2801_s3 + $0x68] sm:$0xff] }
  0x9a   : > { %v2335_v49 = vadd.f32 %v1518_v37, %v362_v47  ;;  %v2340_v56 = vadd.f32 %v1522_v44, %v364_v48  ;;  %v2411_v32 = vpack.c.bf16 %v461_v31, %v458_v30  ;;  %v464_v35 = vand.u32 4294901760, %v2416_v33 }
  0x9b   : > { %v357_v52 = vmul.f32 0.2, %v341_v45  ;;  %v358_v53 = vmul.f32 0.2, %v342_v46  ;;  %vm349_vm4 = vcmp.gt.f32.partialorder %v341_v45, 0.0  ;;  %vm350_vm5 = vcmp.gt.f32.partialorder %v342_v46, 0.0 }
  0x9c   : > { %v324_v54 = vpop.permute.xlu0 %323  ;;  %379 = vmax.xlane.f32.xlu1 %v2335_v49  ;;  %381 = vmax.xlane.f32.xlu0 %v2333_v43  ;;  %v329_v55 = vpop.permute.xlu1 %328  ;;  %v467_v37 = vand.u32 4294901760, %v2421_v34  ;;  %v470_v41 = vand.u32 4294901760, %v2438_v39  ;;  %v473_v42 = vand.u32 4294901760, %v2443_v40 }
  0x9d   : > { %v343_v58 = vadd.f32 %v1511_v19, %v324_v54  ;;  %v344_v59 = vadd.f32 %v1511_v19, %v329_v55  ;;  %v365_v60 = vsel %vm349_vm4, %v341_v45, %v357_v52  ;;  %v366_v61 = vsel %vm350_vm5, %v342_v46, %v358_v53  ;;  %v2460_v45 = vld [vmem:[%s2801_s3 + $0x70] sm:$0xff]  ;;  %v2465_v46 = vld [vmem:[%s2801_s3 + $0x78] sm:$0xff] }
  0x9e   : > { %v2342_v62 = vadd.f32 %v1525_v50, %v365_v60  ;;  %v2346_v2 = vadd.f32 %v1526_v57, %v366_v61  ;;  %v446_v19 = vand.u32 4294901760, %v2351_v6  ;;  %v2433_v38 = vpack.c.bf16 %v467_v37, %v464_v35 }
  0x9f   : > { %v359_v0 = vmul.f32 0.2, %v343_v58  ;;  %v360_v1 = vmul.f32 0.2, %v344_v59  ;;  %vm351_vm6 = vcmp.gt.f32.partialorder %v343_v58, 0.0  ;;  %vm352_vm7 = vcmp.gt.f32.partialorder %v344_v59, 0.0 }
  0xa0   : > { %385 = vmax.xlane.f32.xlu1 %v2342_v62  ;;  %383 = vmax.xlane.f32.xlu0 %v2340_v56  ;;  %v2370_v22 = vpack.c.bf16 %v449_v20, %v446_v19  ;;  %v2455_v44 = vpack.c.bf16 %v473_v42, %v470_v41  ;;  %v476_v47 = vand.u32 4294901760, %v2460_v45  ;;  %v479_v48 = vand.u32 4294901760, %v2465_v46 }
  0xa1   : > { %v367_v4 = vsel %vm351_vm6, %v343_v58, %v359_v0  ;;  %v368_v5 = vsel %vm352_vm7, %v344_v59, %v360_v1  ;;  %v2487_v52 = vsub.f32 %v2282_v10, %v437_v13  ;;  %v597_v53 = vand.u32 4294901760, %v2482_v51 }
  0xa2   : > { %v2358_v8 = vadd.f32 %v1529_v63, %v367_v4  ;;  %v2364_v21 = vadd.f32 %v1530_v3, %v368_v5  ;;  %2047 = vmatprep.subr.bf16.mxu0 %v2370_v22  ;;  %1951 = vmatprep.subr.bf16.mxu1 %v2370_v22  ;;  %v2477_v50 = vpack.c.bf16 %v479_v48, %v476_v47 }
  0xa3   : > { %2049 = vmatpush3.bf16.msra.mxu0 %v2370_v22  ;;  %1953 = vmatpush3.bf16.msra.mxu1 %v2370_v22  ;;  %v604_v54 = vand.u32 4294901760, %v2487_v52  ;;  %v598_v9 = vsub.f32 %v2482_v51, %v597_v53  ;;  %v624_v58 = vsub.f32 %v2351_v6, %v446_v19  ;;  %v631_v59 = vsub.f32 %v2356_v7, %v449_v20 }
  0xa4   : > { %389 = vmax.xlane.f32.xlu1 %v2358_v8  ;;  %387 = vmax.xlane.f32.xlu0 %v2346_v2  ;;  %v638_v0 = vsub.f32 %v2377_v23, %v452_v25  ;;  %v645_v1 = vsub.f32 %v2382_v24, %v455_v26  ;;  %v652_v7 = vsub.f32 %v2394_v28, %v458_v30 }
  0xa5   : > { %2051 = vmatprep.subr.bf16.mxu0 %v2389_v27  ;;  %1955 = vmatprep.subr.bf16.mxu1 %v2389_v27  ;;  %v2495_v55 = vpack.c.bf16 %v604_v54, %v597_v53  ;;  %v605_v12 = vsub.f32 %v2487_v52, %v604_v54  ;;  %v599_v10 = vand.u32 4294901760, %v598_v9  ;;  %v625_v60 = vand.u32 4294901760, %v624_v58 }
  0xa6   : > { %v632_v61 = vand.u32 4294901760, %v631_v59  ;;  %v639_v53 = vand.u32 4294901760, %v638_v0  ;;  %v646_v54 = vand.u32 4294901760, %v645_v1  ;;  %v659_v23 = vsub.f32 %v2399_v29, %v461_v31 }
  0xa7   : > { %2053 = vmatpush3.bf16.msra.mxu0 %v2389_v27  ;;  %1957 = vmatpush3.bf16.msra.mxu1 %v2389_v27  ;;  %v606_v13 = vand.u32 4294901760, %v605_v12  ;;  %v626_v63 = vsub.f32 %v624_v58, %v625_v60  ;;  %v653_v26 = vand.u32 4294901760, %v652_v7  ;;  %v673_v28 = vsub.f32 %v2421_v34, %v467_v37 }
  0xa8   : > { %391 = vmax.xlane.f32.xlu0 %v2364_v21  ;;  %2055 = vmatprep.subr.bf16.mxu0 %v2411_v32  ;;  %v2511_v3 = vpack.c.bf16 %v632_v61, %v625_v60  ;;  %v633_v4 = vsub.f32 %v631_v59, %v632_v61  ;;  %v2513_v19 = vpack.c.bf16 %v646_v54, %v639_v53 }
  0xa9   : > { %1959 = vmatprep.subr.bf16.mxu1 %v2411_v32  ;;  %v2500_v57 = vpack.c.bf16 %v606_v13, %v599_v10  ;;  %v627_v5 = vand.u32 4294901760, %v626_v63  ;;  %v640_v9 = vsub.f32 %v638_v0, %v639_v53  ;;  %v647_v12 = vsub.f32 %v645_v1, %v646_v54 }
  0xaa   : > { %v634_v6 = vand.u32 4294901760, %v633_v4  ;;  %v660_v10 = vand.u32 4294901760, %v659_v23  ;;  %v654_v60 = vsub.f32 %v652_v7, %v653_v26  ;;  %v666_v61 = vsub.f32 %v2416_v33, %v464_v35 }
  0xab   : > { %2057 = vmatpush3.bf16.msra.mxu0 %v2411_v32  ;;  %1961 = vmatpush3.bf16.msra.mxu1 %v2411_v32  ;;  %v641_v24 = vand.u32 4294901760, %v640_v9  ;;  %v648_v25 = vand.u32 4294901760, %v647_v12  ;;  %v674_v31 = vand.u32 4294901760, %v673_v28  ;;  %v680_v9 = vsub.f32 %v2438_v39, %v470_v41 }
  0xac   : > { %2059 = vmatprep.subr.bf16.mxu0 %v2433_v38  ;;  %1963 = vmatprep.subr.bf16.mxu1 %v2433_v38  ;;  %v2518_v20 = vpack.c.bf16 %v634_v6, %v627_v5  ;;  %v2531_v30 = vpack.c.bf16 %v660_v10, %v653_v26  ;;  %v661_v63 = vsub.f32 %v659_v23, %v660_v10  ;;  %v655_v4 = vand.u32 4294901760, %v654_v60 }
  0xad   : > { %v2523_v13 = vpack.c.bf16 %v648_v25, %v641_v24  ;;  %v667_v29 = vand.u32 4294901760, %v666_v61  ;;  %v675_v6 = vsub.f32 %v673_v28, %v674_v31  ;;  %v687_v34 = vsub.f32 %v2443_v40, %v473_v42 }
  0xae   : > { %v662_v5 = vand.u32 4294901760, %v661_v63  ;;  %v681_v12 = vand.u32 4294901760, %v680_v9  ;;  %v694_v10 = vsub.f32 %v2460_v45, %v476_v47  ;;  %v701_v39 = vsub.f32 %v2465_v46, %v479_v48 }
  0xaf   : > { %2061 = vmatpush3.bf16.msra.mxu0 %v2433_v38  ;;  %1965 = vmatpush3.bf16.msra.mxu1 %v2433_v38  ;;  %v2533_v53 = vpack.c.bf16 %v674_v31, %v667_v29  ;;  %v668_v54 = vsub.f32 %v666_v61, %v667_v29  ;;  %v676_v37 = vand.u32 4294901760, %v675_v6  ;;  %v688_v24 = vand.u32 4294901760, %v687_v34 }
  0xb0   : > { %2063 = vmatprep.subr.bf16.mxu0 %v2455_v44  ;;  %1967 = vmatprep.subr.bf16.mxu1 %v2455_v44  ;;  %v2538_v33 = vpack.c.bf16 %v662_v5, %v655_v4  ;;  %v682_v26 = vsub.f32 %v680_v9, %v681_v12  ;;  %v695_v40 = vand.u32 4294901760, %v694_v10  ;;  %v702_v42 = vand.u32 4294901760, %v701_v39 }
  0xb1   : > { %v669_v35 = vand.u32 4294901760, %v668_v54  ;;  %v2551_v41 = vpack.c.bf16 %v688_v24, %v681_v12  ;;  %v689_v60 = vsub.f32 %v687_v34, %v688_v24  ;;  %v2561_v46 = vpack.c.bf16 %v2487_v52, %v2482_v51 }
  0xb2   : > { %v683_v63 = vand.u32 4294901760, %v682_v26  ;;  %v2553_v29 = vpack.c.bf16 %v702_v42, %v695_v40  ;;  %v696_v31 = vsub.f32 %v694_v10, %v695_v40  ;;  %v703_v5 = vsub.f32 %v701_v39, %v702_v42 }
  0xb3   : > { %2065 = vmatpush3.bf16.msra.mxu0 %v2455_v44  ;;  %1969 = vmatpush3.bf16.msra.mxu1 %v2455_v44  ;;  %v2543_v25 = vpack.c.bf16 %v676_v37, %v669_v35  ;;  %v690_v4 = vand.u32 4294901760, %v689_v60  ;;  %v2563_v47 = vpack.c.bf16 %v631_v59, %v624_v58  ;;  %v2565_v48 = vpack.c.bf16 %v645_v1, %v638_v0 }
  0xb4   : > { %2067 = vmatprep.subr.bf16.mxu0 %v2477_v50  ;;  %1971 = vmatprep.subr.bf16.mxu1 %v2477_v50  ;;  %v697_v6 = vand.u32 4294901760, %v696_v31  ;;  %v704_v35 = vand.u32 4294901760, %v703_v5  ;;  %v2567_v37 = vpack.c.bf16 %v659_v23, %v652_v7  ;;  %v2569_v12 = vpack.c.bf16 %v673_v28, %v666_v61 }
  0xb5   : > { %v2555_v54 = vpack.c.bf16 %v690_v4, %v683_v63  ;;  %v2571_v24 = vpack.c.bf16 %v687_v34, %v680_v9  ;;  %v2573_v26 = vpack.c.bf16 %v701_v39, %v694_v10 }
  0xb6   : > { %v2557_v45 = vpack.c.bf16 %v704_v35, %v697_v6 }
  0xb7   : > { %2069 = vmatpush3.bf16.msra.mxu0 %v2477_v50  ;;  %1973 = vmatpush3.bf16.msra.mxu1 %v2477_v50 }
  0xb8   : > { %2071 = vmatprep.subr.bf16.mxu0 %v2495_v55  ;;  %1975 = vmatprep.subr.bf16.mxu1 %v2500_v57 }
 0x125   : > { %v378_v60 = vpop.xlane.xlu0 %377 }
 0x126   : > { %v393_v63 = vsub.f32 %v2329_v36, %v378_v60 }
 0x128   : > { %v401_v40 = vmul.f32 1.442695, %v393_v63 }
 0x129   : > { %v380_v42 = vpop.xlane.xlu1 %379  ;;  %v382_v4 = vpop.xlane.xlu0 %381 }
 0x12a   : > { %2186 = vpow2.f32 %v401_v40  ;;  %v394_v51 = vsub.f32 %v2335_v49, %v380_v42  ;;  %v395_v52 = vsub.f32 %v2333_v43, %v382_v4  ;;  %v2585_v43 = vsub.f32 %v2287_v11, %v440_v15 }
 0x12c   : > { %v403_v58 = vmul.f32 1.442695, %v394_v51  ;;  %v405_v59 = vmul.f32 1.442695, %v395_v52  ;;  %v611_v11 = vand.u32 4294901760, %v2585_v43 }
 0x12d   : > { %v386_v0 = vpop.xlane.xlu1 %385  ;;  %v384_v1 = vpop.xlane.xlu0 %383 }
 0x12e   : > { %2188 = vpow2.f32 %v403_v58  ;;  %v397_v7 = vsub.f32 %v2342_v62, %v386_v0  ;;  %v396_v23 = vsub.f32 %v2340_v56, %v384_v1  ;;  %v2590_v56 = vsub.f32 %v2294_v14, %v443_v16 }
 0x12f   : > { %2190 = vpow2.f32 %v405_v59  ;;  %v612_v42 = vsub.f32 %v2585_v43, %v611_v11 }
 0x130   : > { %v409_v61 = vmul.f32 1.442695, %v397_v7  ;;  %v407_v36 = vmul.f32 1.442695, %v396_v23  ;;  %v618_v15 = vand.u32 4294901760, %v2590_v56 }
 0x131   : > { %v390_v28 = vpop.xlane.xlu1 %389  ;;  %v388_v9 = vpop.xlane.xlu0 %387 }
 0x132   : > { %2192 = vpow2.f32 %v409_v61  ;;  %v399_v34 = vsub.f32 %v2358_v8, %v390_v28  ;;  %v398_v49 = vsub.f32 %v2346_v2, %v388_v9  ;;  %v619_v4 = vsub.f32 %v2590_v56, %v618_v15 }
 0x133   : > { %2194 = vpow2.f32 %v407_v36  ;;  %v2074_v1 = vpack.c.bf16 %v618_v15, %v611_v11  ;;  %v613_v9 = vand.u32 4294901760, %v612_v42 }
 0x134   : > { %v2187_v62 = vpop.eup %2186  ;;  %v413_v10 = vmul.f32 1.442695, %v399_v34  ;;  %v411_v39 = vmul.f32 1.442695, %v398_v49  ;;  %v620_v34 = vand.u32 4294901760, %v619_v4 }
 0x135   : > { %417 = vadd.xlane.f32.xlu1 %v2187_v62  ;;  %v392_v31 = vpop.xlane.xlu0 %391  ;;  %v2592_v5 = vand.u32 4294901760, %v2187_v62 }
 0x136   : > { %2196 = vpow2.f32 %v413_v10  ;;  %v400_v2 = vsub.f32 %v2364_v21, %v392_v31 }
 0x137   : > { %2198 = vpow2.f32 %v411_v39  ;;  %v2596_v8 = vsub.f32 %v2187_v62, %v2592_v5 }
 0x138   : > { %v2189_v14 = vpop.eup %2188  ;;  %v415_v16 = vmul.f32 1.442695, %v400_v2 }
 0x139   : > { %v2191_v6 = vpop.eup %2190  ;;  %419 = vadd.xlane.f32.xlu0 %v2189_v14  ;;  %v516_v35 = vand.u32 4294901760, %v2596_v8  ;;  %v2601_v60 = vand.u32 4294901760, %v2189_v14 }
 0x13a   : > { %2200 = vpow2.f32 %v415_v16  ;;  %421 = vadd.xlane.f32.xlu1 %v2191_v6  ;;  %v2603_v63 = vand.u32 4294901760, %v2191_v6 }
 0x13b   : > { %1842 = vmatprep.mubr.f32.mxu0 %v516_v35  ;;  %v517_v21 = vsub.f32 %v2596_v8, %v516_v35  ;;  %v2607_v40 = vsub.f32 %v2189_v14, %v2601_v60 }
 0x13c   : > { %v2193_v51 = vpop.eup %2192  ;;  %v2612_v52 = vsub.f32 %v2191_v6, %v2603_v63 }
 0x13d   : > { %v2195_v58 = vpop.eup %2194  ;;  %v518_v59 = vand.u32 4294901760, %v517_v21  ;;  %v526_v0 = vand.u32 4294901760, %v2607_v40  ;;  %v2615_v7 = vand.u32 4294901760, %v2193_v51 }
 0x13e   : > { %425 = vadd.xlane.f32.xlu1 %v2193_v51  ;;  %423 = vadd.xlane.f32.xlu0 %v2195_v58  ;;  %v536_v23 = vand.u32 4294901760, %v2612_v52  ;;  %v2618_v61 = vand.u32 4294901760, %v2195_v58 }
 0x13f   : > { %1710 = vmatprep.mubr.f32.mxu1 %v518_v59  ;;  %1843 = vmatmul.mubr.f32.vlgmr.msra.gmra.mrb[0].mxu0 %v526_v0  ;;  %v527_v36 = vsub.f32 %v2607_v40, %v526_v0  ;;  %v2622_v28 = vsub.f32 %v2193_v51, %v2615_v7 }
 0x140   : > { %v2197_v49 = vpop.eup %2196  ;;  %2073 = vmatpush3.bf16.msra.mxu0 %v2495_v55  ;;  %1845 = vmatprep.mubr.f32.mxu0 %v536_v23  ;;  %v2626_v62 = vsub.f32 %v2195_v58, %v2618_v61  ;;  %v537_v10 = vsub.f32 %v2612_v52, %v536_v23  ;;  %v1978_v55 = vpack.c.bf16 %v620_v34, %v613_v9 }
 0x141   : > { %v2199_v39 = vpop.eup %2198  ;;  %2075 = vmatprep.subr.bf16.mxu0 %v2074_v1  ;;  %v528_v31 = vand.u32 4294901760, %v527_v36  ;;  %v556_v2 = vand.u32 4294901760, %v2622_v28  ;;  %v2630_v11 = vand.u32 4294901760, %v2197_v49 }
 0x142   : > { %429 = vadd.xlane.f32.xlu1 %v2197_v49  ;;  %427 = vadd.xlane.f32.xlu0 %v2199_v39  ;;  %v546_v15 = vand.u32 4294901760, %v2626_v62  ;;  %v538_v14 = vand.u32 4294901760, %v537_v10  ;;  %v2633_v16 = vand.u32 4294901760, %v2199_v39 }
 0x143   : > { %1711 = vmatmul.mubr.f32.vlgmr.msra.gmra.mrb[0].mxu1 %v528_v31  ;;  %v557_v6 = vsub.f32 %v2622_v28, %v556_v2  ;;  %v2637_v35 = vsub.f32 %v2197_v49, %v2630_v11 }
 0x144   : > { %v2201_v21 = vpop.eup %2200  ;;  %1977 = vmatpush3.bf16.msra.mxu1 %v2500_v57  ;;  %1846 = vmatmul.mubr.f32.gmra.mrb[2].mxu0 %v546_v15  ;;  %v547_v42 = vsub.f32 %v2626_v62, %v546_v15  ;;  %v2642_v4 = vsub.f32 %v2199_v39, %v2633_v16  ;;  %v2227_v15 = vmov 0.0  }
 0x145   : > { %2077 = vmatpush3.bf16.msra.mxu0 %v2074_v1  ;;  %1713 = vmatprep.mubr.f32.mxu1 %v538_v14  ;;  %v576_v51 = vand.u32 4294901760, %v2637_v35  ;;  %v2645_v58 = vand.u32 4294901760, %v2201_v21  ;;  %v558_v23 = vand.u32 4294901760, %v557_v6 }
 0x146   : > { %1848 = vmatprep.mubr.f32.mxu0 %v556_v2  ;;  %431 = vadd.xlane.f32.xlu0 %v2201_v21  ;;  %v548_v59 = vand.u32 4294901760, %v547_v42  ;;  %v566_v0 = vand.u32 4294901760, %v2642_v4 }
 0x147   : > { %1979 = vmatprep.subr.bf16.mxu1 %v1978_v55  ;;  %2079 = vmatprep.subr.bf16.mxu0 %v2511_v3  ;;  %v2650_v57 = vsub.f32 %v2201_v21, %v2645_v58  ;;  %v577_v36 = vsub.f32 %v2637_v35, %v576_v51 }
 0x148   : > { %1714 = vmatmul.mubr.f32.gmra.mrb[2].mxu1 %v548_v59  ;;  %1849 = vmatmul.mubr.f32.gmra.mrb[4].mxu0 %v566_v0  ;;  %v567_v1 = vsub.f32 %v2642_v4, %v566_v0 }
 0x149   : > { %1981 = vmatpush3.bf16.msra.mxu1 %v1978_v55  ;;  %2081 = vmatpush3.bf16.msra.mxu0 %v2511_v3  ;;  %v586_v9 = vand.u32 4294901760, %v2650_v57  ;;  %v578_v49 = vand.u32 4294901760, %v577_v36  ;;  %v2010_v3 = vpack.c.bf16 %v2590_v56, %v2585_v43 }
 0x14a   : > { %1716 = vmatprep.mubr.f32.mxu1 %v558_v23  ;;  %1851 = vmatprep.mubr.f32.mxu0 %v576_v51  ;;  %v568_v34 = vand.u32 4294901760, %v567_v1 }
 0x14b   : > { %1983 = vmatprep.subr.bf16.mxu1 %v2518_v20  ;;  %2083 = vmatprep.subr.bf16.mxu0 %v2513_v19  ;;  %v587_v10 = vsub.f32 %v2650_v57, %v586_v9 }
 0x14c   : > { %1717 = vmatmul.mubr.f32.gmra.mrb[4].mxu1 %v568_v34  ;;  %1852 = vmatmul.mubr.f32.gmra.mrb[6].mxu0 %v586_v9 }
 0x14d   : > { %1985 = vmatpush3.bf16.msra.mxu1 %v2518_v20  ;;  %2085 = vmatpush3.bf16.msra.mxu0 %v2513_v19  ;;  %v588_v39 = vand.u32 4294901760, %v587_v10 }
 0x14e   : > { %1719 = vmatprep.mubr.f32.mxu1 %v578_v49  ;;  %1886 = vmatprep.mubr.f32.mxu0 %v2592_v5 }
 0x14f   : > { %1987 = vmatprep.subr.bf16.mxu1 %v2523_v13  ;;  %2087 = vmatprep.subr.bf16.mxu0 %v2531_v30 }
 0x150   : > { %1720 = vmatmul.mubr.f32.gmra.mrb[6].mxu1 %v588_v39 }
 0x151   : > { %1989 = vmatpush3.bf16.msra.mxu1 %v2523_v13  ;;  %2089 = vmatpush3.bf16.msra.mxu0 %v2531_v30 }
 0x152   : > { %1754 = vmatprep.mubr.f32.mxu1 %v2592_v5  ;;  %1991 = vmatprep.subr.bf16.mxu1 %v2538_v33 }
 0x153   : > { %2091 = vmatprep.subr.bf16.mxu0 %v2533_v53 }
 0x155   : > { %1993 = vmatpush3.bf16.msra.mxu1 %v2538_v33  ;;  %2093 = vmatpush3.bf16.msra.mxu0 %v2533_v53 }
 0x156   : > { %1995 = vmatprep.subr.bf16.mxu1 %v2543_v25  ;;  %2095 = vmatprep.subr.bf16.mxu0 %v2551_v41 }
 0x159   : > { %1997 = vmatpush3.bf16.msra.mxu1 %v2543_v25  ;;  %2097 = vmatpush3.bf16.msra.mxu0 %v2551_v41  ;;  %v2746_v41 = vld [vmem:[%s2802_s4] ss:$0 sm:$0xff] }
 0x15a   : > { %1999 = vmatprep.subr.bf16.mxu1 %v2555_v54  ;;  %2099 = vmatprep.subr.bf16.mxu0 %v2553_v29 }
 0x15d   : > { %2001 = vmatpush3.bf16.msra.mxu1 %v2555_v54  ;;  %2101 = vmatpush3.bf16.msra.mxu0 %v2553_v29 }
 0x15e   : > { %2003 = vmatprep.subr.bf16.mxu1 %v2557_v45  ;;  %2103 = vmatprep.subr.bf16.mxu0 %v2302_v17 }
 0x160   : > { %1887 = vmatmul.mubr.f32.vlgmr.msra.gmra.mrb[0].mxu0 %v2601_v60 }
 0x161   : > { %2005 = vmatpush3.bf16.msra.mxu1 %v2557_v45  ;;  %1889 = vmatprep.mubr.f32.mxu0 %v2603_v63 }
 0x162   : > { %2105 = vmatpush3.bf16.msra.mxu0 %v2302_v17  ;;  %2007 = vmatprep.subr.bf16.mxu1 %v2561_v46 }
 0x163   : > { %2107 = vmatprep.subr.bf16.mxu0 %v2308_v18 }
 0x164   : > { %1755 = vmatmul.mubr.f32.vlgmr.msra.gmra.mrb[0].mxu1 %v2601_v60  ;;  %1890 = vmatmul.mubr.f32.gmra.mrb[2].mxu0 %v2618_v61 }
 0x165   : > { %1757 = vmatprep.mubr.f32.mxu1 %v2603_v63  ;;  %2009 = vmatpush3.bf16.msra.mxu1 %v2561_v46 }
 0x166   : > { %1892 = vmatprep.mubr.f32.mxu0 %v2615_v7  ;;  %2109 = vmatpush3.bf16.msra.mxu0 %v2308_v18 }
 0x167   : > { %2011 = vmatprep.subr.bf16.mxu1 %v2010_v3  ;;  %2111 = vmatprep.subr.bf16.mxu0 %v2370_v22 }
 0x168   : > { %1758 = vmatmul.mubr.f32.gmra.mrb[2].mxu1 %v2618_v61  ;;  %1893 = vmatmul.mubr.f32.gmra.mrb[4].mxu0 %v2633_v16 }
 0x169   : > { %1760 = vmatprep.mubr.f32.mxu1 %v2615_v7  ;;  %2013 = vmatpush3.bf16.msra.mxu1 %v2010_v3 }
 0x16a   : > { %1895 = vmatprep.mubr.f32.mxu0 %v2630_v11  ;;  %2113 = vmatpush3.bf16.msra.mxu0 %v2370_v22 }
 0x16b   : > { %2015 = vmatprep.subr.bf16.mxu1 %v2563_v47  ;;  %2115 = vmatprep.subr.bf16.mxu0 %v2389_v27 }
 0x16c   : > { %1761 = vmatmul.mubr.f32.gmra.mrb[4].mxu1 %v2633_v16  ;;  %1896 = vmatmul.mubr.f32.gmra.mrb[6].mxu0 %v2645_v58 }
 0x16d   : > { %1763 = vmatprep.mubr.f32.mxu1 %v2630_v11  ;;  %2017 = vmatpush3.bf16.msra.mxu1 %v2563_v47 }
 0x16e   : > { %2117 = vmatpush3.bf16.msra.mxu0 %v2389_v27  ;;  %1930 = vmatprep.mubr.f32.mxu0 %v2592_v5 }
 0x16f   : > { %2019 = vmatprep.subr.bf16.mxu1 %v2565_v48  ;;  %2119 = vmatprep.subr.bf16.mxu0 %v2411_v32 }
 0x170   : > { %1764 = vmatmul.mubr.f32.gmra.mrb[6].mxu1 %v2645_v58 }
 0x171   : > { %2021 = vmatpush3.bf16.msra.mxu1 %v2565_v48  ;;  %1798 = vmatprep.mubr.f32.mxu1 %v2596_v8 }
 0x172   : > { %2121 = vmatpush3.bf16.msra.mxu0 %v2411_v32  ;;  %2023 = vmatprep.subr.bf16.mxu1 %v2567_v37 }
 0x173   : > { %2123 = vmatprep.subr.bf16.mxu0 %v2433_v38 }
 0x175   : > { %2025 = vmatpush3.bf16.msra.mxu1 %v2567_v37 }
 0x176   : > { %2125 = vmatpush3.bf16.msra.mxu0 %v2433_v38  ;;  %2027 = vmatprep.subr.bf16.mxu1 %v2569_v12 }
 0x177   : > { %2127 = vmatprep.subr.bf16.mxu0 %v2455_v44 }
 0x179   : > { %2029 = vmatpush3.bf16.msra.mxu1 %v2569_v12 }
 0x17a   : > { %2129 = vmatpush3.bf16.msra.mxu0 %v2455_v44  ;;  %2031 = vmatprep.subr.bf16.mxu1 %v2571_v24 }
 0x17b   : > { %2131 = vmatprep.subr.bf16.mxu0 %v2477_v50 }
 0x17d   : > { %2033 = vmatpush3.bf16.msra.mxu1 %v2571_v24 }
 0x17e   : > { %2133 = vmatpush3.bf16.msra.mxu0 %v2477_v50  ;;  %2035 = vmatprep.subr.bf16.mxu1 %v2573_v26 }
 0x181   : > { %1931 = vmatmul.mubr.f32.vlgmr.msra.gmra.mrb[0].mxu0 %v2601_v60  ;;  %2037 = vmatpush3.bf16.msra.mxu1 %v2573_v26 }
 0x182   : > { %1933 = vmatprep.mubr.f32.mxu0 %v2603_v63 }
 0x184   : > { %1799 = vmatmul.mubr.f32.vlgmr.msra.gmra.mrb[0].mxu1 %v2607_v40 }
 0x185   : > { %1934 = vmatmul.mubr.f32.gmra.mrb[2].mxu0 %v2618_v61  ;;  %1801 = vmatprep.mubr.f32.mxu1 %v2612_v52 }
 0x186   : > { %1936 = vmatprep.mubr.f32.mxu0 %v2615_v7 }
 0x188   : > { %1802 = vmatmul.mubr.f32.gmra.mrb[2].mxu1 %v2626_v62 }
 0x189   : > { %1937 = vmatmul.mubr.f32.gmra.mrb[4].mxu0 %v2633_v16  ;;  %1804 = vmatprep.mubr.f32.mxu1 %v2622_v28 }
 0x18a   : > { %1939 = vmatprep.mubr.f32.mxu0 %v2630_v11 }
 0x18c   : > { %1805 = vmatmul.mubr.f32.gmra.mrb[4].mxu1 %v2642_v4 }
 0x18d   : > { %1940 = vmatmul.mubr.f32.gmra.mrb[6].mxu0 %v2645_v58  ;;  %1807 = vmatprep.mubr.f32.mxu1 %v2637_v35 }
 0x190   : > { %1808 = vmatmul.mubr.f32.gmra.mrb[6].mxu1 %v2650_v57 }
 0x1c2   : > { %v418_v18 = vpop.xlane.xlu1 %417 }
 0x1c6   : > { %v420_v17 = vpop.xlane.xlu0 %419 }
 0x1c7   : > { %v422_v27 = vpop.xlane.xlu1 %421  ;;  %2202 = vrcp.f32 %v420_v17 }
 0x1c8   : > { %2204 = vrcp.f32 %v418_v18 }
 0x1cb   : > { %v424_v22 = vpop.xlane.xlu0 %423  ;;  %v426_v38 = vpop.xlane.xlu1 %425 }
 0x1cc   : > { %2206 = vrcp.f32 %v424_v22 }
 0x1cd   : > { %2208 = vrcp.f32 %v422_v27 }
 0x1cf   : > { %v428_v32 = vpop.xlane.xlu0 %427  ;;  %v430_v25 = vpop.xlane.xlu1 %429 }
 0x1d0   : > { %2210 = vrcp.f32 %v428_v32 }
 0x1d1   : > { %2212 = vrcp.f32 %v426_v38  ;;  %v2203_v33 = vpop.eup %2202 }
 0x1d2   : > { %v2205_v45 = vpop.eup %2204 }
 0x1d3   : > { %v432_v19 = vpop.xlane.xlu0 %431 }
 0x1d4   : > { %2214 = vrcp.f32 %v432_v19 }
 0x1d5   : > { %2216 = vrcp.f32 %v430_v25 }
 0x1d6   : > { %v2207_v43 = vpop.eup %2206 }
 0x1d7   : > { %v2209_v60 = vpop.eup %2208 }
 0x1da   : > { %v2211_v11 = vpop.eup %2210 }
 0x1db   : > { %v2213_v6 = vpop.eup %2212 }
 0x1de   : > { %v2215_v23 = vpop.eup %2214 }
 0x1df   : > { %v2217_v1 = vpop.eup %2216 }
 0x254   : > { %v1932_v44 = vpop.f32.mrb[0].mxu0 }
 0x255   : > { %v1329_v50 = vpop.f32.mrb[1].mxu0 }
 0x257   : > { %v1800_v20 = vpop.f32.mrb[0].mxu1 }
 0x258   : > { %v2134_v13 = vadd.f32 %v1932_v44, %v1800_v20  ;;  %v1935_v30 = vpop.f32.mrb[2].mxu0  ;;  %v887_v53 = vpop.f32.mrb[1].mxu1 }
 0x259   : > { %v2135_v29 = vadd.f32 %v1329_v50, %v887_v53  ;;  %v1341_v54 = vpop.f32.mrb[3].mxu0 }
 0x25a   : > { %v1384_v46 = vmul.f32 %v2203_v33, %v2134_v13 }
 0x25b   : > { %v1383_v47 = vmul.f32 %v2205_v45, %v2135_v29  ;;  %v1803_v48 = vpop.f32.mrb[2].mxu1 }
 0x25c   : > { %v1399_v37 = vadd.f32 %v2746_v41, %v1384_v46  ;;  %v2136_v12 = vadd.f32 %v1935_v30, %v1803_v48  ;;  %v1938_v24 = vpop.f32.mrb[4].mxu0  ;;  %v901_v26 = vpop.f32.mrb[3].mxu1 }
 0x25d   : > { %v1398_v56 = vadd.f32 %v2746_v41, %v1383_v47  ;;  %v2137_v5 = vadd.f32 %v1341_v54, %v901_v26  ;;  %v1353_v8 = vpop.f32.mrb[5].mxu0 }
 0x25e   : > { %v1407_v63 = vmax.f32 %v1399_v37, 0.0  ;;  %v1386_v40 = vmul.f32 %v2207_v43, %v2136_v12 }
 0x25f   : > { %v1406_v52 = vmax.f32 %v1398_v56, 0.0  ;;  %v1385_v7 = vmul.f32 %v2209_v60, %v2137_v5  ;;  %v1806_v61 = vpop.f32.mrb[4].mxu1 }
 0x260   : > { %1416 = vst.msk [vmem:[%s2754_s23 + $0x8] sm:$0xff] %vm1414_vm8, %v1407_v63  ;;  %v1401_v28 = vadd.f32 %v2746_v41, %v1386_v40  ;;  %v2138_v62 = vadd.f32 %v1938_v24, %v1806_v61  ;;  %v1941_v31 = vpop.f32.mrb[6].mxu0  ;;  %v915_v2 = vpop.f32.mrb[5].mxu1 }
 0x261   : > { %1425 = vst.msk [vmem:[%s2754_s23 + $0x8] sm:$0xff] %vm1423_vm9, %v2227_v15  ;;  %v1400_v14 = vadd.f32 %v2746_v41, %v1385_v7  ;;  %v2139_v16 = vadd.f32 %v1353_v8, %v915_v2  ;;  %v1365_v55 = vpop.f32.mrb[7].mxu0 }
 0x262   : > { %1415 = vst.msk [vmem:[%s2754_s23] sm:$0xff] %vm1414_vm8, %v1406_v52  ;;  %v1409_v35 = vmax.f32 %v1401_v28, 0.0  ;;  %v1388_v21 = vmul.f32 %v2211_v11, %v2138_v62 }
 0x263   : > { %1424 = vst.msk [vmem:[%s2754_s23] sm:$0xff] %vm1423_vm9, %v2227_v15  ;;  %v1408_v42 = vmax.f32 %v1400_v14, 0.0  ;;  %v1387_v4 = vmul.f32 %v2213_v6, %v2139_v16  ;;  %v1809_v51 = vpop.f32.mrb[6].mxu1 }
 0x264   : > { %1418 = vst.msk [vmem:[%s2754_s23 + $0x18] sm:$0xff] %vm1414_vm8, %v1409_v35  ;;  %v1403_v58 = vadd.f32 %v2746_v41, %v1388_v21  ;;  %v2140_v59 = vadd.f32 %v1941_v31, %v1809_v51  ;;  %v929_v0 = vpop.f32.mrb[7].mxu1 }
 0x265   : > { %1427 = vst.msk [vmem:[%s2754_s23 + $0x18] sm:$0xff] %vm1423_vm9, %v2227_v15  ;;  %v1402_v57 = vadd.f32 %v2746_v41, %v1387_v4  ;;  %v2141_v36 = vadd.f32 %v1365_v55, %v929_v0 }
 0x266   : > { %1417 = vst.msk [vmem:[%s2754_s23 + $0x10] sm:$0xff] %vm1414_vm8, %v1408_v42  ;;  %v1411_v9 = vmax.f32 %v1403_v58, 0.0  ;;  %v1390_v34 = vmul.f32 %v2215_v23, %v2140_v59 }
 0x267   : > { %1426 = vst.msk [vmem:[%s2754_s23 + $0x10] sm:$0xff] %vm1423_vm9, %v2227_v15  ;;  %v1410_v49 = vmax.f32 %v1402_v57, 0.0  ;;  %v1389_v10 = vmul.f32 %v2217_v1, %v2141_v36 }
 0x268   : > { %1420 = vst.msk [vmem:[%s2754_s23 + $0x28] sm:$0xff] %vm1414_vm8, %v1411_v9  ;;  %v1405_v39 = vadd.f32 %v2746_v41, %v1390_v34 }
 0x269   : > { %1429 = vst.msk [vmem:[%s2754_s23 + $0x28] sm:$0xff] %vm1423_vm9, %v2227_v15  ;;  %v1404_v3 = vadd.f32 %v2746_v41, %v1389_v10 }
 0x26a   : > { %1419 = vst.msk [vmem:[%s2754_s23 + $0x20] sm:$0xff] %vm1414_vm8, %v1410_v49  ;;  %v1413_v17 = vmax.f32 %v1405_v39, 0.0 }
 0x26b   : > { %1428 = vst.msk [vmem:[%s2754_s23 + $0x20] sm:$0xff] %vm1423_vm9, %v2227_v15  ;;  %v1412_v18 = vmax.f32 %v1404_v3, 0.0 }
 0x26c   : > { %1422 = vst.msk [vmem:[%s2754_s23 + $0x38] sm:$0xff] %vm1414_vm8, %v1413_v17 }
 0x26d   : > { %1431 = vst.msk [vmem:[%s2754_s23 + $0x38] sm:$0xff] %vm1423_vm9, %v2227_v15 }
 0x26e   : > { %1421 = vst.msk [vmem:[%s2754_s23 + $0x30] sm:$0xff] %vm1414_vm8, %v1412_v18 }
 0x26f   : > { %1430 = vst.msk [vmem:[%s2754_s23 + $0x30] sm:$0xff] %vm1423_vm9, %v2227_v15 }
 0x270 PF: > { %s15_s18 = sadd.s32 1, %s2224_s18  }
 0x271   : > { %p12_p4 = scmp.ge.s32.totalorder %s15_s18, 4  }
 0x273   :  { %14 = sbr.rel (!%p12_p4) target bundleno = 1 (0x1), region = 73 }

// kernel: gat_forward.7
= control target key start
LH: loop header
LB: loop body
LE: loop exit
PB: predicated region body
PF: predicated region fallthrough
CT: control target
= control target key end

     0   :  { %s4176_s18 = smov 0   ;;  %s5293_s0 = inlined_call_operand.vmem [shape: bf16[128,128], index: 0, kind: input, shape index: {}]   ;;  %s5294_s1 = inlined_call_operand.vmem [shape: f32[128,2], index: 1, kind: input, shape index: {}]   ;;  %s5295_s2 = inlined_call_operand.vmem [shape: f32[2,128], index: 2, kind: input, shape index: {}]   ;;  %s5296_s3 = inlined_call_operand.vmem [shape: f32[128,32], index: 3, kind: input, shape index: {}]   ;;  %s5297_s4 = inlined_call_operand.vmem [shape: f32[1,32], index: 4, kind: input, shape index: {}]   ;;  %s5298_s5 = inlined_call_operand.vmem [shape: f32[128,128], index: 5, kind: output, shape index: {}]  }
   0x1 LB: > { %s2735_s19 = sadd.s32 4294967295, %s4139_s18   ;;  %p2739_p0 = scmp.ge.s32.totalorder %s4139_s18, 1  ;;  %s4139_s18 = sphi %s4176_s18, %s15_s18  }
   0x2   : > { %p199_p1 = scmp.lt.s32.totalorder %s4139_s18, 3 }
   0x4   : > { %p200_p2 = pnand %p2739_p0, %p199_p1 }
   0x6   : > { %203 = sbr.rel (%p200_p2) target bundleno = 945 (0x3b1), region = 40 }
   0xd   : > { %s2740_s20 = sshll.u32 %s2735_s19, 3  ;;  %v4187_v0 = vld [vmem:[%s5296_s3 + $0x8] sm:$0xff]  ;;  %v4192_v1 = vld [vmem:[%s5296_s3] sm:$0xff]  ;;  %v4141_v2 = vmov 1   ;;  %v4201_v5 = vld [vmem:[%s5296_s3 + $0x10] sm:$0xff]  ;;  %v4142_v44 = vmov 0  }
   0xe   : > { %4065 = vset.pattern.permute.xlu1 %v4141_v2  ;;  %4064 = vset.pattern.permute.xlu0 %v4141_v2  ;;  %p233_p3 = scmp.lt.s32.totalorder %s2740_s20, 15  ;;  %v435_v3 = vand.u32 4294901760, %v4187_v0  ;;  %v432_v4 = vand.u32 4294901760, %v4192_v1  ;;  %v4206_v6 = vld [vmem:[%s5296_s3 + $0x18] sm:$0xff]  ;;  %v4211_v7 = vld [vmem:[%s5296_s3 + $0x20] sm:$0xff]  ;;  %v438_v8 = vand.u32 4294901760, %v4201_v5 }
   0xf   : > { %v441_v9 = vand.u32 4294901760, %v4206_v6  ;;  %v444_v10 = vand.u32 4294901760, %v4211_v7  ;;  %v4219_v11 = vld [vmem:[%s5296_s3 + $0x28] sm:$0xff]  ;;  %v4246_v20 = vld [vmem:[%s5296_s3 + $0x30] sm:$0xff]  ;;  %v4251_v21 = vld [vmem:[%s5296_s3 + $0x38] sm:$0xff]  ;;  %s4143_s22 = smov 112  }
  0x10   : > { %s5511_s20 = smov (!%p233_p3, %s2740_s20), 15  ;;  %v4224_v12 = vsub.f32 %v4187_v0, %v435_v3  ;;  %v4226_v13 = vpack.c.bf16 %v435_v3, %v432_v4  ;;  %v4229_v14 = vsub.f32 %v4192_v1, %v432_v4  ;;  %v447_v15 = vand.u32 4294901760, %v4219_v11  ;;  %v4262_v25 = vld [vmem:[%s5296_s3 + $0x40] sm:$0xff]  ;;  %v4267_v26 = vld [vmem:[%s5296_s3 + $0x48] sm:$0xff]  ;;  %v4311_v45 = vld [vmem:[%s5296_s3 + $0x58] sm:$0xff] }
  0x11   : > { %v4233_v16 = vsub.f32 %v4201_v5, %v438_v8  ;;  %v4235_v17 = vpack.c.bf16 %v441_v9, %v438_v8  ;;  %v4238_v18 = vsub.f32 %v4206_v6, %v441_v9  ;;  %v4241_v19 = vsub.f32 %v4211_v7, %v444_v10  ;;  %s2743_s12 = sshll.u32 %s5511_s20, 3  ;;  %v4317_v47 = vld [vmem:[%s5296_s3 + $0x50] sm:$0xff]  ;;  %v4348_v50 = vld [vmem:[%s5296_s3 + $0x68] sm:$0xff]  ;;  %v4354_v52 = vld [vmem:[%s5296_s3 + $0x60] sm:$0xff]  ;;  %s2741_s6 = sshll.u32 %s5511_s20, 2 }
  0x12   : > { %5385 = vst [vmem:[#allocation2_spill] sm:$0xff] %v4224_v12  ;;  %5386 = vst [vmem:[#allocation3_spill] sm:$0xff] %v4226_v13  ;;  %v4255_v22 = vsub.f32 %v4219_v11, %v447_v15  ;;  %v450_v23 = vand.u32 4294901760, %v4246_v20  ;;  %v453_v24 = vand.u32 4294901760, %v4251_v21  ;;  %3588 = vmatprep.subr.bf16.mxu0 %v4226_v13  ;;  %s242_s21 = scalar_lea.vmem %s5294_s1, %s2743_s12  ;;  %v456_v27 = vand.u32 4294901760, %v4262_v25  ;;  %s4369_s9 = scalar_lea.vmem %s5293_s0, %s2741_s6 }
  0x13   : > { %5387 = vst [vmem:[#allocation4_spill] sm:$0xff] %v4229_v14  ;;  %5388 = vst [vmem:[#allocation5_spill] sm:$0xff] %v4233_v16  ;;  %v459_v28 = vand.u32 4294901760, %v4267_v26  ;;  %3590 = vmatpush3.bf16.msra.mxu0 %v4226_v13  ;;  %v1423_v29 = vld [vmem:[%s242_s21 + $0x10] sm:$0xff]  ;;  %v1421_v30 = vld [vmem:[%s242_s21] sm:$0xff]  ;;  %v4278_v31 = vpack.c.bf16 %v447_v15, %v444_v10  ;;  %v5303_v46 = vand.u32 4294901760, %v4311_v45  ;;  %s5233_s26 = scalar_lea.vmem %s5298_s5, %s2743_s12 }
  0x14   : > { %5389 = vst [vmem:[#allocation6_spill] sm:$0xff] %v4235_v17  ;;  %5390 = vst [vmem:[#allocation7_spill] sm:$0xff] %v4238_v18  ;;  %v4281_v32 = vsub.f32 %v4246_v20, %v450_v23  ;;  %v4284_v33 = vsub.f32 %v4251_v21, %v453_v24  ;;  %3592 = vmatprep.subr.bf16.mxu0 %v4235_v17  ;;  %1442 = vperm.xlu1 %4065, %v1423_v29   ;;  %v1424_v36 = vld [vmem:[%s242_s21 + $0x18] sm:$0xff]  ;;  %v1422_v37 = vld [vmem:[%s242_s21 + $0x8] sm:$0xff]  ;;  %v5304_v48 = vand.u32 4294901760, %v4317_v47 }
  0x15   : > { %5391 = vst [vmem:[#allocation8_spill] sm:$0xff] %v4241_v19  ;;  %5392 = vst [vmem:[#allocation9_spill] sm:$0xff] %v4255_v22  ;;  %1432 = vperm.xlu0 %4064, %v1421_v30   ;;  %v4288_v34 = vsub.f32 %v4262_v25, %v456_v27  ;;  %v4291_v35 = vsub.f32 %v4267_v26, %v459_v28  ;;  %v4294_v38 = vpack.c.bf16 %v453_v24, %v450_v23  ;;  %v1426_v39 = vld [vmem:[%s242_s21 + $0x28] sm:$0xff]  ;;  %v1425_v40 = vld [vmem:[%s242_s21 + $0x20] sm:$0xff] }
  0x16   : > { %5393 = vst [vmem:[#allocation10_spill] sm:$0xff] %v4278_v31  ;;  %5394 = vst [vmem:[#allocation11_spill] sm:$0xff] %v4281_v32  ;;  %v4298_v41 = vpack.c.bf16 %v459_v28, %v456_v27  ;;  %v1428_v42 = vld [vmem:[%s242_s21 + $0x38] sm:$0xff]  ;;  %v1427_v43 = vld [vmem:[%s242_s21 + $0x30] sm:$0xff]  ;;  %v4328_v49 = vpack.c.bf16 %v5303_v46, %v5304_v48  ;;  %v5302_v51 = vand.u32 4294901760, %v4348_v50  ;;  %v5301_v53 = vand.u32 4294901760, %v4354_v52 }
  0x17   : > { %5395 = vst [vmem:[#allocation12_spill] sm:$0xff] %v4284_v33  ;;  %5396 = vst [vmem:[#allocation13_spill] sm:$0xff] %v4288_v34  ;;  %3594 = vmatpush3.bf16.msra.mxu0 %v4235_v17  ;;  %v4374_v55 = vld [vmem:[%s5295_s2 + $0x1] ss:$0 sm:$0xff]  ;;  %v4396_v15 = vld [vmem:[%s5296_s3 + $0x78] sm:$0xff] }
  0x18   : > { %5397 = vst [vmem:[#allocation14_spill] sm:$0xff] %v4291_v35  ;;  %5398 = vst [vmem:[#allocation15_spill] sm:$0xff] %v4294_v38  ;;  %3596 = vmatprep.subr.bf16.mxu0 %v4278_v31  ;;  %1447 = vperm.xlu1 %4065, %v1424_v36   ;;  %v4361_v54 = vpack.c.bf16 %v5302_v51, %v5301_v53  ;;  %v4377_v56 = vld [vmem:[%s4369_s9] sm:$0xff]   ;;  %v5300_v23 = vand.u32 4294901760, %v4396_v15 }
  0x19   : > { %1437 = vperm.xlu0 %4064, %v1422_v37   ;;  %5399 = vst [vmem:[#allocation16_spill] sm:$0xff] %v4298_v41  ;;  %5400 = vst [vmem:[#allocation17_spill] sm:$0xff] %v4328_v49  ;;  %v2754_v61 = vunpack.c.l.bf16 %v4377_v56 }
  0x1a   : > { %5401 = vst [vmem:[#allocation18_spill] sm:$0xff] %v4361_v54 }
  0x1b   : > { %3598 = vmatpush3.bf16.msra.mxu0 %v4278_v31 }
  0x1c   : > { %3600 = vmatprep.subr.bf16.mxu0 %v4294_v38  ;;  %1457 = vperm.xlu1 %4065, %v1426_v39  }
  0x1d   : > { %1452 = vperm.xlu0 %4064, %v1425_v40  }
  0x1f   : > { %3602 = vmatpush3.bf16.msra.mxu0 %v4294_v38 }
  0x20   : > { %3604 = vmatprep.subr.bf16.mxu0 %v4298_v41  ;;  %1467 = vperm.xlu1 %4065, %v1428_v42  }
  0x21   : > { %1462 = vperm.xlu0 %4064, %v1427_v43  }
  0x23   : > { %3606 = vmatpush3.bf16.msra.mxu0 %v4298_v41 }
  0x24   : > { %4067 = vset.pattern.permute.xlu1 %v4142_v44  ;;  %3608 = vmatprep.subr.bf16.mxu0 %v4328_v49 }
  0x25   : > { %4066 = vset.pattern.permute.xlu0 %v4142_v44  ;;  %298 = vperm.xlu1 %4067, %v1422_v37  }
  0x26   : > { %293 = vperm.xlu0 %4066, %v1421_v30  }
  0x27   : > { %3610 = vmatpush3.bf16.msra.mxu0 %v4328_v49 }
  0x28   : > { %3612 = vmatprep.subr.bf16.mxu0 %v4361_v54 }
  0x29   : > { %1588 = vrot.lane.b32.xlu1 %v4187_v0, %s4143_s22  ;;  %v4383_v0 = vld [vmem:[%s4369_s9 + $0x8] sm:$0xff]  }
  0x2a   : > { %1586 = vrot.lane.b32.xlu0 %v4192_v1, %s4143_s22  ;;  %v2758_v8 = vunpack.c.l.bf16 %v4383_v0  ;;  %v2759_v28 = vunpack.c.h.bf16 %v4383_v0 }
  0x2b   : > { %3614 = vmatpush3.bf16.msra.mxu0 %v4361_v54 }
  0x2d   : > { %303 = vperm.xlu1 %4067, %v1423_v29  }
  0x2e   : > { %308 = vperm.xlu0 %4066, %v1424_v36   ;;  %v4418_v36 = vld [vmem:[%s4369_s9 + $0x18] sm:$0xff]  }
  0x31   : > { %1590 = vrot.lane.b32.xlu1 %v4201_v5, %s4143_s22 }
  0x32   : > { %1592 = vrot.lane.b32.xlu0 %v4206_v6, %s4143_s22 }
  0x35   : > { %313 = vperm.xlu1 %4067, %v1425_v40  }
  0x36   : > { %318 = vperm.xlu0 %4066, %v1426_v39  }
  0x39   : > { %1594 = vrot.lane.b32.xlu1 %v4211_v7, %s4143_s22  ;;  %v2755_v7 = vunpack.c.h.bf16 %v4377_v56 }
  0x3a   : > { %1596 = vrot.lane.b32.xlu0 %v4219_v11, %s4143_s22 }
  0x3d   : > { %323 = vperm.xlu1 %4067, %v1427_v43  }
  0x3e   : > { %328 = vperm.xlu0 %4066, %v1428_v42  }
  0x41   : > { %1598 = vrot.lane.b32.xlu1 %v4246_v20, %s4143_s22 }
  0x42   : > { %1600 = vrot.lane.b32.xlu0 %v4251_v21, %s4143_s22 }
  0x43   : > { %4068 = vset.pattern.permute.xlu0 %v4141_v2 }
  0x45   : > { %1602 = vrot.lane.b32.xlu1 %v4262_v25, %s4143_s22  ;;  %v4407_v25 = vld [vmem:[%s5296_s3 + $0x70] sm:$0xff] }
  0x46   : > { %1604 = vrot.lane.b32.xlu0 %v4267_v26, %s4143_s22  ;;  %v5299_v29 = vand.u32 4294901760, %v4407_v25 }
  0x48   : > { %v4426_v40 = vpack.c.bf16 %v5300_v23, %v5299_v29 }
  0x4a   : > { %5402 = vst [vmem:[#allocation19_spill] sm:$0xff] %v4426_v40  ;;  %3616 = vmatprep.subr.bf16.mxu0 %v4426_v40 }
  0x4b   : > { %3618 = vmatpush3.bf16.msra.mxu0 %v4426_v40 }
  0x93   : > { %v1443_v57 = vpop.permute.xlu1 %1442 }
  0x94   : > { %v1433_v58 = vpop.permute.xlu0 %1432  ;;  %v1476_v59 = vadd.f32 %v4374_v55, %v1443_v57  ;;  %v4437_v57 = vld [vmem:[%s5295_s2] ss:$0 sm:$0xff] }
  0x95   : > { %v1474_v60 = vadd.f32 %v4374_v55, %v1433_v58  ;;  %v5305_v58 = vunpack.c.l.bf16 %v4418_v36 }
  0x96   : > { %v1492_v62 = vmul.f32 0.2, %v1476_v59  ;;  %vm1484_vm1 = vcmp.gt.f32.partialorder %v1476_v59, 0.0 }
  0x97   : > { %v1490_v63 = vmul.f32 0.2, %v1474_v60  ;;  %vm1482_vm0 = vcmp.gt.f32.partialorder %v1474_v60, 0.0  ;;  %v1448_v1 = vpop.permute.xlu1 %1447 }
  0x98   : > { %v1438_v2 = vpop.permute.xlu0 %1437  ;;  %v1477_v3 = vadd.f32 %v4374_v55, %v1448_v1  ;;  %v1500_v11 = vsel %vm1484_vm1, %v1476_v59, %v1492_v62  ;;  %v5306_v59 = vunpack.c.h.bf16 %v4418_v36  ;;  %vm2649_vm1 = vcmask 261248  }
  0x99   : > { %v1475_v4 = vadd.f32 %v4374_v55, %v1438_v2  ;;  %v1498_v5 = vsel %vm1482_vm0, %v1474_v60, %v1490_v63  ;;  %v4413_v27 = vadd.f32 %v2758_v8, %v1500_v11  ;;  %vm1412_vm0 = vcmask 130048  }
  0x9a   : > { %v4389_v6 = vadd.f32 %v2754_v61, %v1498_v5  ;;  %v1493_v9 = vmul.f32 0.2, %v1477_v3  ;;  %vm1485_vm3 = vcmp.gt.f32.partialorder %v1477_v3, 0.0 }
  0x9b   : > { %v1491_v10 = vmul.f32 0.2, %v1475_v4  ;;  %vm1483_vm2 = vcmp.gt.f32.partialorder %v1475_v4, 0.0  ;;  %v4398_v20 = vpop.permute.xlu1 %1457 }
  0x9c   : > { %v4400_v21 = vpop.permute.xlu0 %1452  ;;  %1514 = vmax.xlane.f32.xlu1 %v4389_v6  ;;  %v1501_v30 = vsel %vm1485_vm3, %v1477_v3, %v1493_v9 }
  0x9d   : > { %v1499_v24 = vsel %vm1483_vm2, %v1475_v4, %v1491_v10  ;;  %v4432_v44 = vadd.f32 %v2759_v28, %v1501_v30  ;;  %vm2658_vm2 = vcmask 1047808  }
  0x9e   : > { %v4409_v26 = vadd.f32 %v2755_v7, %v1499_v24 }
  0x9f   : > { %v1468_v37 = vpop.permute.xlu1 %1467 }
  0xa0   : > { %v1463_v39 = vpop.permute.xlu0 %1462  ;;  %1516 = vmax.xlane.f32.xlu0 %v4409_v26  ;;  %1518 = vmax.xlane.f32.xlu1 %v4413_v27  ;;  %v1481_v42 = vadd.f32 %v4374_v55, %v1468_v37 }
  0xa1   : > { %v1480_v43 = vadd.f32 %v4374_v55, %v1463_v39 }
  0xa2   : > { %v1497_v60 = vmul.f32 0.2, %v1481_v42  ;;  %vm1489_vm5 = vcmp.gt.f32.partialorder %v1481_v42, 0.0 }
  0xa3   : > { %v1496_v62 = vmul.f32 0.2, %v1480_v43  ;;  %vm1488_vm4 = vcmp.gt.f32.partialorder %v1480_v43, 0.0 }
  0xa4   : > { %1520 = vmax.xlane.f32.xlu0 %v4432_v44  ;;  %v299_v63 = vpop.permute.xlu1 %298  ;;  %v1505_v3 = vsel %vm1489_vm5, %v1481_v42, %v1497_v60 }
  0xa5   : > { %v294_v1 = vpop.permute.xlu0 %293  ;;  %v1504_v2 = vsel %vm1488_vm4, %v1480_v43, %v1496_v62  ;;  %v336_v4 = vadd.f32 %v4437_v57, %v299_v63  ;;  %v4452_v10 = vadd.f32 %v5306_v59, %v1505_v3 }
  0xa6   : > { %v335_v5 = vadd.f32 %v4437_v57, %v294_v1  ;;  %v4448_v9 = vadd.f32 %v5305_v58, %v1504_v2 }
  0xa7   : > { %v352_v11 = vmul.f32 0.2, %v336_v4  ;;  %vm344_vm7 = vcmp.gt.f32.partialorder %v336_v4, 0.0 }
  0xa8   : > { %v351_v24 = vmul.f32 0.2, %v335_v5  ;;  %vm343_vm6 = vcmp.gt.f32.partialorder %v335_v5, 0.0  ;;  %v1589_v30 = vpop.permute.xlu1 %1588 }
  0xa9   : > { %v1587_v37 = vpop.permute.xlu0 %1586  ;;  %v1638_v39 = vand.u32 4294901760, %v1589_v30  ;;  %v360_v60 = vsel %vm344_vm7, %v336_v4, %v352_v11 }
  0xaa   : > { %v1635_v42 = vand.u32 4294901760, %v1587_v37  ;;  %v359_v43 = vsel %vm343_vm6, %v335_v5, %v351_v24  ;;  %v4458_v63 = vadd.f32 %v2755_v7, %v360_v60 }
  0xab   : > { %v4456_v62 = vadd.f32 %v2754_v61, %v359_v43  ;;  %v1804_v1 = vsub.f32 %v1589_v30, %v1638_v39 }
  0xac   : > { %v4460_v2 = vpack.c.bf16 %v1638_v39, %v1635_v42  ;;  %v1797_v3 = vsub.f32 %v1587_v37, %v1635_v42  ;;  %v304_v29 = vpop.permute.xlu1 %303 }
  0xad   : > { %v309_v23 = vpop.permute.xlu0 %308  ;;  %v1805_v53 = vand.u32 4294901760, %v1804_v1  ;;  %v337_v51 = vadd.f32 %v4437_v57, %v304_v29 }
  0xae   : > { %v1798_v46 = vand.u32 4294901760, %v1797_v3  ;;  %v338_v48 = vadd.f32 %v4437_v57, %v309_v23  ;;  %3780 = vmatprep.subr.bf16.mxu1 %v4460_v2  ;;  %v4466_v56 = vpack.c.bf16 %v1804_v1, %v1797_v3 }
  0xaf   : > { %3782 = vmatpush3.bf16.msra.mxu1 %v4460_v2  ;;  %v1806_v61 = vsub.f32 %v1804_v1, %v1805_v53  ;;  %v353_v7 = vmul.f32 0.2, %v337_v51  ;;  %vm345_vm9 = vcmp.gt.f32.partialorder %v337_v51, 0.0 }
  0xb0   : > { %v1799_v4 = vsub.f32 %v1797_v3, %v1798_v46  ;;  %v354_v5 = vmul.f32 0.2, %v338_v48  ;;  %v1591_v11 = vpop.permute.xlu1 %1590  ;;  %vm346_vm8 = vcmp.gt.f32.partialorder %v338_v48, 0.0  ;;  %v4470_v29 = vpack.c.bf16 %v1805_v53, %v1798_v46  ;;  %v4483_v46 = vld [vmem:[%s4369_s9 + $0x10] sm:$0xff]  }
  0xb1   : > { %1608 = vrot.lane.b32.xlu1 %v4311_v45, %s4143_s22  ;;  %v1593_v24 = vpop.permute.xlu0 %1592  ;;  %v1641_v23 = vand.u32 4294901760, %v1591_v11  ;;  %v361_v39 = vsel %vm345_vm9, %v337_v51, %v353_v7  ;;  %v1807_v1 = vand.u32 4294901760, %v1806_v61 }
  0xb2   : > { %5403 = vst [vmem:[#allocation20_spill] sm:$0xff] %v4470_v29  ;;  %v1644_v30 = vand.u32 4294901760, %v1593_v24  ;;  %v362_v37 = vsel %vm346_vm8, %v338_v48, %v354_v5  ;;  %v4478_v43 = vadd.f32 %v2758_v8, %v361_v39  ;;  %v1800_v60 = vand.u32 4294901760, %v1799_v4 }
  0xb3   : > { %v4474_v42 = vadd.f32 %v2759_v28, %v362_v37  ;;  %v1811_v3 = vsub.f32 %v1591_v11, %v1641_v23  ;;  %v5322_v8 = vunpack.c.l.bf16 %v4483_v46 }
  0xb4   : > { %v4480_v58 = vpack.c.bf16 %v1644_v30, %v1641_v23  ;;  %v1818_v59 = vsub.f32 %v1593_v24, %v1644_v30  ;;  %v314_v53 = vpop.permute.xlu1 %313  ;;  %v4485_v48 = vpack.c.bf16 %v1807_v1, %v1800_v60  ;;  %v5321_v30 = vunpack.c.h.bf16 %v4483_v46 }
  0xb5   : > { %v319_v40 = vpop.permute.xlu0 %318  ;;  %v1812_v51 = vand.u32 4294901760, %v1811_v3  ;;  %v339_v28 = vadd.f32 %v4437_v57, %v314_v53 }
  0xb6   : > { %v1819_v7 = vand.u32 4294901760, %v1818_v59  ;;  %v340_v0 = vadd.f32 %v4437_v57, %v319_v40  ;;  %3784 = vmatprep.subr.bf16.mxu1 %v4480_v58  ;;  %v4492_v61 = vpack.c.bf16 %v1818_v59, %v1811_v3 }
  0xb7   : > { %3786 = vmatpush3.bf16.msra.mxu1 %v4480_v58  ;;  %v1813_v4 = vsub.f32 %v1811_v3, %v1812_v51  ;;  %v355_v5 = vmul.f32 0.2, %v339_v28  ;;  %vm347_vm11 = vcmp.gt.f32.partialorder %v339_v28, 0.0 }
  0xb8   : > { %v1820_v11 = vsub.f32 %v1818_v59, %v1819_v7  ;;  %v356_v24 = vmul.f32 0.2, %v340_v0  ;;  %v1595_v23 = vpop.permute.xlu1 %1594  ;;  %vm348_vm10 = vcmp.gt.f32.partialorder %v340_v0, 0.0  ;;  %v4495_v39 = vpack.c.bf16 %v1819_v7, %v1812_v51 }
  0xb9   : > { %v1597_v37 = vpop.permute.xlu0 %1596  ;;  %v1647_v40 = vand.u32 4294901760, %v1595_v23  ;;  %v363_v53 = vsel %vm347_vm11, %v339_v28, %v355_v5  ;;  %v1814_v54 = vand.u32 4294901760, %v1813_v4 }
  0xba   : > { %5404 = vst [vmem:[#allocation21_spill] sm:$0xff] %v4495_v39  ;;  %1606 = vrot.lane.b32.xlu0 %v4317_v47, %s4143_s22  ;;  %v1650_v60 = vand.u32 4294901760, %v1597_v37  ;;  %v364_v1 = vsel %vm348_vm10, %v340_v0, %v356_v24  ;;  %v4505_v59 = vadd.f32 %v5322_v8, %v363_v53  ;;  %v1821_v49 = vand.u32 4294901760, %v1820_v11 }
  0xbb   : > { %v4501_v3 = vadd.f32 %v5321_v30, %v364_v1  ;;  %v1825_v41 = vsub.f32 %v1595_v23, %v1647_v40  ;;  %v5408_v8 = vunpack.c.l.bf16 %v4418_v36 }
  0xbc   : > { %v4507_v51 = vpack.c.bf16 %v1650_v60, %v1647_v40  ;;  %v1832_v7 = vsub.f32 %v1597_v37, %v1650_v60  ;;  %v324_v38 = vpop.permute.xlu1 %323  ;;  %v4509_v17 = vpack.c.bf16 %v1821_v49, %v1814_v54 }
  0xbd   : > { %v329_v31 = vpop.permute.xlu0 %328  ;;  %v1826_v0 = vand.u32 4294901760, %v1825_v41  ;;  %v341_v28 = vadd.f32 %v4437_v57, %v324_v38 }
  0xbe   : > { %5405 = vst [vmem:[#allocation22_spill] sm:$0xff] %v4507_v51  ;;  %v1833_v5 = vand.u32 4294901760, %v1832_v7  ;;  %v342_v24 = vadd.f32 %v4437_v57, %v329_v31  ;;  %3788 = vmatprep.subr.bf16.mxu1 %v4507_v51  ;;  %v4515_v4 = vpack.c.bf16 %v1832_v7, %v1825_v41  ;;  %v5407_v57 = vunpack.c.h.bf16 %v4418_v36 }
  0xbf   : > { %3790 = vmatpush3.bf16.msra.mxu1 %v4507_v51  ;;  %v1827_v11 = vsub.f32 %v1825_v41, %v1826_v0  ;;  %v357_v23 = vmul.f32 0.2, %v341_v28  ;;  %vm349_vm13 = vcmp.gt.f32.partialorder %v341_v28, 0.0  ;;  %v1478_v36 = vadd.f32 %v4374_v55, %v4400_v21 }
  0xc0   : > { %v1834_v40 = vsub.f32 %v1832_v7, %v1833_v5  ;;  %v358_v37 = vmul.f32 0.2, %v342_v24  ;;  %v1599_v60 = vpop.permute.xlu1 %1598  ;;  %vm350_vm12 = vcmp.gt.f32.partialorder %v342_v24, 0.0  ;;  %v4517_v49 = vpack.c.bf16 %v1833_v5, %v1826_v0 }
  0xc1   : > { %v1601_v1 = vpop.permute.xlu0 %1600  ;;  %v1653_v38 = vand.u32 4294901760, %v1599_v60  ;;  %v365_v31 = vsel %vm349_vm13, %v341_v28, %v357_v23  ;;  %v1828_v7 = vand.u32 4294901760, %v1827_v11  ;;  %vm1486_vm14 = vcmp.gt.f32.partialorder %v1478_v36, 0.0 }
  0xc2   : > { %5406 = vst [vmem:[#allocation23_spill] sm:$0xff] %v4517_v49  ;;  %v1656_v54 = vand.u32 4294901760, %v1601_v1  ;;  %v366_v53 = vsel %vm350_vm12, %v342_v24, %v358_v37  ;;  %v4525_v41 = vadd.f32 %v5408_v8, %v365_v31  ;;  %v1835_v13 = vand.u32 4294901760, %v1834_v40 }
  0xc3   : > { %v4521_v30 = vadd.f32 %v5407_v57, %v366_v53  ;;  %v1839_v39 = vsub.f32 %v1599_v60, %v1653_v38 }
  0xc4   : > { %v4527_v29 = vpack.c.bf16 %v1656_v54, %v1653_v38  ;;  %v1846_v51 = vsub.f32 %v1601_v1, %v1656_v54  ;;  %v1603_v0 = vpop.permute.xlu1 %1602  ;;  %v4529_v49 = vpack.c.bf16 %v1835_v13, %v1828_v7 }
  0xc5   : > { %v1605_v5 = vpop.permute.xlu0 %1604  ;;  %v1840_v24 = vand.u32 4294901760, %v1839_v39  ;;  %v1659_v23 = vand.u32 4294901760, %v1603_v0 }
  0xc6   : > { %5409 = vst [vmem:[#allocation24_spill] sm:$0xff] %v4527_v29  ;;  %v1847_v28 = vand.u32 4294901760, %v1846_v51  ;;  %v1662_v37 = vand.u32 4294901760, %v1605_v5  ;;  %3792 = vmatprep.subr.bf16.mxu1 %v4527_v29  ;;  %v4535_v8 = vpack.c.bf16 %v1846_v51, %v1839_v39 }
  0xc7   : > { %3794 = vmatpush3.bf16.msra.mxu1 %v4527_v29  ;;  %v1841_v11 = vsub.f32 %v1839_v39, %v1840_v24  ;;  %v1853_v60 = vsub.f32 %v1603_v0, %v1659_v23  ;;  %v1479_v39 = vadd.f32 %v4374_v55, %v4398_v20  ;;  %v5414_v20 = vunpack.c.h.bf16 %v4483_v46 }
  0xc8   : > { %v1848_v40 = vsub.f32 %v1846_v51, %v1847_v28  ;;  %v4537_v1 = vpack.c.bf16 %v1662_v37, %v1659_v23  ;;  %v1860_v13 = vsub.f32 %v1605_v5, %v1662_v37  ;;  %v4539_v38 = vpack.c.bf16 %v1847_v28, %v1840_v24 }
  0xc9   : > { %v1854_v54 = vand.u32 4294901760, %v1853_v60  ;;  %v1842_v53 = vand.u32 4294901760, %v1841_v11  ;;  %v1494_v51 = vmul.f32 0.2, %v1478_v36  ;;  %v1495_v37 = vmul.f32 0.2, %v1479_v39 }
  0xca   : > { %5410 = vst [vmem:[#allocation25_spill] sm:$0xff] %v4537_v1  ;;  %5411 = vst [vmem:[#allocation26_spill] sm:$0xff] %v4539_v38  ;;  %3796 = vmatprep.subr.bf16.mxu1 %v4537_v1  ;;  %v1849_v31 = vand.u32 4294901760, %v1848_v40  ;;  %v1861_v57 = vand.u32 4294901760, %v1860_v13  ;;  %v4543_v21 = vpack.c.bf16 %v1860_v13, %v1853_v60  ;;  %vm1487_vm15 = vcmp.gt.f32.partialorder %v1479_v39, 0.0 }
  0xcb   : > { %3798 = vmatpush3.bf16.msra.mxu1 %v4537_v1  ;;  %v1855_v7 = vsub.f32 %v1853_v60, %v1854_v54  ;;  %v1502_v11 = vsel %vm1486_vm14, %v1478_v36, %v1494_v51  ;;  %v5413_v38 = vunpack.c.l.bf16 %v4483_v46  ;;  %v1503_v55 = vsel %vm1487_vm15, %v1479_v39, %v1495_v37 }
  0xcc   : > { %v4547_v0 = vpack.c.bf16 %v1849_v31, %v1842_v53  ;;  %v1862_v5 = vsub.f32 %v1860_v13, %v1861_v57  ;;  %v4549_v24 = vpack.c.bf16 %v1861_v57, %v1854_v54  ;;  %v4560_v60 = vadd.f32 %v5414_v20, %v1503_v55 }
  0xcd   : > { %v1856_v28 = vand.u32 4294901760, %v1855_v7  ;;  %v4555_v1 = vadd.f32 %v5413_v38, %v1502_v11 }
  0xce   : > { %5412 = vst [vmem:[#allocation27_spill] sm:$0xff] %v4549_v24  ;;  %v1863_v23 = vand.u32 4294901760, %v1862_v5 }
  0xd0   : > { %v4551_v40 = vpack.c.bf16 %v1863_v23, %v1856_v28 }
  0xd5   : > { %1522 = vmax.xlane.f32.xlu1 %v4555_v1 }
  0xd9   : > { %1524 = vmax.xlane.f32.xlu0 %v4560_v60 }
  0xe6   : > { %1612 = vrot.lane.b32.xlu1 %v4348_v50, %s4143_s22 }
  0xef   : > { %1610 = vrot.lane.b32.xlu0 %v4354_v52, %s4143_s22 }
 0x10a   : > { %1526 = vmax.xlane.f32.xlu1 %v4448_v9 }
 0x10e   : > { %1528 = vmax.xlane.f32.xlu0 %v4452_v10 }
 0x11b   : > { %1616 = vrot.lane.b32.xlu1 %v4396_v15, %s4143_s22 }
 0x124   : > { %1614 = vrot.lane.b32.xlu0 %v4407_v25, %s4143_s22 }
 0x129   : > { %v1515_v46 = vpop.xlane.xlu1 %1514 }
 0x12a   : > { %v1530_v36 = vsub.f32 %v4389_v6, %v1515_v46 }
 0x12c   : > { %v1538_v13 = vmul.f32 1.442695, %v1530_v36 }
 0x12d   : > { %v1517_v38 = vpop.xlane.xlu0 %1516  ;;  %v1519_v54 = vpop.xlane.xlu1 %1518 }
 0x12e   : > { %4069 = vpow2.f32 %v1538_v13 }
 0x131   : > { %v1521_v53 = vpop.xlane.xlu0 %1520  ;;  %v1609_v31 = vpop.permute.xlu1 %1608 }
 0x132   : > { %v1668_v57 = vand.u32 4294901760, %v1609_v31  ;;  %v1533_v29 = vsub.f32 %v4432_v44, %v1521_v53 }
 0x134   : > { %v1874_v39 = vsub.f32 %v1609_v31, %v1668_v57  ;;  %v1531_v31 = vsub.f32 %v4409_v26, %v1517_v38  ;;  %v1532_v26 = vsub.f32 %v4413_v27, %v1519_v54  ;;  %v1544_v38 = vmul.f32 1.442695, %v1533_v29 }
 0x135   : > { %v1607_v51 = vpop.permute.xlu0 %1606 }
 0x136   : > { %v1875_v7 = vand.u32 4294901760, %v1874_v39  ;;  %v1665_v5 = vand.u32 4294901760, %v1607_v51 }
 0x138   : > { %v4070_v28 = vpop.eup %4069  ;;  %v4574_v23 = vpack.c.bf16 %v1668_v57, %v1665_v5  ;;  %v1867_v37 = vsub.f32 %v1607_v51, %v1665_v5  ;;  %v1876_v55 = vsub.f32 %v1874_v39, %v1875_v7 }
 0x139   : > { %v4576_v11 = vand.u32 4294901760, %v4070_v28 }
 0x13a   : > { %5415 = vst [vmem:[#allocation28_spill] sm:$0xff] %v4574_v23  ;;  %v1868_v20 = vand.u32 4294901760, %v1867_v37  ;;  %3800 = vmatprep.subr.bf16.mxu1 %v4574_v23  ;;  %v4579_v6 = vpack.c.bf16 %v1874_v39, %v1867_v37  ;;  %v1877_v5 = vand.u32 4294901760, %v1876_v55  ;;  %v5339_v55 = vand.u32 4294901760, %v4224_v12 }
 0x13b   : > { %3802 = vmatpush3.bf16.msra.mxu1 %v4574_v23  ;;  %v4583_v46 = vsub.f32 %v4070_v28, %v4576_v11  ;;  %v1540_v23 = vmul.f32 1.442695, %v1531_v31 }
 0x13c   : > { %v1869_v36 = vsub.f32 %v1867_v37, %v1868_v20  ;;  %v4585_v13 = vpack.c.bf16 %v1875_v7, %v1868_v20  ;;  %v1542_v7 = vmul.f32 1.442695, %v1532_v26  ;;  %v5340_v26 = vand.u32 4294901760, %v4233_v16 }
 0x13d   : > { %v5341_v57 = vand.u32 4294901760, %v4583_v46  ;;  %4071 = vpow2.f32 %v1540_v23  ;;  %v5338_v23 = vand.u32 4294901760, %v4229_v14 }
 0x13e   : > { %5416 = vst [vmem:[#allocation29_spill] sm:$0xff] %v4585_v13  ;;  %v1870_v51 = vand.u32 4294901760, %v1869_v36  ;;  %4073 = vpow2.f32 %v1544_v38  ;;  %v5342_v38 = vand.u32 4294901760, %v4238_v18 }
 0x13f   : > { %375 = vmax.xlane.f32.xlu1 %v4456_v62  ;;  %v1718_v39 = vsub.f32 %v4583_v46, %v5341_v57  ;;  %4075 = vpow2.f32 %v1542_v7  ;;  %v596_v36 = vsub.f32 %v4229_v14, %v5338_v23 }
 0x140   : > { %v4593_v24 = vpack.c.bf16 %v1877_v5, %v1870_v51 }
 0x141   : > { %v1719_v37 = vand.u32 4294901760, %v1718_v39 }
 0x143   : > { %377 = vmax.xlane.f32.xlu0 %v4458_v63  ;;  %3355 = vmatprep.mubr.f32.mxu1 %v1719_v37 }
 0x144   : > { %381 = vmax.xlane.f32.xlu1 %v4474_v42 }
 0x147   : > { %379 = vmax.xlane.f32.xlu0 %v4478_v43  ;;  %v4603_v44 = vpop.eup %4071 }
 0x148   : > { %385 = vmax.xlane.f32.xlu1 %v4501_v3  ;;  %v4607_v27 = vpop.eup %4073 }
 0x149   : > { %v4610_v29 = vpop.eup %4075 }
 0x14b   : > { %383 = vmax.xlane.f32.xlu0 %v4505_v59 }
 0x14c   : > { %389 = vmax.xlane.f32.xlu1 %v4521_v30 }
 0x14f   : > { %387 = vmax.xlane.f32.xlu0 %v4525_v41 }
 0x150   : > { %1556 = vadd.xlane.f32.xlu1 %v4603_v44 }
 0x153   : > { %1554 = vadd.xlane.f32.xlu0 %v4070_v28  ;;  %v603_v28 = vsub.f32 %v4224_v12, %v5339_v55  ;;  %v610_v55 = vsub.f32 %v4233_v16, %v5340_v26 }
 0x154   : > { %1560 = vadd.xlane.f32.xlu1 %v4607_v27 }
 0x155   : > { %v604_v37 = vand.u32 4294901760, %v603_v28  ;;  %v5344_v28 = vand.u32 4294901760, %v4241_v19 }
 0x157   : > { %1558 = vadd.xlane.f32.xlu0 %v4610_v29  ;;  %v624_v26 = vsub.f32 %v4241_v19, %v5344_v28 }
 0x162   : > { %v1523_v54 = vpop.xlane.xlu1 %1522 }
 0x163   : > { %v1534_v53 = vsub.f32 %v4555_v1, %v1523_v54  ;;  %v597_v1 = vand.u32 4294901760, %v596_v36 }
 0x165   : > { %v1546_v20 = vmul.f32 1.442695, %v1534_v53  ;;  %v4625_v23 = vpack.c.bf16 %v604_v37, %v597_v1 }
 0x166   : > { %v1525_v31 = vpop.xlane.xlu0 %1524  ;;  %v1613_v51 = vpop.permute.xlu1 %1612 }
 0x167   : > { %4077 = vpow2.f32 %v1546_v20  ;;  %v1535_v5 = vsub.f32 %v4560_v60, %v1525_v31  ;;  %v1674_v39 = vand.u32 4294901760, %v1613_v51  ;;  %v617_v60 = vsub.f32 %v4238_v18, %v5342_v38  ;;  %3620 = vmatprep.subr.bf16.mxu0 %v4625_v23 }
 0x168   : > { %v611_v31 = vand.u32 4294901760, %v610_v55 }
 0x169   : > { %v1548_v7 = vmul.f32 1.442695, %v1535_v5  ;;  %v1888_v54 = vsub.f32 %v1613_v51, %v1674_v39  ;;  %v618_v51 = vand.u32 4294901760, %v617_v60  ;;  %v5345_v5 = vand.u32 4294901760, %v4255_v22 }
 0x16a   : > { %v1611_v53 = vpop.permute.xlu0 %1610  ;;  %v625_v60 = vand.u32 4294901760, %v624_v26 }
 0x16b   : > { %4079 = vpow2.f32 %v1548_v7  ;;  %v1889_v20 = vand.u32 4294901760, %v1888_v54  ;;  %v1671_v36 = vand.u32 4294901760, %v1611_v53  ;;  %v4641_v57 = vpack.c.bf16 %v618_v51, %v611_v31 }
 0x16c   : > { %v631_v7 = vsub.f32 %v4255_v22, %v5345_v5 }
 0x16d   : > { %v4636_v1 = vpack.c.bf16 %v1674_v39, %v1671_v36  ;;  %v1881_v37 = vsub.f32 %v1611_v53, %v1671_v36  ;;  %5418 = vst [vmem:[#allocation31_spill] sm:$0xff] %v4641_v57  ;;  %v1890_v38 = vsub.f32 %v1888_v54, %v1889_v20  ;;  %v5350_v53 = vand.u32 4294901760, %v4281_v32 }
 0x16e   : > { %v632_v39 = vand.u32 4294901760, %v631_v7  ;;  %v5354_v36 = vand.u32 4294901760, %v4284_v33  ;;  %v5421_v57 = vand.u32 4294901760, %v4317_v47 }
 0x16f   : > { %5417 = vst [vmem:[#allocation30_spill] sm:$0xff] %v4636_v1  ;;  %v1882_v13 = vand.u32 4294901760, %v1881_v37  ;;  %3804 = vmatprep.subr.bf16.mxu1 %v4636_v1  ;;  %v4647_v55 = vpack.c.bf16 %v1888_v54, %v1881_v37  ;;  %v638_v26 = vsub.f32 %v4281_v32, %v5350_v53 }
 0x170   : > { %3806 = vmatpush3.bf16.msra.mxu1 %v4636_v1  ;;  %v4657_v5 = vpack.c.bf16 %v632_v39, %v625_v60  ;;  %v645_v54 = vsub.f32 %v4284_v33, %v5354_v36  ;;  %v1891_v1 = vand.u32 4294901760, %v1890_v38  ;;  %v5353_v60 = vand.u32 4294901760, %v4288_v34 }
 0x171   : > { %v4652_v31 = vpop.eup %4077  ;;  %v1883_v51 = vsub.f32 %v1881_v37, %v1882_v13  ;;  %v4654_v28 = vpack.c.bf16 %v1889_v20, %v1882_v13  ;;  %v4668_v37 = vsub.f32 %v4317_v47, %v5421_v57  ;;  %v639_v13 = vand.u32 4294901760, %v638_v26 }
 0x172   : > { %1562 = vadd.xlane.f32.xlu0 %v4652_v31  ;;  %5420 = vst [vmem:[#allocation33_spill] sm:$0xff] %v4657_v5  ;;  %v646_v20 = vand.u32 4294901760, %v645_v54  ;;  %v5352_v38 = vand.u32 4294901760, %v4291_v35  ;;  %v652_v47 = vsub.f32 %v4288_v34, %v5353_v60  ;;  %v5426_v26 = vand.u32 4294901760, %v4348_v50 }
 0x173   : > { %5419 = vst [vmem:[#allocation32_spill] sm:$0xff] %v4654_v28  ;;  %v1884_v7 = vand.u32 4294901760, %v1883_v51  ;;  %5422 = vst [vmem:[#allocation34_spill] sm:$0xff] %v4668_v37  ;;  %v5423_v28 = vand.u32 4294901760, %v4311_v45  ;;  %v5430_v60 = vand.u32 4294901760, %v4396_v15 }
 0x174   : > { %v4682_v51 = vpack.c.bf16 %v646_v20, %v639_v13  ;;  %v659_v57 = vsub.f32 %v4291_v35, %v5352_v38  ;;  %v653_v54 = vand.u32 4294901760, %v652_v47  ;;  %v5433_v47 = vand.u32 4294901760, %v4407_v25 }
 0x175   : > { %v4671_v39 = vpop.eup %4079  ;;  %v4676_v53 = vsub.f32 %v4311_v45, %v5423_v28  ;;  %v4678_v5 = vpack.c.bf16 %v1891_v1, %v1884_v7  ;;  %v4693_v45 = vsub.f32 %v4348_v50, %v5426_v26  ;;  %v5428_v28 = vand.u32 4294901760, %v4354_v52 }
 0x176   : > { %1564 = vadd.xlane.f32.xlu1 %v4671_v39  ;;  %5425 = vst [vmem:[#allocation36_spill] sm:$0xff] %v4682_v51  ;;  %v5355_v7 = vand.u32 4294901760, %v4668_v37  ;;  %v660_v13 = vand.u32 4294901760, %v659_v57  ;;  %v4708_v50 = vsub.f32 %v4396_v15, %v5430_v60  ;;  %v4718_v57 = vsub.f32 %v4407_v25, %v5433_v47 }
 0x177   : > { %5424 = vst [vmem:[#allocation35_spill] sm:$0xff] %v4676_v53  ;;  %5427 = vst [vmem:[#allocation37_spill] sm:$0xff] %v4693_v45  ;;  %v4698_v1 = vsub.f32 %v4354_v52, %v5428_v28  ;;  %v5357_v20 = vand.u32 4294901760, %v4676_v53 }
 0x178   : > { %v666_v38 = vsub.f32 %v4668_v37, %v5355_v7  ;;  %5431 = vst [vmem:[#allocation39_spill] sm:$0xff] %v4708_v50  ;;  %v4710_v26 = vpack.c.bf16 %v660_v13, %v653_v54  ;;  %5434 = vst [vmem:[#allocation41_spill] sm:$0xff] %v4718_v57  ;;  %v5360_v7 = vand.u32 4294901760, %v4693_v45  ;;  %v5362_v25 = vand.u32 4294901760, %v4718_v57 }
 0x179   : > { %5429 = vst [vmem:[#allocation38_spill] sm:$0xff] %v4698_v1  ;;  %v673_v52 = vsub.f32 %v4676_v53, %v5357_v20  ;;  %v5358_v36 = vand.u32 4294901760, %v4698_v1 }
 0x17a   : > { %5432 = vst [vmem:[#allocation40_spill] sm:$0xff] %v4710_v26  ;;  %v667_v28 = vand.u32 4294901760, %v666_v38  ;;  %v687_v60 = vsub.f32 %v4693_v45, %v5360_v7  ;;  %v5361_v38 = vand.u32 4294901760, %v4708_v50 }
 0x17b   : > { %v674_v51 = vand.u32 4294901760, %v673_v52  ;;  %v680_v15 = vsub.f32 %v4698_v1, %v5358_v36  ;;  %v694_v52 = vsub.f32 %v4718_v57, %v5362_v25 }
 0x17c   : > { %v688_v20 = vand.u32 4294901760, %v687_v60  ;;  %v701_v36 = vsub.f32 %v4708_v50, %v5361_v38  ;;  %v4755_v60 = vand.u32 4294901760, %v4603_v44  ;;  %v4771_v38 = vpack.c.bf16 %v4291_v35, %v4288_v34 }
 0x17d   : > { %v4728_v54 = vpack.c.bf16 %v674_v51, %v667_v28  ;;  %v681_v13 = vand.u32 4294901760, %v680_v15  ;;  %v695_v26 = vand.u32 4294901760, %v694_v52  ;;  %v4744_v28 = vpack.c.bf16 %v4224_v12, %v4229_v14 }
 0x17e   : > { %v702_v7 = vand.u32 4294901760, %v701_v36  ;;  %v4752_v15 = vpack.c.bf16 %v4255_v22, %v4241_v19  ;;  %v4759_v36 = vpack.c.bf16 %v4284_v33, %v4281_v32  ;;  %v4767_v52 = vsub.f32 %v4603_v44, %v4755_v60 }
 0x17f   : > { %v4732_v47 = vpack.c.bf16 %v688_v20, %v681_v13  ;;  %v4748_v20 = vpack.c.bf16 %v4238_v18, %v4233_v16  ;;  %v4774_v22 = vand.u32 4294901760, %v4607_v27 }
 0x180   : > { %v4740_v51 = vpack.c.bf16 %v702_v7, %v695_v26  ;;  %v4762_v26 = vand.u32 4294901760, %v4610_v29 }
 0x181   : > { %v4791_v18 = vsub.f32 %v4607_v27, %v4774_v22  ;;  %v4808_v27 = vpack.c.bf16 %v4693_v45, %v4698_v1 }
 0x182   : > { %v4778_v19 = vsub.f32 %v4610_v29, %v4762_v26  ;;  %v4794_v29 = vand.u32 4294901760, %v4671_v39 }
 0x183   : > { %5437 = vst [vmem:[#allocation43_spill] sm:$0xff] %v4808_v27 }
 0x197   : > { %v1527_v7 = vpop.xlane.xlu1 %1526 }
 0x198   : > { %v1536_v13 = vsub.f32 %v4448_v9, %v1527_v7  ;;  %v4781_v9 = vand.u32 4294901760, %v4652_v31 }
 0x19a   : > { %v1550_v25 = vmul.f32 1.442695, %v1536_v13  ;;  %v4787_v13 = vpack.c.bf16 %v4676_v53, %v4668_v37 }
 0x19b   : > { %v1529_v33 = vpop.xlane.xlu0 %1528  ;;  %v1617_v32 = vpop.permute.xlu1 %1616 }
 0x19c   : > { %4081 = vpow2.f32 %v1550_v25  ;;  %v1537_v44 = vsub.f32 %v4452_v10, %v1529_v33  ;;  %v1680_v7 = vand.u32 4294901760, %v1617_v32  ;;  %5435 = vst [vmem:[#allocation42_spill] sm:$0xff] %v4787_v13  ;;  %v4799_v33 = vsub.f32 %v4652_v31, %v4781_v9 }
 0x19d   : > { %v5380_v25 = vand.u32 4294901760, %v4791_v18 }
 0x19e   : > { %v1552_v34 = vmul.f32 1.442695, %v1537_v44  ;;  %v4801_v10 = vsub.f32 %v1617_v32, %v1680_v7  ;;  %v5436_v44 = vand.u32 4294901760, %v4767_v52  ;;  %v5438_v32 = vand.u32 4294901760, %v4778_v19 }
 0x19f   : > { %v1615_v16 = vpop.permute.xlu0 %1614  ;;  %v5441_v27 = vand.u32 4294901760, %v4799_v33 }
 0x1a0   : > { %4083 = vpow2.f32 %v1552_v34  ;;  %v1677_v35 = vand.u32 4294901760, %v1615_v16  ;;  %v1728_v53 = vsub.f32 %v4767_v52, %v5436_v44  ;;  %v4817_v34 = vsub.f32 %v4671_v39, %v4794_v29 }
 0x1a1   : > { %v1738_v31 = vsub.f32 %v4778_v19, %v5438_v32  ;;  %v1903_v14 = vand.u32 4294901760, %v4801_v10  ;;  %v1758_v13 = vsub.f32 %v4799_v33, %v5441_v27 }
 0x1a2   : > { %v4810_v37 = vpack.c.bf16 %v1680_v7, %v1677_v35  ;;  %v4812_v12 = vsub.f32 %v1615_v16, %v1677_v35  ;;  %v4829_v16 = vpack.c.bf16 %v4708_v50, %v4718_v57  ;;  %v1729_v39 = vand.u32 4294901760, %v1728_v53 }
 0x1a3   : > { %v1748_v7 = vsub.f32 %v4791_v18, %v5380_v25  ;;  %v1739_v1 = vand.u32 4294901760, %v1738_v31  ;;  %v5442_v57 = vand.u32 4294901760, %v4817_v34 }
 0x1a4   : > { %v1896_v45 = vand.u32 4294901760, %v4812_v12  ;;  %3808 = vmatprep.subr.bf16.mxu1 %v4810_v37  ;;  %5439 = vst [vmem:[#allocation44_spill] sm:$0xff] %v4829_v16  ;;  %v1759_v16 = vand.u32 4294901760, %v1758_v13 }
 0x1a5   : > { %3810 = vmatpush3.bf16.msra.mxu1 %v4810_v37  ;;  %v1749_v32 = vand.u32 4294901760, %v1748_v7  ;;  %v1768_v31 = vsub.f32 %v4817_v34, %v5442_v57 }
 0x1a6   : > { %v4082_v35 = vpop.eup %4081  ;;  %3812 = vmatprep.subr.bf16.mxu1 %v4485_v48  ;;  %v4836_v44 = vpack.c.bf16 %v1903_v14, %v1896_v45 }
 0x1a7   : > { %1566 = vadd.xlane.f32.xlu0 %v4082_v35  ;;  %v4841_v50 = vand.u32 4294901760, %v4082_v35  ;;  %v1769_v57 = vand.u32 4294901760, %v1768_v31 }
 0x1a8   : > { %5440 = vst [vmem:[#allocation45_spill] sm:$0xff] %v4836_v44  ;;  %3356 = vmatmul.mubr.f32.vlgmr.msra.gmra.mrb[0].mxu1 %v1729_v39  ;;  %v1904_v39 = vsub.f32 %v4801_v10, %v1903_v14 }
 0x1a9   : > { %3358 = vmatprep.mubr.f32.mxu1 %v1739_v1  ;;  %3814 = vmatpush3.bf16.msra.mxu1 %v4485_v48  ;;  %v4845_v53 = vsub.f32 %v4082_v35, %v4841_v50 }
 0x1aa   : > { %v4084_v25 = vpop.eup %4083  ;;  %3816 = vmatprep.subr.bf16.mxu1 %v4509_v17 }
 0x1ab   : > { %1568 = vadd.xlane.f32.xlu1 %v4084_v25  ;;  %v1777_v27 = vand.u32 4294901760, %v4845_v53  ;;  %v4852_v44 = vand.u32 4294901760, %v4084_v25 }
 0x1ac   : > { %3359 = vmatmul.mubr.f32.gmra.mrb[2].mxu1 %v1749_v32 }
 0x1ad   : > { %3361 = vmatprep.mubr.f32.mxu1 %v1759_v16  ;;  %3818 = vmatpush3.bf16.msra.mxu1 %v4509_v17  ;;  %v1778_v48 = vsub.f32 %v4845_v53, %v1777_v27  ;;  %v4859_v1 = vsub.f32 %v4084_v25, %v4852_v44  ;;  %v1897_v25 = vsub.f32 %v4812_v12, %v1896_v45 }
 0x1ae   : > { %3820 = vmatprep.subr.bf16.mxu1 %v4529_v49 }
 0x1af   : > { %v1779_v35 = vand.u32 4294901760, %v1778_v48  ;;  %v1787_v13 = vand.u32 4294901760, %v4859_v1  ;;  %v1898_v7 = vand.u32 4294901760, %v1897_v25 }
 0x1b0   : > { %3362 = vmatmul.mubr.f32.gmra.mrb[4].mxu1 %v1769_v57 }
 0x1b1   : > { %3364 = vmatprep.mubr.f32.mxu1 %v1779_v35  ;;  %3822 = vmatpush3.bf16.msra.mxu1 %v4529_v49  ;;  %v1788_v17 = vsub.f32 %v4859_v1, %v1787_v13  ;;  %v4876_v49 = vld [vmem:[%s5297_s4] ss:$0 sm:$0xff] }
 0x1b2   : > { %3824 = vmatprep.subr.bf16.mxu1 %v4547_v0 }
 0x1b3   : > { %v1789_v16 = vand.u32 4294901760, %v1788_v17 }
 0x1b5   : > { %3365 = vmatmul.mubr.f32.gmra.mrb[6].mxu1 %v1789_v16 }
 0x1b6   : > { %3826 = vmatpush3.bf16.msra.mxu1 %v4547_v0  ;;  %3399 = vmatprep.mubr.f32.mxu1 %v4576_v11  ;;  %v1905_v0 = vand.u32 4294901760, %v1904_v39 }
 0x1b7   : > { %3828 = vmatprep.subr.bf16.mxu1 %v4551_v40 }
 0x1b8   : > { %v3839_v45 = vpack.c.bf16 %v1905_v0, %v1898_v7 }
 0x1ba   : > { %3830 = vmatpush3.bf16.msra.mxu1 %v4551_v40 }
 0x1bb   : > { %3832 = vmatprep.subr.bf16.mxu1 %v4593_v24 }
 0x1bd   : > { %2598 = vrot.lane.b32.xlu0 %v4876_v49, %s4143_s22  ;;  %s4144_s22 = smov 16  }
 0x1be   : > { %3834 = vmatpush3.bf16.msra.mxu1 %v4593_v24 }
 0x1bf   : > { %3836 = vmatprep.subr.bf16.mxu1 %v4678_v5 }
 0x1c2   : > { %3838 = vmatpush3.bf16.msra.mxu1 %v4678_v5 }
 0x1c3   : > { %3840 = vmatprep.subr.bf16.mxu1 %v3839_v45 }
 0x1c6   : > { %3842 = vmatpush3.bf16.msra.mxu1 %v3839_v45 }
 0x1c7   : > { %3844 = vmatprep.subr.bf16.mxu1 %v4466_v56 }
 0x1c9   : > { %3400 = vmatmul.mubr.f32.vlgmr.msra.gmra.mrb[0].mxu1 %v4755_v60 }
 0x1ca   : > { %3402 = vmatprep.mubr.f32.mxu1 %v4762_v26  ;;  %3846 = vmatpush3.bf16.msra.mxu1 %v4466_v56 }
 0x1cb   : > { %3848 = vmatprep.subr.bf16.mxu1 %v4492_v61 }
 0x1cc   : > { %v376_v14 = vpop.xlane.xlu1 %375 }
 0x1cd   : > { %3403 = vmatmul.mubr.f32.gmra.mrb[2].mxu1 %v4774_v22  ;;  %v391_v24 = vsub.f32 %v4456_v62, %v376_v14 }
 0x1ce   : > { %3405 = vmatprep.mubr.f32.mxu1 %v4781_v9  ;;  %3850 = vmatpush3.bf16.msra.mxu1 %v4492_v61 }
 0x1cf   : > { %v399_v40 = vmul.f32 1.442695, %v391_v24  ;;  %3852 = vmatprep.subr.bf16.mxu1 %v4515_v4 }
 0x1d0   : > { %v378_v5 = vpop.xlane.xlu0 %377 }
 0x1d1   : > { %4085 = vpow2.f32 %v399_v40  ;;  %v392_v32 = vsub.f32 %v4458_v63, %v378_v5  ;;  %3406 = vmatmul.mubr.f32.gmra.mrb[4].mxu1 %v4794_v29  ;;  %v382_v56 = vpop.xlane.xlu1 %381 }
 0x1d2   : > { %v394_v31 = vsub.f32 %v4474_v42, %v382_v56  ;;  %3408 = vmatprep.mubr.f32.mxu1 %v4841_v50  ;;  %3854 = vmatpush3.bf16.msra.mxu1 %v4515_v4 }
 0x1d3   : > { %v401_v62 = vmul.f32 1.442695, %v392_v32  ;;  %3856 = vmatprep.subr.bf16.mxu1 %v4535_v8 }
 0x1d4   : > { %v405_v61 = vmul.f32 1.442695, %v394_v31  ;;  %v380_v48 = vpop.xlane.xlu0 %379 }
 0x1d5   : > { %4087 = vpow2.f32 %v401_v62  ;;  %v393_v57 = vsub.f32 %v4478_v43, %v380_v48  ;;  %3409 = vmatmul.mubr.f32.gmra.mrb[6].mxu1 %v4852_v44  ;;  %v386_v63 = vpop.xlane.xlu1 %385 }
 0x1d6   : > { %4089 = vpow2.f32 %v405_v61  ;;  %v396_v35 = vsub.f32 %v4501_v3, %v386_v63  ;;  %3858 = vmatpush3.bf16.msra.mxu1 %v4535_v8  ;;  %3443 = vmatprep.mubr.f32.mxu1 %v4583_v46 }
 0x1d7   : > { %v403_v42 = vmul.f32 1.442695, %v393_v57  ;;  %3860 = vmatprep.subr.bf16.mxu1 %v4543_v21 }
 0x1d8   : > { %v409_v4 = vmul.f32 1.442695, %v396_v35  ;;  %v384_v17 = vpop.xlane.xlu0 %383 }
 0x1d9   : > { %4091 = vpow2.f32 %v403_v42  ;;  %v395_v16 = vsub.f32 %v4505_v59, %v384_v17  ;;  %v390_v25 = vpop.xlane.xlu1 %389 }
 0x1da   : > { %4093 = vpow2.f32 %v409_v4  ;;  %v398_v43 = vsub.f32 %v4521_v30, %v390_v25  ;;  %3862 = vmatpush3.bf16.msra.mxu1 %v4543_v21 }
 0x1db   : > { %v4086_v39 = vpop.eup %4085  ;;  %v407_v3 = vmul.f32 1.442695, %v395_v16  ;;  %3864 = vmatprep.subr.bf16.mxu1 %v4579_v6 }
 0x1dc   : > { %v413_v8 = vmul.f32 1.442695, %v398_v43  ;;  %v388_v7 = vpop.xlane.xlu0 %387  ;;  %415 = vadd.xlane.f32.xlu1 %v4086_v39  ;;  %v4911_v0 = vand.u32 4294901760, %v4086_v39 }
 0x1dd   : > { %4095 = vpow2.f32 %v407_v3  ;;  %v397_v45 = vsub.f32 %v4525_v41, %v388_v7  ;;  %v3871_v41 = vpack.c.bf16 %v4801_v10, %v4812_v12 }
 0x1de   : > { %4097 = vpow2.f32 %v413_v8  ;;  %3866 = vmatpush3.bf16.msra.mxu1 %v4579_v6  ;;  %v4916_v59 = vsub.f32 %v4086_v39, %v4911_v0 }
 0x1df   : > { %v4088_v30 = vpop.eup %4087  ;;  %v411_v21 = vmul.f32 1.442695, %v397_v45  ;;  %3868 = vmatprep.subr.bf16.mxu1 %v4647_v55 }
 0x1e0   : > { %v4090_v14 = vpop.eup %4089  ;;  %417 = vadd.xlane.f32.xlu1 %v4088_v30  ;;  %v514_v24 = vand.u32 4294901760, %v4916_v59  ;;  %v4920_v40 = vand.u32 4294901760, %v4088_v30 }
 0x1e1   : > { %4099 = vpow2.f32 %v411_v21  ;;  %v4924_v5 = vand.u32 4294901760, %v4090_v14 }
 0x1e2   : > { %3870 = vmatpush3.bf16.msra.mxu1 %v4647_v55  ;;  %v515_v6 = vsub.f32 %v4916_v59, %v514_v24  ;;  %v4931_v32 = vsub.f32 %v4088_v30, %v4920_v40 }
 0x1e3   : > { %v4092_v56 = vpop.eup %4091  ;;  %3872 = vmatprep.subr.bf16.mxu1 %v3871_v41  ;;  %v4934_v31 = vsub.f32 %v4090_v14, %v4924_v5 }
 0x1e4   : > { %v4094_v62 = vpop.eup %4093  ;;  %419 = vadd.xlane.f32.xlu1 %v4092_v56  ;;  %v516_v61 = vand.u32 4294901760, %v515_v6  ;;  %v524_v12 = vand.u32 4294901760, %v4931_v32  ;;  %v4937_v10 = vand.u32 4294901760, %v4092_v56  ;;  %v5443_v6 = vld [vmem:[#allocation31_spill] sm:$0xff] }
 0x1e5   : > { %v4939_v55 = vand.u32 4294901760, %v4094_v62  ;;  %v544_v35 = vand.u32 4294901760, %v4934_v31 }
 0x1e6   : > { %3874 = vmatpush3.bf16.msra.mxu1 %v3871_v41  ;;  %3091 = vmatprep.mubr.f32.mxu0 %v516_v61  ;;  %v525_v48 = vsub.f32 %v4931_v32, %v524_v12  ;;  %v4945_v57 = vsub.f32 %v4092_v56, %v4937_v10 }
 0x1e7   : > { %v4096_v63 = vpop.eup %4095  ;;  %3876 = vmatprep.subr.bf16.mxu1 %v4460_v2  ;;  %v4950_v42 = vsub.f32 %v4094_v62, %v4939_v55  ;;  %v545_v7 = vsub.f32 %v4934_v31, %v544_v35 }
 0x1e8   : > { %v4098_v4 = vpop.eup %4097  ;;  %421 = vadd.xlane.f32.xlu1 %v4090_v14  ;;  %v526_v17 = vand.u32 4294901760, %v525_v48  ;;  %v534_v16 = vand.u32 4294901760, %v4945_v57  ;;  %v4953_v25 = vand.u32 4294901760, %v4096_v63 }
 0x1e9   : > { %3444 = vmatmul.mubr.f32.vlgmr.msra.gmra.mrb[0].mxu1 %v4767_v52  ;;  %v4956_v43 = vand.u32 4294901760, %v4098_v4  ;;  %v564_v45 = vand.u32 4294901760, %v4950_v42  ;;  %v546_v61 = vand.u32 4294901760, %v545_v7 }
 0x1ea   : > { %3446 = vmatprep.mubr.f32.mxu1 %v4778_v19  ;;  %3878 = vmatpush3.bf16.msra.mxu1 %v4460_v2  ;;  %v535_v39 = vsub.f32 %v4945_v57, %v534_v16  ;;  %v4964_v3 = vsub.f32 %v4096_v63, %v4953_v25 }
 0x1eb   : > { %v4100_v8 = vpop.eup %4099  ;;  %3092 = vmatmul.mubr.f32.vlgmr.msra.gmra.mrb[0].mxu0 %v526_v17  ;;  %3880 = vmatprep.subr.bf16.mxu1 %v4480_v58  ;;  %v4976_v41 = vsub.f32 %v4098_v4, %v4956_v43  ;;  %v565_v48 = vsub.f32 %v4950_v42, %v564_v45 }
 0x1ec   : > { %3622 = vmatpush3.bf16.msra.mxu0 %v4625_v23  ;;  %427 = vadd.xlane.f32.xlu0 %v4100_v8  ;;  %v536_v30 = vand.u32 4294901760, %v535_v39  ;;  %v5384_v21 = vand.u32 4294901760, %v4964_v3  ;;  %v4973_v14 = vand.u32 4294901760, %v4100_v8 }
 0x1ed   : > { %3447 = vmatmul.mubr.f32.gmra.mrb[2].mxu1 %v4791_v18  ;;  %423 = vadd.xlane.f32.xlu1 %v4096_v63  ;;  %v5444_v63 = vld [vmem:[#allocation22_spill] sm:$0xff] }
 0x1ee   : > { %3624 = vmatprep.subr.bf16.mxu0 %v5443_v6  ;;  %3449 = vmatprep.mubr.f32.mxu1 %v4799_v33  ;;  %v555_v23 = vsub.f32 %v4964_v3, %v5384_v21  ;;  %v4985_v56 = vsub.f32 %v4100_v8, %v4973_v14  ;;  %v584_v21 = vand.u32 4294901760, %v4976_v41  ;;  %v5445_v8 = vld [vmem:[#allocation33_spill] sm:$0xff] }
 0x1ef   : > { %3882 = vmatpush3.bf16.msra.mxu1 %v4480_v58  ;;  %3094 = vmatprep.mubr.f32.mxu0 %v536_v30  ;;  %v566_v30 = vand.u32 4294901760, %v565_v48  ;;  %v5448_v48 = vand.u32 4294901760, %v4583_v46  ;;  %v5452_v46 = vld [vmem:[#allocation30_spill] sm:$0xff] }
 0x1f0   : > { %3626 = vmatpush3.bf16.msra.mxu0 %v5443_v6  ;;  %3884 = vmatprep.subr.bf16.mxu1 %v5444_v63  ;;  %v556_v17 = vand.u32 4294901760, %v555_v23  ;;  %v574_v39 = vand.u32 4294901760, %v4985_v56  ;;  %v585_v23 = vsub.f32 %v4976_v41, %v584_v21 }
 0x1f1   : > { %3095 = vmatmul.mubr.f32.gmra.mrb[2].mxu0 %v546_v61  ;;  %3450 = vmatmul.mubr.f32.gmra.mrb[4].mxu1 %v4817_v34  ;;  %v5447_v61 = vld [vmem:[#allocation36_spill] sm:$0xff] }
 0x1f2   : > { %425 = vadd.xlane.f32.xlu1 %v4094_v62  ;;  %3628 = vmatprep.subr.bf16.mxu0 %v5445_v8  ;;  %v575_v7 = vsub.f32 %v4985_v56, %v574_v39  ;;  %v5446_v62 = vld [vmem:[#allocation24_spill] sm:$0xff] }
 0x1f3   : > { %3452 = vmatprep.mubr.f32.mxu1 %v4845_v53  ;;  %3886 = vmatpush3.bf16.msra.mxu1 %v5444_v63  ;;  %v5466_v53 = vld [vmem:[#allocation43_spill] sm:$0xff] }
 0x1f4   : > { %3097 = vmatprep.mubr.f32.mxu0 %v556_v17  ;;  %3630 = vmatpush3.bf16.msra.mxu0 %v5445_v8  ;;  %v576_v6 = vand.u32 4294901760, %v575_v7  ;;  %v586_v17 = vand.u32 4294901760, %v585_v23  ;;  %v5449_v8 = vld [vmem:[#allocation25_spill] sm:$0xff]  ;;  %v5450_v7 = vld [vmem:[#allocation40_spill] sm:$0xff] }
 0x1f5   : > { %3888 = vmatprep.subr.bf16.mxu1 %v5446_v62  ;;  %3098 = vmatmul.mubr.f32.gmra.mrb[4].mxu0 %v566_v30  ;;  %v5453_v30 = vld [vmem:[#allocation20_spill] sm:$0xff] }
 0x1f6   : > { %3453 = vmatmul.mubr.f32.gmra.mrb[6].mxu1 %v4859_v1  ;;  %429 = vadd.xlane.f32.xlu1 %v4098_v4  ;;  %v5451_v4 = vld [vmem:[#allocation28_spill] sm:$0xff]  ;;  %v5470_v1 = vld [vmem:[#allocation6_spill] sm:$0xff] }
 0x1f7   : > { %3632 = vmatprep.subr.bf16.mxu0 %v5447_v61  ;;  %3890 = vmatpush3.bf16.msra.mxu1 %v5446_v62 }
 0x1f8   : > { %3487 = vmatprep.mubr.f32.mxu1 %v5448_v48  ;;  %3100 = vmatprep.mubr.f32.mxu0 %v576_v6  ;;  %v5454_v6 = vand.u32 4294901760, %v4767_v52  ;;  %v5458_v52 = vand.u32 4294901760, %v4799_v33  ;;  %v5464_v33 = vld [vmem:[#allocation42_spill] sm:$0xff] }
 0x1f9   : > { %3634 = vmatpush3.bf16.msra.mxu0 %v5447_v61  ;;  %3892 = vmatprep.subr.bf16.mxu1 %v5449_v8 }
 0x1fa   : > { %3101 = vmatmul.mubr.f32.gmra.mrb[6].mxu0 %v586_v17  ;;  %3636 = vmatprep.subr.bf16.mxu0 %v5450_v7  ;;  %v5481_v17 = vld [vmem:[#allocation5_spill] sm:$0xff] }
 0x1fb   : > { %3135 = vmatprep.mubr.f32.mxu0 %v4911_v0  ;;  %3894 = vmatpush3.bf16.msra.mxu1 %v5449_v8 }
 0x1fc   : > { %3896 = vmatprep.subr.bf16.mxu1 %v5451_v4 }
 0x1fd   : > { %3638 = vmatpush3.bf16.msra.mxu0 %v5450_v7  ;;  %v5483_v7 = vld [vmem:[#allocation7_spill] sm:$0xff] }
 0x1fe   : > { %3640 = vmatprep.subr.bf16.mxu0 %v4728_v54 }
 0x1ff   : > { %3898 = vmatpush3.bf16.msra.mxu1 %v5451_v4 }
 0x200   : > { %3900 = vmatprep.subr.bf16.mxu1 %v5452_v46 }
 0x201   : > { %3642 = vmatpush3.bf16.msra.mxu0 %v4728_v54  ;;  %v5455_v54 = vand.u32 4294901760, %v4778_v19  ;;  %v5459_v19 = vld [vmem:[#allocation23_spill] sm:$0xff] }
 0x202   : > { %3644 = vmatprep.subr.bf16.mxu0 %v4732_v47 }
 0x203   : > { %3902 = vmatpush3.bf16.msra.mxu1 %v5452_v46 }
 0x204   : > { %3904 = vmatprep.subr.bf16.mxu1 %v4810_v37 }
 0x205   : > { %3646 = vmatpush3.bf16.msra.mxu0 %v4732_v47  ;;  %v5456_v47 = vld [vmem:[#allocation21_spill] sm:$0xff] }
 0x206   : > { %3648 = vmatprep.subr.bf16.mxu0 %v4740_v51 }
 0x207   : > { %3906 = vmatpush3.bf16.msra.mxu1 %v4810_v37 }
 0x208   : > { %3908 = vmatprep.subr.bf16.mxu1 %v5453_v30 }
 0x209   : > { %3650 = vmatpush3.bf16.msra.mxu0 %v4740_v51  ;;  %v5457_v51 = vand.u32 4294901760, %v4791_v18  ;;  %v5461_v18 = vld [vmem:[#allocation26_spill] sm:$0xff] }
 0x20a   : > { %3488 = vmatmul.mubr.f32.vlgmr.msra.gmra.mrb[0].mxu1 %v5454_v6  ;;  %3652 = vmatprep.subr.bf16.mxu0 %v4744_v28 }
 0x20b   : > { %3490 = vmatprep.mubr.f32.mxu1 %v5455_v54  ;;  %3910 = vmatpush3.bf16.msra.mxu1 %v5453_v30  ;;  %v5487_v30 = vld [vmem:[#allocation9_spill] sm:$0xff] }
 0x20c   : > { %3136 = vmatmul.mubr.f32.vlgmr.msra.gmra.mrb[0].mxu0 %v4920_v40  ;;  %3912 = vmatprep.subr.bf16.mxu1 %v5456_v47  ;;  %v5488_v6 = vand.u32 4294901760, %v5487_v30 }
 0x20d   : > { %3138 = vmatprep.mubr.f32.mxu0 %v4937_v10  ;;  %3654 = vmatpush3.bf16.msra.mxu0 %v4744_v28  ;;  %v5460_v28 = vand.u32 4294901760, %v4817_v34  ;;  %v5465_v34 = vld [vmem:[#allocation32_spill] sm:$0xff] }
 0x20e   : > { %3491 = vmatmul.mubr.f32.gmra.mrb[2].mxu1 %v5457_v51  ;;  %3656 = vmatprep.subr.bf16.mxu0 %v4748_v20  ;;  %v5504_v51 = vld [vmem:[#allocation37_spill] sm:$0xff] }
 0x20f   : > { %3493 = vmatprep.mubr.f32.mxu1 %v5458_v52  ;;  %3914 = vmatpush3.bf16.msra.mxu1 %v5456_v47  ;;  %v5505_v52 = vand.u32 4294901760, %v5504_v51 }
 0x210   : > { %3139 = vmatmul.mubr.f32.gmra.mrb[2].mxu0 %v4924_v5  ;;  %3916 = vmatprep.subr.bf16.mxu1 %v5459_v19 }
 0x211   : > { %3141 = vmatprep.mubr.f32.mxu0 %v4953_v25  ;;  %3658 = vmatpush3.bf16.msra.mxu0 %v4748_v20  ;;  %v5462_v20 = vld [vmem:[#allocation27_spill] sm:$0xff] }
 0x212   : > { %3494 = vmatmul.mubr.f32.gmra.mrb[4].mxu1 %v5460_v28  ;;  %3660 = vmatprep.subr.bf16.mxu0 %v4752_v15  ;;  %v5508_v28 = vld [vmem:[#allocation39_spill] sm:$0xff] }
 0x213   : > { %3496 = vmatprep.mubr.f32.mxu1 %v1777_v27  ;;  %3918 = vmatpush3.bf16.msra.mxu1 %v5459_v19  ;;  %v5468_v27 = vld [vmem:[#allocation44_spill] sm:$0xff] }
 0x214   : > { %3142 = vmatmul.mubr.f32.gmra.mrb[4].mxu0 %v4939_v55  ;;  %3920 = vmatprep.subr.bf16.mxu1 %v5461_v18 }
 0x215   : > { %3144 = vmatprep.mubr.f32.mxu0 %v4973_v14  ;;  %3662 = vmatpush3.bf16.msra.mxu0 %v4752_v15  ;;  %v5463_v15 = vld [vmem:[#allocation29_spill] sm:$0xff] }
 0x216   : > { %3497 = vmatmul.mubr.f32.gmra.mrb[6].mxu1 %v1787_v13  ;;  %3664 = vmatprep.subr.bf16.mxu0 %v4759_v36  ;;  %v5473_v13 = vld [vmem:[#allocation16_spill] sm:$0xff] }
 0x217   : > { %3922 = vmatpush3.bf16.msra.mxu1 %v5461_v18  ;;  %3531 = vmatprep.mubr.f32.mxu1 %v4576_v11  ;;  %v5509_v18 = vand.u32 4294901760, %v5508_v28 }
 0x218   : > { %3145 = vmatmul.mubr.f32.gmra.mrb[6].mxu0 %v4956_v43  ;;  %3924 = vmatprep.subr.bf16.mxu1 %v5462_v20 }
 0x219   : > { %3666 = vmatpush3.bf16.msra.mxu0 %v4759_v36  ;;  %3179 = vmatprep.mubr.f32.mxu0 %v4916_v59  ;;  %v5467_v36 = vld [vmem:[#allocation45_spill] sm:$0xff]  ;;  %v5476_v59 = vld [vmem:[#allocation19_spill] sm:$0xff] }
 0x21a   : > { %3668 = vmatprep.subr.bf16.mxu0 %v4771_v38 }
 0x21b   : > { %3926 = vmatpush3.bf16.msra.mxu1 %v5462_v20 }
 0x21c   : > { %3928 = vmatprep.subr.bf16.mxu1 %v5463_v15 }
 0x21d   : > { %3670 = vmatpush3.bf16.msra.mxu0 %v4771_v38  ;;  %v5469_v38 = vld [vmem:[#allocation3_spill] sm:$0xff] }
 0x21e   : > { %3672 = vmatprep.subr.bf16.mxu0 %v5464_v33 }
 0x21f   : > { %3930 = vmatpush3.bf16.msra.mxu1 %v5463_v15  ;;  %v1557_v15 = vpop.xlane.xlu1 %1556 }
 0x220   : > { %3932 = vmatprep.subr.bf16.mxu1 %v5465_v34  ;;  %4101 = vrcp.f32 %v1557_v15 }
 0x221   : > { %3674 = vmatpush3.bf16.msra.mxu0 %v5464_v33 }
 0x222   : > { %3676 = vmatprep.subr.bf16.mxu0 %v5466_v53 }
 0x223   : > { %3934 = vmatpush3.bf16.msra.mxu1 %v5465_v34  ;;  %v1561_v34 = vpop.xlane.xlu1 %1560 }
 0x224   : > { %3936 = vmatprep.subr.bf16.mxu1 %v5467_v36 }
 0x225   : > { %3678 = vmatpush3.bf16.msra.mxu0 %v5466_v53 }
 0x226   : > { %3680 = vmatprep.subr.bf16.mxu0 %v5468_v27 }
 0x227   : > { %3938 = vmatpush3.bf16.msra.mxu1 %v5467_v36 }
 0x228   : > { %3940 = vmatprep.subr.bf16.mxu1 %v4460_v2 }
 0x229   : > { %3682 = vmatpush3.bf16.msra.mxu0 %v5468_v27 }
 0x22a   : > { %3532 = vmatmul.mubr.f32.vlgmr.msra.gmra.mrb[0].mxu1 %v4755_v60  ;;  %3684 = vmatprep.subr.bf16.mxu0 %v5469_v38  ;;  %v4102_v53 = vpop.eup %4101 }
 0x22b   : > { %3534 = vmatprep.mubr.f32.mxu1 %v4762_v26  ;;  %3942 = vmatpush3.bf16.msra.mxu1 %v4460_v2  ;;  %v5471_v2 = vld [vmem:[#allocation10_spill] sm:$0xff] }
 0x22c   : > { %3180 = vmatmul.mubr.f32.vlgmr.msra.gmra.mrb[0].mxu0 %v4931_v32  ;;  %3944 = vmatprep.subr.bf16.mxu1 %v4480_v58  ;;  %v5490_v32 = vld [vmem:[#allocation11_spill] sm:$0xff] }
 0x22d   : > { %3182 = vmatprep.mubr.f32.mxu0 %v4945_v57  ;;  %3686 = vmatpush3.bf16.msra.mxu0 %v5469_v38 }
 0x22e   : > { %3535 = vmatmul.mubr.f32.gmra.mrb[2].mxu1 %v4774_v22  ;;  %3688 = vmatprep.subr.bf16.mxu0 %v5470_v1 }
 0x22f   : > { %3537 = vmatprep.mubr.f32.mxu1 %v4781_v9  ;;  %3946 = vmatpush3.bf16.msra.mxu1 %v4480_v58  ;;  %v5472_v58 = vld [vmem:[#allocation15_spill] sm:$0xff] }
 0x230   : > { %3183 = vmatmul.mubr.f32.gmra.mrb[2].mxu0 %v4934_v31  ;;  %3948 = vmatprep.subr.bf16.mxu1 %v5444_v63  ;;  %v5496_v31 = vld [vmem:[#allocation14_spill] sm:$0xff] }
 0x231   : > { %3185 = vmatprep.mubr.f32.mxu0 %v4964_v3  ;;  %3690 = vmatpush3.bf16.msra.mxu0 %v5470_v1 }
 0x232   : > { %3538 = vmatmul.mubr.f32.gmra.mrb[4].mxu1 %v4794_v29  ;;  %3692 = vmatprep.subr.bf16.mxu0 %v5471_v2 }
 0x233   : > { %3540 = vmatprep.mubr.f32.mxu1 %v4841_v50  ;;  %3950 = vmatpush3.bf16.msra.mxu1 %v5444_v63  ;;  %v5474_v63 = vld [vmem:[#allocation17_spill] sm:$0xff] }
 0x234   : > { %3186 = vmatmul.mubr.f32.gmra.mrb[4].mxu0 %v4950_v42  ;;  %3952 = vmatprep.subr.bf16.mxu1 %v5446_v62 }
 0x235   : > { %3188 = vmatprep.mubr.f32.mxu0 %v4985_v56  ;;  %3694 = vmatpush3.bf16.msra.mxu0 %v5471_v2 }
 0x236   : > { %3541 = vmatmul.mubr.f32.gmra.mrb[6].mxu1 %v4852_v44  ;;  %3696 = vmatprep.subr.bf16.mxu0 %v5472_v58 }
 0x237   : > { %3954 = vmatpush3.bf16.msra.mxu1 %v5446_v62  ;;  %3575 = vmatprep.mubr.f32.mxu1 %v4576_v11  ;;  %v5475_v11 = vld [vmem:[#allocation18_spill] sm:$0xff] }
 0x238   : > { %3189 = vmatmul.mubr.f32.gmra.mrb[6].mxu0 %v4976_v41  ;;  %3956 = vmatprep.subr.bf16.mxu1 %v5449_v8  ;;  %v5479_v62 = vld [vmem:[#allocation2_spill] sm:$0xff]  ;;  %v5506_v41 = vld [vmem:[#allocation41_spill] sm:$0xff] }
 0x239   : > { %3698 = vmatpush3.bf16.msra.mxu0 %v5472_v58  ;;  %3223 = vmatprep.mubr.f32.mxu0 %v514_v24  ;;  %v5477_v24 = vld [vmem:[#allocation4_spill] sm:$0xff]  ;;  %v5480_v61 = vand.u32 4294901760, %v5479_v62 }
 0x23a   : > { %3700 = vmatprep.subr.bf16.mxu0 %v5473_v13  ;;  %v5478_v23 = vand.u32 4294901760, %v5477_v24 }
 0x23b   : > { %3958 = vmatpush3.bf16.msra.mxu1 %v5449_v8  ;;  %v5482_v8 = vand.u32 4294901760, %v5481_v17 }
 0x23c   : > { %3960 = vmatprep.subr.bf16.mxu1 %v5451_v4  ;;  %v3715_v48 = vpack.c.bf16 %v5480_v61, %v5478_v23 }
 0x23d   : > { %3702 = vmatpush3.bf16.msra.mxu0 %v5473_v13 }
 0x23e   : > { %3704 = vmatprep.subr.bf16.mxu0 %v5474_v63 }
 0x23f   : > { %3962 = vmatpush3.bf16.msra.mxu1 %v5451_v4  ;;  %v5484_v4 = vand.u32 4294901760, %v5483_v7 }
 0x240   : > { %3964 = vmatprep.subr.bf16.mxu1 %v5452_v46 }
 0x241   : > { %3706 = vmatpush3.bf16.msra.mxu0 %v5474_v63 }
 0x242   : > { %3708 = vmatprep.subr.bf16.mxu0 %v5475_v11 }
 0x243   : > { %3966 = vmatpush3.bf16.msra.mxu1 %v5452_v46  ;;  %v3719_v46 = vpack.c.bf16 %v5484_v4, %v5482_v8 }
 0x244   : > { %3968 = vmatprep.subr.bf16.mxu1 %v4810_v37 }
 0x245   : > { %3710 = vmatpush3.bf16.msra.mxu0 %v5475_v11 }
 0x246   : > { %3712 = vmatprep.subr.bf16.mxu0 %v5476_v59 }
 0x247   : > { %3970 = vmatpush3.bf16.msra.mxu1 %v4810_v37  ;;  %v5485_v37 = vld [vmem:[#allocation8_spill] sm:$0xff] }
 0x249   : > { %3714 = vmatpush3.bf16.msra.mxu0 %v5476_v59 }
 0x24a   : > { %3576 = vmatmul.mubr.f32.vlgmr.msra.gmra.mrb[0].mxu1 %v4755_v60  ;;  %3716 = vmatprep.subr.bf16.mxu0 %v3715_v48  ;;  %v5486_v60 = vand.u32 4294901760, %v5485_v37 }
 0x24b   : > { %3578 = vmatprep.mubr.f32.mxu1 %v4762_v26  ;;  %v5489_v26 = vand.u32 4294901760, %v4964_v3 }
 0x24c   : > { %3224 = vmatmul.mubr.f32.vlgmr.msra.gmra.mrb[0].mxu0 %v524_v12  ;;  %v3723_v54 = vpack.c.bf16 %v5488_v6, %v5486_v60  ;;  %v5492_v12 = vld [vmem:[#allocation12_spill] sm:$0xff] }
 0x24d   : > { %3226 = vmatprep.mubr.f32.mxu0 %v534_v16  ;;  %3718 = vmatpush3.bf16.msra.mxu0 %v3715_v48  ;;  %v5493_v57 = vand.u32 4294901760, %v5492_v12 }
 0x24e   : > { %3579 = vmatmul.mubr.f32.gmra.mrb[2].mxu1 %v4774_v22  ;;  %3720 = vmatprep.subr.bf16.mxu0 %v3719_v46  ;;  %v5491_v22 = vand.u32 4294901760, %v5490_v32 }
 0x24f   : > { %3581 = vmatprep.mubr.f32.mxu1 %v4781_v9  ;;  %v5494_v9 = vld [vmem:[#allocation13_spill] sm:$0xff] }
 0x250   : > { %3227 = vmatmul.mubr.f32.gmra.mrb[2].mxu0 %v544_v35  ;;  %v3727_v16 = vpack.c.bf16 %v5493_v57, %v5491_v22  ;;  %v5497_v35 = vand.u32 4294901760, %v5496_v31 }
 0x251   : > { %3229 = vmatprep.mubr.f32.mxu0 %v5489_v26  ;;  %3722 = vmatpush3.bf16.msra.mxu0 %v3719_v46 }
 0x252   : > { %3582 = vmatmul.mubr.f32.gmra.mrb[4].mxu1 %v4794_v29  ;;  %3724 = vmatprep.subr.bf16.mxu0 %v3723_v54  ;;  %v5495_v29 = vand.u32 4294901760, %v5494_v9 }
 0x253   : > { %3584 = vmatprep.mubr.f32.mxu1 %v4841_v50  ;;  %v5498_v50 = vld [vmem:[#allocation34_spill] sm:$0xff] }
 0x254   : > { %3230 = vmatmul.mubr.f32.gmra.mrb[4].mxu0 %v564_v45  ;;  %v3731_v3 = vpack.c.bf16 %v5497_v35, %v5495_v29  ;;  %v5499_v42 = vand.u32 4294901760, %v5498_v50  ;;  %v5500_v45 = vld [vmem:[#allocation35_spill] sm:$0xff] }
 0x255   : > { %3232 = vmatprep.mubr.f32.mxu0 %v574_v39  ;;  %3726 = vmatpush3.bf16.msra.mxu0 %v3723_v54  ;;  %v5501_v56 = vand.u32 4294901760, %v5500_v45 }
 0x256   : > { %3585 = vmatmul.mubr.f32.gmra.mrb[6].mxu1 %v4852_v44  ;;  %3728 = vmatprep.subr.bf16.mxu0 %v3727_v16  ;;  %v5502_v44 = vld [vmem:[#allocation38_spill] sm:$0xff] }
 0x257   : > { %v3735_v39 = vpack.c.bf16 %v5501_v56, %v5499_v42  ;;  %v5503_v47 = vand.u32 4294901760, %v5502_v44 }
 0x258   : > { %3233 = vmatmul.mubr.f32.gmra.mrb[6].mxu0 %v584_v21  ;;  %v5507_v21 = vand.u32 4294901760, %v5506_v41 }
 0x259   : > { %3730 = vmatpush3.bf16.msra.mxu0 %v3727_v16  ;;  %3267 = vmatprep.mubr.f32.mxu0 %v4911_v0  ;;  %v3739_v19 = vpack.c.bf16 %v5505_v52, %v5503_v47 }
 0x25a   : > { %3732 = vmatprep.subr.bf16.mxu0 %v3731_v3  ;;  %v3743_v20 = vpack.c.bf16 %v5509_v18, %v5507_v21 }
 0x25d   : > { %3734 = vmatpush3.bf16.msra.mxu0 %v3731_v3 }
 0x25e   : > { %3736 = vmatprep.subr.bf16.mxu0 %v3735_v39 }
 0x261   : > { %3738 = vmatpush3.bf16.msra.mxu0 %v3735_v39 }
 0x262   : > { %3740 = vmatprep.subr.bf16.mxu0 %v3739_v19 }
 0x265   : > { %3742 = vmatpush3.bf16.msra.mxu0 %v3739_v19 }
 0x266   : > { %3744 = vmatprep.subr.bf16.mxu0 %v3743_v20 }
 0x269   : > { %3746 = vmatpush3.bf16.msra.mxu0 %v3743_v20 }
 0x26a   : > { %3748 = vmatprep.subr.bf16.mxu0 %v5469_v38 }
 0x26c   : > { %3268 = vmatmul.mubr.f32.vlgmr.msra.gmra.mrb[0].mxu0 %v4920_v40 }
 0x26d   : > { %3270 = vmatprep.mubr.f32.mxu0 %v4937_v10  ;;  %3750 = vmatpush3.bf16.msra.mxu0 %v5469_v38 }
 0x26e   : > { %3752 = vmatprep.subr.bf16.mxu0 %v5470_v1 }
 0x270   : > { %3271 = vmatmul.mubr.f32.gmra.mrb[2].mxu0 %v4924_v5 }
 0x271   : > { %3273 = vmatprep.mubr.f32.mxu0 %v4953_v25  ;;  %3754 = vmatpush3.bf16.msra.mxu0 %v5470_v1 }
 0x272   : > { %3756 = vmatprep.subr.bf16.mxu0 %v5471_v2 }
 0x274   : > { %3274 = vmatmul.mubr.f32.gmra.mrb[4].mxu0 %v4939_v55 }
 0x275   : > { %3276 = vmatprep.mubr.f32.mxu0 %v4973_v14  ;;  %3758 = vmatpush3.bf16.msra.mxu0 %v5471_v2 }
 0x276   : > { %3760 = vmatprep.subr.bf16.mxu0 %v5472_v58 }
 0x278   : > { %3277 = vmatmul.mubr.f32.gmra.mrb[6].mxu0 %v4956_v43 }
 0x279   : > { %3762 = vmatpush3.bf16.msra.mxu0 %v5472_v58  ;;  %3311 = vmatprep.mubr.f32.mxu0 %v4911_v0  ;;  %v1555_v0 = vpop.xlane.xlu0 %1554 }
 0x27a   : > { %3764 = vmatprep.subr.bf16.mxu0 %v5473_v13  ;;  %4103 = vrcp.f32 %v1555_v0 }
 0x27b   : > { %4105 = vrcp.f32 %v1561_v34 }
 0x27d   : > { %3766 = vmatpush3.bf16.msra.mxu0 %v5473_v13  ;;  %v1559_v33 = vpop.xlane.xlu0 %1558 }
 0x27e   : > { %3768 = vmatprep.subr.bf16.mxu0 %v5474_v63  ;;  %4107 = vrcp.f32 %v1559_v33 }
 0x281   : > { %3770 = vmatpush3.bf16.msra.mxu0 %v5474_v63 }
 0x282   : > { %3772 = vmatprep.subr.bf16.mxu0 %v5475_v11 }
 0x284   : > { %v4104_v36 = vpop.eup %4103 }
 0x285   : > { %3774 = vmatpush3.bf16.msra.mxu0 %v5475_v11  ;;  %v4106_v1 = vpop.eup %4105 }
 0x286   : > { %3776 = vmatprep.subr.bf16.mxu0 %v5476_v59 }
 0x288   : > { %v4108_v58 = vpop.eup %4107 }
 0x289   : > { %3778 = vmatpush3.bf16.msra.mxu0 %v5476_v59 }
 0x28c   : > { %3312 = vmatmul.mubr.f32.vlgmr.msra.gmra.mrb[0].mxu0 %v4920_v40  ;;  %v1563_v40 = vpop.xlane.xlu0 %1562 }
 0x28d   : > { %3314 = vmatprep.mubr.f32.mxu0 %v4937_v10  ;;  %v1565_v10 = vpop.xlane.xlu1 %1564 }
 0x28e   : > { %4109 = vrcp.f32 %v1565_v10 }
 0x28f   : > { %4111 = vrcp.f32 %v1563_v40 }
 0x290   : > { %3315 = vmatmul.mubr.f32.gmra.mrb[2].mxu0 %v4924_v5  ;;  %v1567_v5 = vpop.xlane.xlu0 %1566 }
 0x291   : > { %3317 = vmatprep.mubr.f32.mxu0 %v4953_v25  ;;  %4113 = vrcp.f32 %v1567_v5  ;;  %v1569_v23 = vpop.xlane.xlu1 %1568 }
 0x292   : > { %4115 = vrcp.f32 %v1569_v23 }
 0x294   : > { %3318 = vmatmul.mubr.f32.gmra.mrb[4].mxu0 %v4939_v55 }
 0x295   : > { %3320 = vmatprep.mubr.f32.mxu0 %v4973_v14  ;;  %v2599_v14 = vpop.permute.xlu0 %2598  ;;  %v416_v50 = vpop.xlane.xlu1 %415 }
 0x298   : > { %3321 = vmatmul.mubr.f32.gmra.mrb[6].mxu0 %v4956_v43  ;;  %v4110_v61 = vpop.eup %4109 }
 0x299   : > { %v4112_v37 = vpop.eup %4111  ;;  %v418_v45 = vpop.xlane.xlu1 %417 }
 0x29a   : > { %4117 = vrcp.f32 %v418_v45  ;;  %v428_v19 = vpop.xlane.xlu0 %427 }
 0x29b   : > { %v4114_v32 = vpop.eup %4113  ;;  %4119 = vrcp.f32 %v416_v50 }
 0x29c   : > { %v4116_v16 = vpop.eup %4115 }
 0x29d   : > { %v420_v56 = vpop.xlane.xlu1 %419 }
 0x2a1   : > { %v422_v39 = vpop.xlane.xlu1 %421 }
 0x2a2   : > { %4121 = vrcp.f32 %v422_v39 }
 0x2a3   : > { %4123 = vrcp.f32 %v420_v56 }
 0x2a4   : > { %v4118_v52 = vpop.eup %4117 }
 0x2a5   : > { %v424_v44 = vpop.xlane.xlu1 %423  ;;  %v4120_v21 = vpop.eup %4119 }
 0x2a9   : > { %v426_v47 = vpop.xlane.xlu1 %425 }
 0x2aa   : > { %4125 = vrcp.f32 %v426_v47 }
 0x2ab   : > { %4127 = vrcp.f32 %v424_v44 }
 0x2ac   : > { %v4122_v15 = vpop.eup %4121 }
 0x2ad   : > { %v430_v51 = vpop.xlane.xlu1 %429  ;;  %v4124_v40 = vpop.eup %4123 }
 0x2ae   : > { %4129 = vrcp.f32 %v430_v51 }
 0x2af   : > { %4131 = vrcp.f32 %v428_v19 }
 0x31d   : > { %v3577_v25 = vpop.f32.mrb[0].mxu1 }
 0x31e   : > { %v2585_v55 = vmul.f32 %v4102_v53, %v3577_v25  ;;  %v2530_v27 = vpop.f32.mrb[1].mxu1 }
 0x31f   : > { %v2584_v43 = vmul.f32 %v4104_v36, %v2530_v27  ;;  %v4126_v27 = vpop.eup %4125 }
 0x320   : > { %v2602_v38 = vadd.f32 %v2599_v14, %v2585_v55 }
 0x321   : > { %v3580_v2 = vpop.f32.mrb[2].mxu1  ;;  %v2601_v63 = vadd.f32 %v2599_v14, %v2584_v43 }
 0x322   : > { %v2610_v13 = vmax.f32 %v2602_v38, 0.0  ;;  %v2587_v11 = vmul.f32 %v4106_v1, %v3580_v2  ;;  %v2542_v59 = vpop.f32.mrb[3].mxu1  ;;  %v4128_v38 = vpop.eup %4127 }
 0x323   : > { %v2586_v24 = vmul.f32 %v4108_v58, %v2542_v59  ;;  %v2609_v17 = vmax.f32 %v2601_v63, 0.0  ;;  %v4130_v59 = vpop.eup %4129 }
 0x324   : > { %v2604_v62 = vadd.f32 %v2599_v14, %v2587_v11  ;;  %2627 = vrot.lane.b32.xlu1 %v2610_v13, %s4144_s22 }
 0x325   : > { %v3583_v48 = vpop.f32.mrb[4].mxu1  ;;  %v2603_v7 = vadd.f32 %v2599_v14, %v2586_v24 }
 0x326   : > { %v2612_v8 = vmax.f32 %v2604_v62, 0.0  ;;  %v2589_v4 = vmul.f32 %v4110_v61, %v3583_v48  ;;  %v2554_v46 = vpop.f32.mrb[5].mxu1  ;;  %v4132_v62 = vpop.eup %4131 }
 0x327   : > { %v2611_v30 = vmax.f32 %v2603_v7, 0.0  ;;  %v2588_v54 = vmul.f32 %v4112_v37, %v2554_v46 }
 0x328   : > { %2625 = vrot.lane.b32.xlu1 %v2609_v17, %s4144_s22  ;;  %2631 = vrot.lane.b32.xlu0 %v2612_v8, %s4144_s22  ;;  %v2606_v6 = vadd.f32 %v2599_v14, %v2589_v4 }
 0x329   : > { %v3586_v60 = vpop.f32.mrb[6].mxu1  ;;  %v2605_v12 = vadd.f32 %v2599_v14, %v2588_v54 }
 0x32a   : > { %v2566_v26 = vpop.f32.mrb[7].mxu1  ;;  %v2614_v22 = vmax.f32 %v2606_v6, 0.0  ;;  %v2591_v29 = vmul.f32 %v4116_v16, %v3586_v60 }
 0x32b   : > { %v2590_v57 = vmul.f32 %v4114_v32, %v2566_v26  ;;  %v2613_v9 = vmax.f32 %v2605_v12, 0.0 }
 0x32c   : > { %2629 = vrot.lane.b32.xlu1 %v2611_v30, %s4144_s22  ;;  %v2608_v35 = vadd.f32 %v2599_v14, %v2591_v29 }
 0x32d   : > { %v2607_v31 = vadd.f32 %v2599_v14, %v2590_v57 }
 0x32e   : > { %v2616_v42 = vmax.f32 %v2608_v35, 0.0 }
 0x32f   : > { %v2615_v3 = vmax.f32 %v2607_v31, 0.0 }
 0x330   : > { %2635 = vrot.lane.b32.xlu1 %v2614_v22, %s4144_s22 }
 0x334   : > { %2633 = vrot.lane.b32.xlu1 %v2613_v9, %s4144_s22 }
 0x338   : > { %2637 = vrot.lane.b32.xlu1 %v2615_v3, %s4144_s22 }
 0x33c   : > { %2639 = vrot.lane.b32.xlu1 %v2616_v42, %s4144_s22 }
 0x35f   : > { %v3313_v41 = vpop.f32.mrb[0].mxu0 }
 0x360   : > { %v1382_v28 = vmul.f32 %v4118_v52, %v3313_v41  ;;  %v1327_v18 = vpop.f32.mrb[1].mxu0 }
 0x361   : > { %v1381_v20 = vmul.f32 %v4120_v21, %v1327_v18 }
 0x362   : > { %v1397_v0 = vadd.f32 %v4876_v49, %v1382_v28 }
 0x363   : > { %v1396_v33 = vadd.f32 %v4876_v49, %v1381_v20  ;;  %v3316_v34 = vpop.f32.mrb[2].mxu0 }
 0x364   : > { %v1405_v10 = vmax.f32 %v1397_v0, 0.0  ;;  %v1384_v5 = vmul.f32 %v4122_v15, %v3316_v34  ;;  %v1339_v53 = vpop.f32.mrb[3].mxu0 }
 0x365   : > { %v1404_v25 = vmax.f32 %v1396_v33, 0.0  ;;  %v1383_v36 = vmul.f32 %v4124_v40, %v1339_v53 }
 0x366   : > { %v1399_v55 = vadd.f32 %v4876_v49, %v1384_v5  ;;  %1414 = vst.msk [vmem:[%s5233_s26 + $0x8] sm:$0xff] %vm1412_vm0, %v1405_v10 }
 0x367   : > { %v1398_v14 = vadd.f32 %v4876_v49, %v1383_v36  ;;  %v3319_v43 = vpop.f32.mrb[4].mxu0  ;;  %1413 = vst.msk [vmem:[%s5233_s26] sm:$0xff] %vm1412_vm0, %v1404_v25 }
 0x368   : > { %v1407_v1 = vmax.f32 %v1399_v55, 0.0  ;;  %v1386_v2 = vmul.f32 %v4126_v27, %v3319_v43  ;;  %v1351_v58 = vpop.f32.mrb[5].mxu0 }
 0x369   : > { %v1406_v13 = vmax.f32 %v1398_v14, 0.0  ;;  %v1385_v63 = vmul.f32 %v4128_v38, %v1351_v58 }
 0x36a   : > { %v1401_v11 = vadd.f32 %v4876_v49, %v1386_v2  ;;  %1416 = vst.msk [vmem:[%s5233_s26 + $0x18] sm:$0xff] %vm1412_vm0, %v1407_v1 }
 0x36b   : > { %v1400_v24 = vadd.f32 %v4876_v49, %v1385_v63  ;;  %v3322_v23 = vpop.f32.mrb[6].mxu0  ;;  %1415 = vst.msk [vmem:[%s5233_s26 + $0x10] sm:$0xff] %vm1412_vm0, %v1406_v13 }
 0x36c   : > { %v1409_v61 = vmax.f32 %v1401_v11, 0.0  ;;  %v1388_v48 = vmul.f32 %v4130_v59, %v3322_v23  ;;  %v1363_v17 = vpop.f32.mrb[7].mxu0 }
 0x36d   : > { %v1408_v8 = vmax.f32 %v1400_v24, 0.0  ;;  %v1387_v7 = vmul.f32 %v4132_v62, %v1363_v17 }
 0x36e   : > { %v1403_v4 = vadd.f32 %v4876_v49, %v1388_v48  ;;  %1418 = vst.msk [vmem:[%s5233_s26 + $0x28] sm:$0xff] %vm1412_vm0, %v1409_v61 }
 0x36f   : > { %v1402_v46 = vadd.f32 %v4876_v49, %v1387_v7  ;;  %1417 = vst.msk [vmem:[%s5233_s26 + $0x20] sm:$0xff] %vm1412_vm0, %v1408_v8  ;;  %v4145_v49 = vmov 0.0  }
 0x370   : > { %v1411_v37 = vmax.f32 %v1403_v4, 0.0 }
 0x371   : > { %v1410_v60 = vmax.f32 %v1402_v46, 0.0 }
 0x372   : > { %1420 = vst.msk [vmem:[%s5233_s26 + $0x38] sm:$0xff] %vm1412_vm0, %v1411_v37 }
 0x373   : > { %1419 = vst.msk [vmem:[%s5233_s26 + $0x30] sm:$0xff] %vm1412_vm0, %v1410_v60 }
 0x396   : > { %v2628_v30 = vpop.permute.xlu1 %2627 }
 0x397   : > { %2651 = vst.msk [vmem:[%s5233_s26 + $0x8] sm:$0xff] %vm2649_vm1, %v2628_v30 }
 0x398   : > { %2660 = vst.msk [vmem:[%s5233_s26 + $0x8] sm:$0xff] %vm2658_vm2, %v4145_v49 }
 0x39a   : > { %v2632_v6 = vpop.permute.xlu0 %2631  ;;  %v2626_v54 = vpop.permute.xlu1 %2625 }
 0x39b   : > { %2653 = vst.msk [vmem:[%s5233_s26 + $0x18] sm:$0xff] %vm2649_vm1, %v2632_v6  ;;  %2650 = vst.msk [vmem:[%s5233_s26] sm:$0xff] %vm2649_vm1, %v2626_v54 }
 0x39c   : > { %2662 = vst.msk [vmem:[%s5233_s26 + $0x18] sm:$0xff] %vm2658_vm2, %v4145_v49  ;;  %2659 = vst.msk [vmem:[%s5233_s26] sm:$0xff] %vm2658_vm2, %v4145_v49 }
 0x39e   : > { %v2630_v26 = vpop.permute.xlu1 %2629 }
 0x39f   : > { %2652 = vst.msk [vmem:[%s5233_s26 + $0x10] sm:$0xff] %vm2649_vm1, %v2630_v26 }
 0x3a0   : > { %2661 = vst.msk [vmem:[%s5233_s26 + $0x10] sm:$0xff] %vm2658_vm2, %v4145_v49 }
 0x3a2   : > { %v2636_v32 = vpop.permute.xlu1 %2635 }
 0x3a3   : > { %2655 = vst.msk [vmem:[%s5233_s26 + $0x28] sm:$0xff] %vm2649_vm1, %v2636_v32 }
 0x3a4   : > { %2664 = vst.msk [vmem:[%s5233_s26 + $0x28] sm:$0xff] %vm2658_vm2, %v4145_v49 }
 0x3a6   : > { %v2634_v22 = vpop.permute.xlu1 %2633 }
 0x3a7   : > { %2654 = vst.msk [vmem:[%s5233_s26 + $0x20] sm:$0xff] %vm2649_vm1, %v2634_v22 }
 0x3a8   : > { %2663 = vst.msk [vmem:[%s5233_s26 + $0x20] sm:$0xff] %vm2658_vm2, %v4145_v49 }
 0x3aa   : > { %v2638_v12 = vpop.permute.xlu1 %2637 }
 0x3ab   : > { %2656 = vst.msk [vmem:[%s5233_s26 + $0x30] sm:$0xff] %vm2649_vm1, %v2638_v12 }
 0x3ac   : > { %2665 = vst.msk [vmem:[%s5233_s26 + $0x30] sm:$0xff] %vm2658_vm2, %v4145_v49 }
 0x3ae   : > { %v2640_v57 = vpop.permute.xlu1 %2639 }
 0x3af   : > { %2657 = vst.msk [vmem:[%s5233_s26 + $0x38] sm:$0xff] %vm2649_vm1, %v2640_v57 }
 0x3b0   : > { %2666 = vst.msk [vmem:[%s5233_s26 + $0x38] sm:$0xff] %vm2658_vm2, %v4145_v49 }
 0x3b1 PF: > { %s15_s18 = sadd.s32 1, %s4139_s18  }
 0x3b2   : > { %p12_p4 = scmp.ge.s32.totalorder %s15_s18, 4  }
 0x3b4   :  { %14 = sbr.rel (!%p12_p4) target bundleno = 1 (0x1), region = 73 }

// kernel: gat_forward.11
= control target key start
LH: loop header
LB: loop body
LE: loop exit
PB: predicated region body
PF: predicated region fallthrough
CT: control target
= control target key end

     0   :  { %s2386_s18 = smov 0   ;;  %s3004_s0 = inlined_call_operand.vmem [shape: bf16[128,128], index: 0, kind: input, shape index: {}]   ;;  %s3005_s1 = inlined_call_operand.vmem [shape: f32[128,1], index: 1, kind: input, shape index: {}]   ;;  %s3006_s2 = inlined_call_operand.vmem [shape: f32[1,128], index: 2, kind: input, shape index: {}]   ;;  %s3007_s3 = inlined_call_operand.vmem [shape: f32[128,8], index: 3, kind: input, shape index: {}]   ;;  %s3008_s4 = inlined_call_operand.vmem [shape: f32[1,8], index: 4, kind: input, shape index: {}]   ;;  %s3009_s5 = inlined_call_operand.vmem [shape: f32[128,128], index: 5, kind: output, shape index: {}]  }
   0x1 LB: > { %s1596_s19 = sadd.s32 4294967295, %s2352_s18   ;;  %p1600_p0 = scmp.ge.s32.totalorder %s2352_s18, 1  ;;  %s2352_s18 = sphi %s2386_s18, %s15_s18  }
   0x2   : > { %p199_p1 = scmp.lt.s32.totalorder %s2352_s18, 3 }
   0x4   : > { %p200_p2 = pnand %p1600_p0, %p199_p1 }
   0x5   : > { %s1601_s20 = sshll.u32 (!%p200_p2), %s1596_s19, 3  ;;  %v2354_v0 = vmov (!%p200_p2), 0   ;;  %v2405_v9 = vld [vmem:[%s3007_s3] sm:$0xff] (!%p200_p2)  ;;  %v2410_v10 = vld [vmem:[%s3007_s3 + $0x8] sm:$0xff] (!%p200_p2)  ;;  %v2415_v11 = vld [vmem:[%s3007_s3 + $0x10] sm:$0xff] (!%p200_p2)  ;;  %vm1406_vm8 = vcmask (!%p200_p2), 64512  }
   0x6   : > { %203 = sbr.rel (%p200_p2) target bundleno = 940 (0x3ac), region = 40  ;;  %2280 = vset.pattern.permute.xlu0 (!%p200_p2), %v2354_v0  ;;  %p233_p3 = scmp.lt.s32.totalorder (!%p200_p2), %s1601_s20, 15  ;;  %2281 = vset.pattern.permute.xlu1 (!%p200_p2), %v2354_v0  ;;  %v434_v12 = vand.u32 (!%p200_p2), 4294901760, %v2405_v9  ;;  %v437_v13 = vand.u32 (!%p200_p2), 4294901760, %v2410_v10  ;;  %v2422_v14 = vld [vmem:[%s3007_s3 + $0x18] sm:$0xff] (!%p200_p2)  ;;  %v440_v15 = vand.u32 (!%p200_p2), 4294901760, %v2415_v11 }
   0x7   : > { %v443_v16 = vand.u32 (!%p200_p2), 4294901760, %v2422_v14  ;;  %v1607_v19 = vld [vmem:[%s3006_s2] ss:$0 sm:$0xff] (!%p200_p2)  ;;  %vm1519_vm9 = vcmask (!%p200_p2), 1047616  }
   0x8   : > { %v2430_v17 = vpack.c.bf16 (!%p200_p2), %v437_v13, %v434_v12 }
   0x9   : > { %v2436_v18 = vpack.c.bf16 (!%p200_p2), %v443_v16, %v440_v15 }
   0xa   : > { %2135 = vmatprep.subr.bf16.mxu0 (!%p200_p2), %v2430_v17  ;;  %2039 = vmatprep.subr.bf16.mxu1 (!%p200_p2), %v2430_v17 }
   0xb   : > { %2137 = vmatpush3.bf16.msra.mxu0 (!%p200_p2), %v2430_v17  ;;  %2041 = vmatpush3.bf16.msra.mxu1 (!%p200_p2), %v2430_v17 }
   0xc   : > { %2139 = vmatprep.subr.bf16.mxu0 (!%p200_p2), %v2436_v18  ;;  %2043 = vmatprep.subr.bf16.mxu1 (!%p200_p2), %v2436_v18 }
   0xd   : > { %s3011_s20 = smov (!%p233_p3, %s1601_s20), 15 }
   0xe   : > { %s1604_s21 = sshll.u32 %s3011_s20, 3  ;;  %s1602_s8 = sshll.u32 %s3011_s20, 2 }
   0xf   : > { %s242_s24 = scalar_lea.vmem %s3005_s1, %s1604_s21  ;;  %2141 = vmatpush3.bf16.msra.mxu0 %v2436_v18  ;;  %2045 = vmatpush3.bf16.msra.mxu1 %v2436_v18  ;;  %s2450_s11 = scalar_lea.vmem %s3004_s0, %s1602_s8 }
  0x10   : > { %v282_v1 = vld [vmem:[%s242_s24] sm:$0xff]  ;;  %v284_v2 = vld [vmem:[%s242_s24 + $0x10] sm:$0xff]  ;;  %v283_v3 = vld [vmem:[%s242_s24 + $0x8] sm:$0xff]  ;;  %s2952_s23 = scalar_lea.vmem %s3009_s5, %s1604_s21 }
  0x11   : > { %293 = vperm.xlu0 %2280, %v282_v1   ;;  %303 = vperm.xlu1 %2281, %v284_v2   ;;  %v285_v4 = vld [vmem:[%s242_s24 + $0x18] sm:$0xff]  ;;  %v286_v5 = vld [vmem:[%s242_s24 + $0x20] sm:$0xff]  ;;  %v287_v6 = vld [vmem:[%s242_s24 + $0x28] sm:$0xff] }
  0x12   : > { %v288_v7 = vld [vmem:[%s242_s24 + $0x30] sm:$0xff]  ;;  %v289_v8 = vld [vmem:[%s242_s24 + $0x38] sm:$0xff]  ;;  %v1612_v20 = vld [vmem:[%s2450_s11] sm:$0xff]  }
  0x13   : > { %v1627_v25 = vld [vmem:[%s2450_s11 + $0x8] sm:$0xff]   ;;  %v1613_v26 = vunpack.c.l.bf16 %v1612_v20  ;;  %v1614_v37 = vunpack.c.h.bf16 %v1612_v20  ;;  %v1628_v38 = vld [vmem:[%s2450_s11 + $0x10] sm:$0xff]   ;;  %v1629_v51 = vld [vmem:[%s2450_s11 + $0x18] sm:$0xff]  }
  0x14   : > { %v1617_v31 = vunpack.c.l.bf16 %v1627_v25  ;;  %v1618_v44 = vunpack.c.h.bf16 %v1627_v25  ;;  %v1621_v50 = vunpack.c.l.bf16 %v1628_v38  ;;  %v1622_v57 = vunpack.c.h.bf16 %v1628_v38 }
  0x15   : > { %298 = vperm.xlu0 %2280, %v283_v3   ;;  %308 = vperm.xlu1 %2281, %v285_v4   ;;  %v1625_v63 = vunpack.c.l.bf16 %v1629_v51  ;;  %v1626_v3 = vunpack.c.h.bf16 %v1629_v51  ;;  %v2610_v51 = vsub.f32 %v2405_v9, %v434_v12 }
  0x19   : > { %313 = vperm.xlu0 %2280, %v286_v5   ;;  %318 = vperm.xlu1 %2281, %v287_v6   ;;  %v2479_v6 = vld [vmem:[%s3007_s3 + $0x20] sm:$0xff] }
  0x1d   : > { %323 = vperm.xlu0 %2280, %v288_v7   ;;  %328 = vperm.xlu1 %2281, %v289_v8   ;;  %v2484_v7 = vld [vmem:[%s3007_s3 + $0x28] sm:$0xff] }
  0x1e   : > { %v449_v20 = vand.u32 4294901760, %v2484_v7 }
  0x90   : > { %v294_v21 = vpop.permute.xlu0 %293  ;;  %v304_v22 = vpop.permute.xlu1 %303 }
  0x91   : > { %v337_v23 = vadd.f32 %v1607_v19, %v294_v21  ;;  %v339_v24 = vadd.f32 %v1607_v19, %v304_v22 }
  0x93   : > { %v353_v27 = vmul.f32 0.2, %v337_v23  ;;  %v355_v28 = vmul.f32 0.2, %v339_v24  ;;  %vm345_vm0 = vcmp.gt.f32.partialorder %v337_v23, 0.0  ;;  %vm347_vm1 = vcmp.gt.f32.partialorder %v339_v24, 0.0 }
  0x94   : > { %v299_v29 = vpop.permute.xlu0 %298  ;;  %v309_v30 = vpop.permute.xlu1 %308 }
  0x95   : > { %v338_v32 = vadd.f32 %v1607_v19, %v299_v29  ;;  %v340_v33 = vadd.f32 %v1607_v19, %v309_v30  ;;  %v361_v34 = vsel %vm345_vm0, %v337_v23, %v353_v27  ;;  %v363_v35 = vsel %vm347_vm1, %v339_v24, %v355_v28  ;;  %v2505_v23 = vld [vmem:[%s3007_s3 + $0x30] sm:$0xff]  ;;  %v2510_v24 = vld [vmem:[%s3007_s3 + $0x38] sm:$0xff]  ;;  %v2522_v28 = vld [vmem:[%s3007_s3 + $0x40] sm:$0xff] }
  0x96   : > { %v2457_v36 = vadd.f32 %v1613_v26, %v361_v34  ;;  %v2461_v43 = vadd.f32 %v1617_v31, %v363_v35  ;;  %v452_v25 = vand.u32 4294901760, %v2505_v23  ;;  %v455_v26 = vand.u32 4294901760, %v2510_v24  ;;  %v2527_v29 = vld [vmem:[%s3007_s3 + $0x48] sm:$0xff]  ;;  %v2549_v34 = vld [vmem:[%s3007_s3 + $0x58] sm:$0xff] }
  0x97   : > { %v354_v39 = vmul.f32 0.2, %v338_v32  ;;  %v356_v40 = vmul.f32 0.2, %v340_v33  ;;  %vm346_vm2 = vcmp.gt.f32.partialorder %v338_v32, 0.0  ;;  %vm348_vm3 = vcmp.gt.f32.partialorder %v340_v33, 0.0 }
  0x98   : > { %v314_v41 = vpop.permute.xlu0 %313  ;;  %377 = vmax.xlane.f32.xlu0 %v2457_v36  ;;  %v319_v42 = vpop.permute.xlu1 %318  ;;  %v2517_v27 = vpack.c.bf16 %v455_v26, %v452_v25  ;;  %v458_v30 = vand.u32 4294901760, %v2522_v28  ;;  %v461_v31 = vand.u32 4294901760, %v2527_v29 }
  0x99   : > { %v341_v45 = vadd.f32 %v1607_v19, %v314_v41  ;;  %v342_v46 = vadd.f32 %v1607_v19, %v319_v42  ;;  %v362_v47 = vsel %vm346_vm2, %v338_v32, %v354_v39  ;;  %v364_v48 = vsel %vm348_vm3, %v340_v33, %v356_v40  ;;  %v2544_v33 = vld [vmem:[%s3007_s3 + $0x50] sm:$0xff]  ;;  %v2566_v39 = vld [vmem:[%s3007_s3 + $0x60] sm:$0xff]  ;;  %v2571_v40 = vld [vmem:[%s3007_s3 + $0x68] sm:$0xff] }
  0x9a   : > { %v2463_v49 = vadd.f32 %v1614_v37, %v362_v47  ;;  %v2468_v56 = vadd.f32 %v1618_v44, %v364_v48  ;;  %v2539_v32 = vpack.c.bf16 %v461_v31, %v458_v30  ;;  %v464_v35 = vand.u32 4294901760, %v2544_v33 }
  0x9b   : > { %v357_v52 = vmul.f32 0.2, %v341_v45  ;;  %v358_v53 = vmul.f32 0.2, %v342_v46  ;;  %vm349_vm4 = vcmp.gt.f32.partialorder %v341_v45, 0.0  ;;  %vm350_vm5 = vcmp.gt.f32.partialorder %v342_v46, 0.0 }
  0x9c   : > { %v324_v54 = vpop.permute.xlu0 %323  ;;  %379 = vmax.xlane.f32.xlu1 %v2463_v49  ;;  %381 = vmax.xlane.f32.xlu0 %v2461_v43  ;;  %v329_v55 = vpop.permute.xlu1 %328  ;;  %v467_v37 = vand.u32 4294901760, %v2549_v34  ;;  %v470_v41 = vand.u32 4294901760, %v2566_v39  ;;  %v473_v42 = vand.u32 4294901760, %v2571_v40 }
  0x9d   : > { %v343_v58 = vadd.f32 %v1607_v19, %v324_v54  ;;  %v344_v59 = vadd.f32 %v1607_v19, %v329_v55  ;;  %v365_v60 = vsel %vm349_vm4, %v341_v45, %v357_v52  ;;  %v366_v61 = vsel %vm350_vm5, %v342_v46, %v358_v53  ;;  %v2588_v45 = vld [vmem:[%s3007_s3 + $0x70] sm:$0xff]  ;;  %v2593_v46 = vld [vmem:[%s3007_s3 + $0x78] sm:$0xff] }
  0x9e   : > { %v2470_v62 = vadd.f32 %v1621_v50, %v365_v60  ;;  %v2474_v2 = vadd.f32 %v1622_v57, %v366_v61  ;;  %v446_v19 = vand.u32 4294901760, %v2479_v6  ;;  %v2561_v38 = vpack.c.bf16 %v467_v37, %v464_v35 }
  0x9f   : > { %v359_v0 = vmul.f32 0.2, %v343_v58  ;;  %v360_v1 = vmul.f32 0.2, %v344_v59  ;;  %vm351_vm6 = vcmp.gt.f32.partialorder %v343_v58, 0.0  ;;  %vm352_vm7 = vcmp.gt.f32.partialorder %v344_v59, 0.0 }
  0xa0   : > { %385 = vmax.xlane.f32.xlu1 %v2470_v62  ;;  %383 = vmax.xlane.f32.xlu0 %v2468_v56  ;;  %v2498_v22 = vpack.c.bf16 %v449_v20, %v446_v19  ;;  %v2583_v44 = vpack.c.bf16 %v473_v42, %v470_v41  ;;  %v476_v47 = vand.u32 4294901760, %v2588_v45  ;;  %v479_v48 = vand.u32 4294901760, %v2593_v46 }
  0xa1   : > { %v367_v4 = vsel %vm351_vm6, %v343_v58, %v359_v0  ;;  %v368_v5 = vsel %vm352_vm7, %v344_v59, %v360_v1  ;;  %v2615_v52 = vsub.f32 %v2410_v10, %v437_v13  ;;  %v597_v53 = vand.u32 4294901760, %v2610_v51 }
  0xa2   : > { %v2486_v8 = vadd.f32 %v1625_v63, %v367_v4  ;;  %v2492_v21 = vadd.f32 %v1626_v3, %v368_v5  ;;  %2143 = vmatprep.subr.bf16.mxu0 %v2498_v22  ;;  %2047 = vmatprep.subr.bf16.mxu1 %v2498_v22  ;;  %v2605_v50 = vpack.c.bf16 %v479_v48, %v476_v47 }
  0xa3   : > { %2145 = vmatpush3.bf16.msra.mxu0 %v2498_v22  ;;  %2049 = vmatpush3.bf16.msra.mxu1 %v2498_v22  ;;  %v604_v54 = vand.u32 4294901760, %v2615_v52  ;;  %v598_v9 = vsub.f32 %v2610_v51, %v597_v53  ;;  %v624_v58 = vsub.f32 %v2479_v6, %v446_v19  ;;  %v631_v59 = vsub.f32 %v2484_v7, %v449_v20 }
  0xa4   : > { %389 = vmax.xlane.f32.xlu1 %v2486_v8  ;;  %387 = vmax.xlane.f32.xlu0 %v2474_v2  ;;  %v638_v0 = vsub.f32 %v2505_v23, %v452_v25  ;;  %v645_v1 = vsub.f32 %v2510_v24, %v455_v26  ;;  %v652_v7 = vsub.f32 %v2522_v28, %v458_v30 }
  0xa5   : > { %2147 = vmatprep.subr.bf16.mxu0 %v2517_v27  ;;  %2051 = vmatprep.subr.bf16.mxu1 %v2517_v27  ;;  %v2623_v55 = vpack.c.bf16 %v604_v54, %v597_v53  ;;  %v605_v12 = vsub.f32 %v2615_v52, %v604_v54  ;;  %v599_v10 = vand.u32 4294901760, %v598_v9  ;;  %v625_v60 = vand.u32 4294901760, %v624_v58 }
  0xa6   : > { %v632_v61 = vand.u32 4294901760, %v631_v59  ;;  %v639_v53 = vand.u32 4294901760, %v638_v0  ;;  %v646_v54 = vand.u32 4294901760, %v645_v1  ;;  %v659_v23 = vsub.f32 %v2527_v29, %v461_v31 }
  0xa7   : > { %2149 = vmatpush3.bf16.msra.mxu0 %v2517_v27  ;;  %2053 = vmatpush3.bf16.msra.mxu1 %v2517_v27  ;;  %v606_v13 = vand.u32 4294901760, %v605_v12  ;;  %v626_v63 = vsub.f32 %v624_v58, %v625_v60  ;;  %v653_v26 = vand.u32 4294901760, %v652_v7  ;;  %v673_v28 = vsub.f32 %v2549_v34, %v467_v37 }
  0xa8   : > { %391 = vmax.xlane.f32.xlu0 %v2492_v21  ;;  %2151 = vmatprep.subr.bf16.mxu0 %v2539_v32  ;;  %v2639_v3 = vpack.c.bf16 %v632_v61, %v625_v60  ;;  %v633_v4 = vsub.f32 %v631_v59, %v632_v61  ;;  %v2641_v19 = vpack.c.bf16 %v646_v54, %v639_v53 }
  0xa9   : > { %2055 = vmatprep.subr.bf16.mxu1 %v2539_v32  ;;  %v2628_v57 = vpack.c.bf16 %v606_v13, %v599_v10  ;;  %v627_v5 = vand.u32 4294901760, %v626_v63  ;;  %v640_v9 = vsub.f32 %v638_v0, %v639_v53  ;;  %v647_v12 = vsub.f32 %v645_v1, %v646_v54 }
  0xaa   : > { %v634_v6 = vand.u32 4294901760, %v633_v4  ;;  %v660_v10 = vand.u32 4294901760, %v659_v23  ;;  %v654_v60 = vsub.f32 %v652_v7, %v653_v26  ;;  %v666_v61 = vsub.f32 %v2544_v33, %v464_v35 }
  0xab   : > { %2153 = vmatpush3.bf16.msra.mxu0 %v2539_v32  ;;  %2057 = vmatpush3.bf16.msra.mxu1 %v2539_v32  ;;  %v641_v24 = vand.u32 4294901760, %v640_v9  ;;  %v648_v25 = vand.u32 4294901760, %v647_v12  ;;  %v674_v31 = vand.u32 4294901760, %v673_v28  ;;  %v680_v9 = vsub.f32 %v2566_v39, %v470_v41 }
  0xac   : > { %2155 = vmatprep.subr.bf16.mxu0 %v2561_v38  ;;  %2059 = vmatprep.subr.bf16.mxu1 %v2561_v38  ;;  %v2646_v20 = vpack.c.bf16 %v634_v6, %v627_v5  ;;  %v2659_v30 = vpack.c.bf16 %v660_v10, %v653_v26  ;;  %v661_v63 = vsub.f32 %v659_v23, %v660_v10  ;;  %v655_v4 = vand.u32 4294901760, %v654_v60 }
  0xad   : > { %v2651_v13 = vpack.c.bf16 %v648_v25, %v641_v24  ;;  %v667_v29 = vand.u32 4294901760, %v666_v61  ;;  %v675_v6 = vsub.f32 %v673_v28, %v674_v31  ;;  %v687_v34 = vsub.f32 %v2571_v40, %v473_v42 }
  0xae   : > { %v662_v5 = vand.u32 4294901760, %v661_v63  ;;  %v681_v12 = vand.u32 4294901760, %v680_v9  ;;  %v694_v10 = vsub.f32 %v2588_v45, %v476_v47  ;;  %v701_v39 = vsub.f32 %v2593_v46, %v479_v48 }
  0xaf   : > { %2157 = vmatpush3.bf16.msra.mxu0 %v2561_v38  ;;  %2061 = vmatpush3.bf16.msra.mxu1 %v2561_v38  ;;  %v2661_v53 = vpack.c.bf16 %v674_v31, %v667_v29  ;;  %v668_v54 = vsub.f32 %v666_v61, %v667_v29  ;;  %v676_v37 = vand.u32 4294901760, %v675_v6  ;;  %v688_v24 = vand.u32 4294901760, %v687_v34 }
  0xb0   : > { %2159 = vmatprep.subr.bf16.mxu0 %v2583_v44  ;;  %2063 = vmatprep.subr.bf16.mxu1 %v2583_v44  ;;  %v2666_v33 = vpack.c.bf16 %v662_v5, %v655_v4  ;;  %v682_v26 = vsub.f32 %v680_v9, %v681_v12  ;;  %v695_v40 = vand.u32 4294901760, %v694_v10  ;;  %v702_v42 = vand.u32 4294901760, %v701_v39 }
  0xb1   : > { %v669_v35 = vand.u32 4294901760, %v668_v54  ;;  %v2679_v41 = vpack.c.bf16 %v688_v24, %v681_v12  ;;  %v689_v60 = vsub.f32 %v687_v34, %v688_v24  ;;  %v2689_v46 = vpack.c.bf16 %v2615_v52, %v2610_v51 }
  0xb2   : > { %v683_v63 = vand.u32 4294901760, %v682_v26  ;;  %v2681_v29 = vpack.c.bf16 %v702_v42, %v695_v40  ;;  %v696_v31 = vsub.f32 %v694_v10, %v695_v40  ;;  %v703_v5 = vsub.f32 %v701_v39, %v702_v42 }
  0xb3   : > { %2161 = vmatpush3.bf16.msra.mxu0 %v2583_v44  ;;  %2065 = vmatpush3.bf16.msra.mxu1 %v2583_v44  ;;  %v2671_v25 = vpack.c.bf16 %v676_v37, %v669_v35  ;;  %v690_v4 = vand.u32 4294901760, %v689_v60  ;;  %v2691_v47 = vpack.c.bf16 %v631_v59, %v624_v58  ;;  %v2693_v48 = vpack.c.bf16 %v645_v1, %v638_v0 }
  0xb4   : > { %2163 = vmatprep.subr.bf16.mxu0 %v2605_v50  ;;  %2067 = vmatprep.subr.bf16.mxu1 %v2605_v50  ;;  %v697_v6 = vand.u32 4294901760, %v696_v31  ;;  %v704_v35 = vand.u32 4294901760, %v703_v5  ;;  %v2695_v37 = vpack.c.bf16 %v659_v23, %v652_v7  ;;  %v2697_v12 = vpack.c.bf16 %v673_v28, %v666_v61 }
  0xb5   : > { %v2683_v54 = vpack.c.bf16 %v690_v4, %v683_v63  ;;  %v2699_v24 = vpack.c.bf16 %v687_v34, %v680_v9  ;;  %v2701_v26 = vpack.c.bf16 %v701_v39, %v694_v10 }
  0xb6   : > { %v2685_v45 = vpack.c.bf16 %v704_v35, %v697_v6 }
  0xb7   : > { %2165 = vmatpush3.bf16.msra.mxu0 %v2605_v50  ;;  %2069 = vmatpush3.bf16.msra.mxu1 %v2605_v50 }
  0xb8   : > { %2167 = vmatprep.subr.bf16.mxu0 %v2623_v55  ;;  %2071 = vmatprep.subr.bf16.mxu1 %v2628_v57 }
 0x125   : > { %v378_v60 = vpop.xlane.xlu0 %377 }
 0x126   : > { %v393_v63 = vsub.f32 %v2457_v36, %v378_v60 }
 0x128   : > { %v401_v40 = vmul.f32 1.442695, %v393_v63 }
 0x129   : > { %v380_v42 = vpop.xlane.xlu1 %379  ;;  %v382_v4 = vpop.xlane.xlu0 %381 }
 0x12a   : > { %2282 = vpow2.f32 %v401_v40  ;;  %v394_v51 = vsub.f32 %v2463_v49, %v380_v42  ;;  %v395_v52 = vsub.f32 %v2461_v43, %v382_v4  ;;  %v2713_v43 = vsub.f32 %v2415_v11, %v440_v15 }
 0x12c   : > { %v403_v58 = vmul.f32 1.442695, %v394_v51  ;;  %v405_v59 = vmul.f32 1.442695, %v395_v52  ;;  %v611_v11 = vand.u32 4294901760, %v2713_v43 }
 0x12d   : > { %v386_v0 = vpop.xlane.xlu1 %385  ;;  %v384_v1 = vpop.xlane.xlu0 %383 }
 0x12e   : > { %2284 = vpow2.f32 %v403_v58  ;;  %v397_v7 = vsub.f32 %v2470_v62, %v386_v0  ;;  %v396_v23 = vsub.f32 %v2468_v56, %v384_v1  ;;  %v2718_v56 = vsub.f32 %v2422_v14, %v443_v16 }
 0x12f   : > { %2286 = vpow2.f32 %v405_v59  ;;  %v612_v42 = vsub.f32 %v2713_v43, %v611_v11 }
 0x130   : > { %v409_v61 = vmul.f32 1.442695, %v397_v7  ;;  %v407_v36 = vmul.f32 1.442695, %v396_v23  ;;  %v618_v15 = vand.u32 4294901760, %v2718_v56 }
 0x131   : > { %v390_v28 = vpop.xlane.xlu1 %389  ;;  %v388_v9 = vpop.xlane.xlu0 %387 }
 0x132   : > { %2288 = vpow2.f32 %v409_v61  ;;  %v399_v34 = vsub.f32 %v2486_v8, %v390_v28  ;;  %v398_v49 = vsub.f32 %v2474_v2, %v388_v9  ;;  %v619_v4 = vsub.f32 %v2718_v56, %v618_v15 }
 0x133   : > { %2290 = vpow2.f32 %v407_v36  ;;  %v2170_v1 = vpack.c.bf16 %v618_v15, %v611_v11  ;;  %v613_v9 = vand.u32 4294901760, %v612_v42 }
 0x134   : > { %v2283_v62 = vpop.eup %2282  ;;  %v413_v10 = vmul.f32 1.442695, %v399_v34  ;;  %v411_v39 = vmul.f32 1.442695, %v398_v49  ;;  %v620_v34 = vand.u32 4294901760, %v619_v4 }
 0x135   : > { %417 = vadd.xlane.f32.xlu1 %v2283_v62  ;;  %v392_v31 = vpop.xlane.xlu0 %391  ;;  %v2720_v5 = vand.u32 4294901760, %v2283_v62 }
 0x136   : > { %2292 = vpow2.f32 %v413_v10  ;;  %v400_v2 = vsub.f32 %v2492_v21, %v392_v31 }
 0x137   : > { %2294 = vpow2.f32 %v411_v39  ;;  %v2724_v8 = vsub.f32 %v2283_v62, %v2720_v5 }
 0x138   : > { %v2285_v14 = vpop.eup %2284  ;;  %v415_v16 = vmul.f32 1.442695, %v400_v2 }
 0x139   : > { %v2287_v6 = vpop.eup %2286  ;;  %419 = vadd.xlane.f32.xlu0 %v2285_v14  ;;  %v516_v35 = vand.u32 4294901760, %v2724_v8  ;;  %v2729_v60 = vand.u32 4294901760, %v2285_v14 }
 0x13a   : > { %2296 = vpow2.f32 %v415_v16  ;;  %421 = vadd.xlane.f32.xlu1 %v2287_v6  ;;  %v2731_v63 = vand.u32 4294901760, %v2287_v6 }
 0x13b   : > { %1938 = vmatprep.mubr.f32.mxu0 %v516_v35  ;;  %v517_v21 = vsub.f32 %v2724_v8, %v516_v35  ;;  %v2735_v40 = vsub.f32 %v2285_v14, %v2729_v60 }
 0x13c   : > { %v2289_v51 = vpop.eup %2288  ;;  %v2740_v52 = vsub.f32 %v2287_v6, %v2731_v63 }
 0x13d   : > { %v2291_v58 = vpop.eup %2290  ;;  %v518_v59 = vand.u32 4294901760, %v517_v21  ;;  %v526_v0 = vand.u32 4294901760, %v2735_v40  ;;  %v2743_v7 = vand.u32 4294901760, %v2289_v51 }
 0x13e   : > { %425 = vadd.xlane.f32.xlu1 %v2289_v51  ;;  %423 = vadd.xlane.f32.xlu0 %v2291_v58  ;;  %v536_v23 = vand.u32 4294901760, %v2740_v52  ;;  %v2746_v61 = vand.u32 4294901760, %v2291_v58 }
 0x13f   : > { %1806 = vmatprep.mubr.f32.mxu1 %v518_v59  ;;  %1939 = vmatmul.mubr.f32.vlgmr.msra.gmra.mrb[0].mxu0 %v526_v0  ;;  %v527_v36 = vsub.f32 %v2735_v40, %v526_v0  ;;  %v2750_v28 = vsub.f32 %v2289_v51, %v2743_v7 }
 0x140   : > { %v2293_v49 = vpop.eup %2292  ;;  %2169 = vmatpush3.bf16.msra.mxu0 %v2623_v55  ;;  %1941 = vmatprep.mubr.f32.mxu0 %v536_v23  ;;  %v2754_v62 = vsub.f32 %v2291_v58, %v2746_v61  ;;  %v537_v10 = vsub.f32 %v2740_v52, %v536_v23  ;;  %v2074_v55 = vpack.c.bf16 %v620_v34, %v613_v9 }
 0x141   : > { %v2295_v39 = vpop.eup %2294  ;;  %2171 = vmatprep.subr.bf16.mxu0 %v2170_v1  ;;  %v528_v31 = vand.u32 4294901760, %v527_v36  ;;  %v556_v2 = vand.u32 4294901760, %v2750_v28  ;;  %v2758_v11 = vand.u32 4294901760, %v2293_v49 }
 0x142   : > { %429 = vadd.xlane.f32.xlu1 %v2293_v49  ;;  %427 = vadd.xlane.f32.xlu0 %v2295_v39  ;;  %v546_v15 = vand.u32 4294901760, %v2754_v62  ;;  %v538_v14 = vand.u32 4294901760, %v537_v10  ;;  %v2761_v16 = vand.u32 4294901760, %v2295_v39 }
 0x143   : > { %1807 = vmatmul.mubr.f32.vlgmr.msra.gmra.mrb[0].mxu1 %v528_v31  ;;  %v557_v6 = vsub.f32 %v2750_v28, %v556_v2  ;;  %v2765_v35 = vsub.f32 %v2293_v49, %v2758_v11 }
 0x144   : > { %v2297_v21 = vpop.eup %2296  ;;  %2073 = vmatpush3.bf16.msra.mxu1 %v2628_v57  ;;  %1942 = vmatmul.mubr.f32.gmra.mrb[2].mxu0 %v546_v15  ;;  %v547_v42 = vsub.f32 %v2754_v62, %v546_v15  ;;  %v2770_v4 = vsub.f32 %v2295_v39, %v2761_v16 }
 0x145   : > { %2173 = vmatpush3.bf16.msra.mxu0 %v2170_v1  ;;  %1809 = vmatprep.mubr.f32.mxu1 %v538_v14  ;;  %v576_v51 = vand.u32 4294901760, %v2765_v35  ;;  %v2773_v58 = vand.u32 4294901760, %v2297_v21  ;;  %v558_v23 = vand.u32 4294901760, %v557_v6 }
 0x146   : > { %1944 = vmatprep.mubr.f32.mxu0 %v556_v2  ;;  %431 = vadd.xlane.f32.xlu0 %v2297_v21  ;;  %v548_v59 = vand.u32 4294901760, %v547_v42  ;;  %v566_v0 = vand.u32 4294901760, %v2770_v4 }
 0x147   : > { %2075 = vmatprep.subr.bf16.mxu1 %v2074_v55  ;;  %2175 = vmatprep.subr.bf16.mxu0 %v2639_v3  ;;  %v2778_v57 = vsub.f32 %v2297_v21, %v2773_v58  ;;  %v577_v36 = vsub.f32 %v2765_v35, %v576_v51 }
 0x148   : > { %1810 = vmatmul.mubr.f32.gmra.mrb[2].mxu1 %v548_v59  ;;  %1945 = vmatmul.mubr.f32.gmra.mrb[4].mxu0 %v566_v0  ;;  %v567_v1 = vsub.f32 %v2770_v4, %v566_v0 }
 0x149   : > { %2077 = vmatpush3.bf16.msra.mxu1 %v2074_v55  ;;  %2177 = vmatpush3.bf16.msra.mxu0 %v2639_v3  ;;  %v586_v9 = vand.u32 4294901760, %v2778_v57  ;;  %v578_v49 = vand.u32 4294901760, %v577_v36  ;;  %v2106_v3 = vpack.c.bf16 %v2718_v56, %v2713_v43 }
 0x14a   : > { %1812 = vmatprep.mubr.f32.mxu1 %v558_v23  ;;  %1947 = vmatprep.mubr.f32.mxu0 %v576_v51  ;;  %v568_v34 = vand.u32 4294901760, %v567_v1 }
 0x14b   : > { %2079 = vmatprep.subr.bf16.mxu1 %v2646_v20  ;;  %2179 = vmatprep.subr.bf16.mxu0 %v2641_v19  ;;  %v587_v10 = vsub.f32 %v2778_v57, %v586_v9 }
 0x14c   : > { %1813 = vmatmul.mubr.f32.gmra.mrb[4].mxu1 %v568_v34  ;;  %1948 = vmatmul.mubr.f32.gmra.mrb[6].mxu0 %v586_v9 }
 0x14d   : > { %2081 = vmatpush3.bf16.msra.mxu1 %v2646_v20  ;;  %2181 = vmatpush3.bf16.msra.mxu0 %v2641_v19  ;;  %v588_v39 = vand.u32 4294901760, %v587_v10 }
 0x14e   : > { %1815 = vmatprep.mubr.f32.mxu1 %v578_v49  ;;  %1982 = vmatprep.mubr.f32.mxu0 %v2720_v5 }
 0x14f   : > { %2083 = vmatprep.subr.bf16.mxu1 %v2651_v13  ;;  %2183 = vmatprep.subr.bf16.mxu0 %v2659_v30 }
 0x150   : > { %1816 = vmatmul.mubr.f32.gmra.mrb[6].mxu1 %v588_v39 }
 0x151   : > { %2085 = vmatpush3.bf16.msra.mxu1 %v2651_v13  ;;  %2185 = vmatpush3.bf16.msra.mxu0 %v2659_v30 }
 0x152   : > { %1850 = vmatprep.mubr.f32.mxu1 %v2720_v5  ;;  %2087 = vmatprep.subr.bf16.mxu1 %v2666_v33 }
 0x153   : > { %2187 = vmatprep.subr.bf16.mxu0 %v2661_v53 }
 0x155   : > { %2089 = vmatpush3.bf16.msra.mxu1 %v2666_v33  ;;  %2189 = vmatpush3.bf16.msra.mxu0 %v2661_v53 }
 0x156   : > { %2091 = vmatprep.subr.bf16.mxu1 %v2671_v25  ;;  %2191 = vmatprep.subr.bf16.mxu0 %v2679_v41 }
 0x159   : > { %2093 = vmatpush3.bf16.msra.mxu1 %v2671_v25  ;;  %2193 = vmatpush3.bf16.msra.mxu0 %v2679_v41  ;;  %v1608_v41 = vld [vmem:[%s3008_s4] ss:$0 sm:$0xff] }
 0x15a   : > { %2095 = vmatprep.subr.bf16.mxu1 %v2683_v54  ;;  %2195 = vmatprep.subr.bf16.mxu0 %v2681_v29 }
 0x15d   : > { %2097 = vmatpush3.bf16.msra.mxu1 %v2683_v54  ;;  %2197 = vmatpush3.bf16.msra.mxu0 %v2681_v29 }
 0x15e   : > { %2099 = vmatprep.subr.bf16.mxu1 %v2685_v45  ;;  %2199 = vmatprep.subr.bf16.mxu0 %v2430_v17 }
 0x160   : > { %1983 = vmatmul.mubr.f32.vlgmr.msra.gmra.mrb[0].mxu0 %v2729_v60 }
 0x161   : > { %2101 = vmatpush3.bf16.msra.mxu1 %v2685_v45  ;;  %1985 = vmatprep.mubr.f32.mxu0 %v2731_v63 }
 0x162   : > { %2201 = vmatpush3.bf16.msra.mxu0 %v2430_v17  ;;  %2103 = vmatprep.subr.bf16.mxu1 %v2689_v46 }
 0x163   : > { %2203 = vmatprep.subr.bf16.mxu0 %v2436_v18 }
 0x164   : > { %1851 = vmatmul.mubr.f32.vlgmr.msra.gmra.mrb[0].mxu1 %v2729_v60  ;;  %1986 = vmatmul.mubr.f32.gmra.mrb[2].mxu0 %v2746_v61 }
 0x165   : > { %1853 = vmatprep.mubr.f32.mxu1 %v2731_v63  ;;  %2105 = vmatpush3.bf16.msra.mxu1 %v2689_v46 }
 0x166   : > { %1988 = vmatprep.mubr.f32.mxu0 %v2743_v7  ;;  %2205 = vmatpush3.bf16.msra.mxu0 %v2436_v18 }
 0x167   : > { %2107 = vmatprep.subr.bf16.mxu1 %v2106_v3  ;;  %2207 = vmatprep.subr.bf16.mxu0 %v2498_v22 }
 0x168   : > { %1854 = vmatmul.mubr.f32.gmra.mrb[2].mxu1 %v2746_v61  ;;  %1989 = vmatmul.mubr.f32.gmra.mrb[4].mxu0 %v2761_v16 }
 0x169   : > { %1856 = vmatprep.mubr.f32.mxu1 %v2743_v7  ;;  %2109 = vmatpush3.bf16.msra.mxu1 %v2106_v3 }
 0x16a   : > { %1991 = vmatprep.mubr.f32.mxu0 %v2758_v11  ;;  %2209 = vmatpush3.bf16.msra.mxu0 %v2498_v22 }
 0x16b   : > { %2111 = vmatprep.subr.bf16.mxu1 %v2691_v47  ;;  %2211 = vmatprep.subr.bf16.mxu0 %v2517_v27 }
 0x16c   : > { %1857 = vmatmul.mubr.f32.gmra.mrb[4].mxu1 %v2761_v16  ;;  %1992 = vmatmul.mubr.f32.gmra.mrb[6].mxu0 %v2773_v58 }
 0x16d   : > { %1859 = vmatprep.mubr.f32.mxu1 %v2758_v11  ;;  %2113 = vmatpush3.bf16.msra.mxu1 %v2691_v47 }
 0x16e   : > { %2213 = vmatpush3.bf16.msra.mxu0 %v2517_v27  ;;  %2026 = vmatprep.mubr.f32.mxu0 %v2720_v5 }
 0x16f   : > { %2115 = vmatprep.subr.bf16.mxu1 %v2693_v48  ;;  %2215 = vmatprep.subr.bf16.mxu0 %v2539_v32 }
 0x170   : > { %1860 = vmatmul.mubr.f32.gmra.mrb[6].mxu1 %v2773_v58 }
 0x171   : > { %2117 = vmatpush3.bf16.msra.mxu1 %v2693_v48  ;;  %1894 = vmatprep.mubr.f32.mxu1 %v2724_v8 }
 0x172   : > { %2217 = vmatpush3.bf16.msra.mxu0 %v2539_v32  ;;  %2119 = vmatprep.subr.bf16.mxu1 %v2695_v37 }
 0x173   : > { %2219 = vmatprep.subr.bf16.mxu0 %v2561_v38 }
 0x175   : > { %2121 = vmatpush3.bf16.msra.mxu1 %v2695_v37 }
 0x176   : > { %2221 = vmatpush3.bf16.msra.mxu0 %v2561_v38  ;;  %2123 = vmatprep.subr.bf16.mxu1 %v2697_v12 }
 0x177   : > { %2223 = vmatprep.subr.bf16.mxu0 %v2583_v44 }
 0x179   : > { %2125 = vmatpush3.bf16.msra.mxu1 %v2697_v12 }
 0x17a   : > { %2225 = vmatpush3.bf16.msra.mxu0 %v2583_v44  ;;  %2127 = vmatprep.subr.bf16.mxu1 %v2699_v24 }
 0x17b   : > { %2227 = vmatprep.subr.bf16.mxu0 %v2605_v50 }
 0x17d   : > { %2129 = vmatpush3.bf16.msra.mxu1 %v2699_v24 }
 0x17e   : > { %2229 = vmatpush3.bf16.msra.mxu0 %v2605_v50  ;;  %2131 = vmatprep.subr.bf16.mxu1 %v2701_v26 }
 0x181   : > { %2027 = vmatmul.mubr.f32.vlgmr.msra.gmra.mrb[0].mxu0 %v2729_v60  ;;  %2133 = vmatpush3.bf16.msra.mxu1 %v2701_v26 }
 0x182   : > { %2029 = vmatprep.mubr.f32.mxu0 %v2731_v63 }
 0x184   : > { %1895 = vmatmul.mubr.f32.vlgmr.msra.gmra.mrb[0].mxu1 %v2735_v40 }
 0x185   : > { %2030 = vmatmul.mubr.f32.gmra.mrb[2].mxu0 %v2746_v61  ;;  %1897 = vmatprep.mubr.f32.mxu1 %v2740_v52 }
 0x186   : > { %2032 = vmatprep.mubr.f32.mxu0 %v2743_v7 }
 0x188   : > { %1898 = vmatmul.mubr.f32.gmra.mrb[2].mxu1 %v2754_v62 }
 0x189   : > { %2033 = vmatmul.mubr.f32.gmra.mrb[4].mxu0 %v2761_v16  ;;  %1900 = vmatprep.mubr.f32.mxu1 %v2750_v28 }
 0x18a   : > { %2035 = vmatprep.mubr.f32.mxu0 %v2758_v11 }
 0x18c   : > { %1901 = vmatmul.mubr.f32.gmra.mrb[4].mxu1 %v2770_v4 }
 0x18d   : > { %2036 = vmatmul.mubr.f32.gmra.mrb[6].mxu0 %v2773_v58  ;;  %1903 = vmatprep.mubr.f32.mxu1 %v2765_v35 }
 0x190   : > { %1904 = vmatmul.mubr.f32.gmra.mrb[6].mxu1 %v2778_v57 }
 0x1c2   : > { %v418_v18 = vpop.xlane.xlu1 %417 }
 0x1c6   : > { %v420_v17 = vpop.xlane.xlu0 %419 }
 0x1c7   : > { %v422_v27 = vpop.xlane.xlu1 %421  ;;  %2298 = vrcp.f32 %v420_v17 }
 0x1c8   : > { %2300 = vrcp.f32 %v418_v18 }
 0x1cb   : > { %v424_v22 = vpop.xlane.xlu0 %423  ;;  %v426_v38 = vpop.xlane.xlu1 %425 }
 0x1cc   : > { %2302 = vrcp.f32 %v424_v22 }
 0x1cd   : > { %2304 = vrcp.f32 %v422_v27 }
 0x1cf   : > { %v428_v32 = vpop.xlane.xlu0 %427  ;;  %v430_v25 = vpop.xlane.xlu1 %429 }
 0x1d0   : > { %2306 = vrcp.f32 %v428_v32 }
 0x1d1   : > { %2308 = vrcp.f32 %v426_v38  ;;  %v2299_v33 = vpop.eup %2298 }
 0x1d2   : > { %v2301_v45 = vpop.eup %2300 }
 0x1d3   : > { %v432_v19 = vpop.xlane.xlu0 %431 }
 0x1d4   : > { %2310 = vrcp.f32 %v432_v19 }
 0x1d5   : > { %2312 = vrcp.f32 %v430_v25 }
 0x1d6   : > { %v2303_v43 = vpop.eup %2302 }
 0x1d7   : > { %v2305_v60 = vpop.eup %2304 }
 0x1da   : > { %v2307_v11 = vpop.eup %2306 }
 0x1db   : > { %v2309_v55 = vpop.eup %2308 }
 0x1de   : > { %v2311_v0 = vpop.eup %2310 }
 0x1df   : > { %v2313_v36 = vpop.eup %2312 }
 0x254   : > { %v2028_v44 = vpop.f32.mrb[0].mxu0 }
 0x255   : > { %v1329_v50 = vpop.f32.mrb[1].mxu0 }
 0x257   : > { %v1896_v20 = vpop.f32.mrb[0].mxu1 }
 0x258   : > { %v2230_v13 = vadd.f32 %v2028_v44, %v1896_v20  ;;  %v2031_v30 = vpop.f32.mrb[2].mxu0  ;;  %v887_v53 = vpop.f32.mrb[1].mxu1 }
 0x259   : > { %v2231_v29 = vadd.f32 %v1329_v50, %v887_v53  ;;  %v1341_v54 = vpop.f32.mrb[3].mxu0 }
 0x25a   : > { %v1384_v46 = vmul.f32 %v2299_v33, %v2230_v13 }
 0x25b   : > { %v1383_v47 = vmul.f32 %v2301_v45, %v2231_v29  ;;  %v1899_v48 = vpop.f32.mrb[2].mxu1 }
 0x25c   : > { %v2874_v37 = vadd.f32 %v1608_v41, %v1384_v46  ;;  %v2232_v12 = vadd.f32 %v2031_v30, %v1899_v48  ;;  %v2034_v24 = vpop.f32.mrb[4].mxu0  ;;  %v901_v26 = vpop.f32.mrb[3].mxu1 }
 0x25d   : > { %v2876_v56 = vadd.f32 %v1608_v41, %v1383_v47  ;;  %v2233_v5 = vadd.f32 %v1341_v54, %v901_v26  ;;  %v1353_v8 = vpop.f32.mrb[5].mxu0 }
 0x25e   : > { %v1386_v63 = vmul.f32 %v2303_v43, %v2232_v12  ;;  %v1410_v40 = vsel %vm1406_vm8, %v2874_v37, -inf }
 0x25f   : > { %v1385_v52 = vmul.f32 %v2305_v60, %v2233_v5  ;;  %v1902_v7 = vpop.f32.mrb[4].mxu1  ;;  %1411 = vmax.xlane.f32.xlu0 %v1410_v40  ;;  %v1407_v61 = vsel %vm1406_vm8, %v2876_v56, -inf }
 0x260   : > { %v2882_v28 = vadd.f32 %v1608_v41, %v1386_v63  ;;  %v2234_v62 = vadd.f32 %v2034_v24, %v1902_v7  ;;  %v2037_v31 = vpop.f32.mrb[6].mxu0  ;;  %1408 = vmax.xlane.f32.xlu1 %v1407_v61  ;;  %v915_v2 = vpop.f32.mrb[5].mxu1 }
 0x261   : > { %v2884_v15 = vadd.f32 %v1608_v41, %v1385_v52  ;;  %v1365_v14 = vpop.f32.mrb[7].mxu0  ;;  %v2235_v16 = vadd.f32 %v1353_v8, %v915_v2 }
 0x262   : > { %v1388_v6 = vmul.f32 %v2307_v11, %v2234_v62  ;;  %v1416_v35 = vsel %vm1406_vm8, %v2882_v28, -inf }
 0x263   : > { %v1387_v21 = vmul.f32 %v2309_v55, %v2235_v16  ;;  %v1905_v42 = vpop.f32.mrb[6].mxu1  ;;  %1417 = vmax.xlane.f32.xlu0 %v1416_v35  ;;  %v1413_v4 = vsel %vm1406_vm8, %v2884_v15, -inf }
 0x264   : > { %v2890_v51 = vadd.f32 %v1608_v41, %v1388_v6  ;;  %v2236_v58 = vadd.f32 %v2037_v31, %v1905_v42  ;;  %1414 = vmax.xlane.f32.xlu1 %v1413_v4  ;;  %v929_v59 = vpop.f32.mrb[7].mxu1 }
 0x265   : > { %v2892_v23 = vadd.f32 %v1608_v41, %v1387_v21  ;;  %v2237_v57 = vadd.f32 %v1365_v14, %v929_v59 }
 0x266   : > { %v1390_v1 = vmul.f32 %v2311_v0, %v2236_v58  ;;  %v1422_v9 = vsel %vm1406_vm8, %v2890_v51, -inf }
 0x267   : > { %v1389_v34 = vmul.f32 %v2313_v36, %v2237_v57  ;;  %1423 = vmax.xlane.f32.xlu0 %v1422_v9  ;;  %v1419_v49 = vsel %vm1406_vm8, %v2892_v23, -inf }
 0x268   : > { %v2898_v10 = vadd.f32 %v1608_v41, %v1390_v1  ;;  %1420 = vmax.xlane.f32.xlu1 %v1419_v49 }
 0x269   : > { %v2900_v39 = vadd.f32 %v1608_v41, %v1389_v34 }
 0x26a   : > { %v1428_v3 = vsel %vm1406_vm8, %v2898_v10, -inf }
 0x26b   : > { %1429 = vmax.xlane.f32.xlu0 %v1428_v3  ;;  %v1425_v17 = vsel %vm1406_vm8, %v2900_v39, -inf }
 0x26c   : > { %1426 = vmax.xlane.f32.xlu1 %v1425_v17 }
 0x2ec   : > { %v2906_v18 = vpop.xlane.xlu0 %1411 }
 0x2ed   : > { %v1432_v22 = vsub.f32 %v2874_v37, %v2906_v18  ;;  %v2910_v27 = vpop.xlane.xlu1 %1408 }
 0x2ee   : > { %v1431_v32 = vsub.f32 %v2876_v56, %v2910_v27 }
 0x2ef   : > { %v1441_v38 = vmul.f32 1.442695, %v1432_v22 }
 0x2f0   : > { %v1439_v44 = vmul.f32 1.442695, %v1431_v32  ;;  %v2914_v50 = vpop.xlane.xlu0 %1417 }
 0x2f1   : > { %2314 = vpow2.f32 %v1441_v38  ;;  %v1434_v19 = vsub.f32 %v2882_v28, %v2914_v50  ;;  %v2918_v20 = vpop.xlane.xlu1 %1414 }
 0x2f2   : > { %2316 = vpow2.f32 %v1439_v44  ;;  %v1433_v13 = vsub.f32 %v2884_v15, %v2918_v20 }
 0x2f3   : > { %v1445_v30 = vmul.f32 1.442695, %v1434_v19 }
 0x2f4   : > { %v1443_v53 = vmul.f32 1.442695, %v1433_v13  ;;  %v2922_v33 = vpop.xlane.xlu0 %1423  ;;  %v2355_v13 = vmov 0.0  }
 0x2f5   : > { %2318 = vpow2.f32 %v1445_v30  ;;  %v1436_v25 = vsub.f32 %v2890_v51, %v2922_v33  ;;  %v2926_v41 = vpop.xlane.xlu1 %1420 }
 0x2f6   : > { %2320 = vpow2.f32 %v1443_v53  ;;  %v1435_v29 = vsub.f32 %v2892_v23, %v2926_v41 }
 0x2f7   : > { %v1449_v54 = vmul.f32 1.442695, %v1436_v25 }
 0x2f8   : > { %v1447_v45 = vmul.f32 1.442695, %v1435_v29  ;;  %v2930_v46 = vpop.xlane.xlu0 %1429 }
 0x2f9   : > { %2322 = vpow2.f32 %v1449_v54  ;;  %v1438_v47 = vsub.f32 %v2898_v10, %v2930_v46  ;;  %v2934_v48 = vpop.xlane.xlu1 %1426 }
 0x2fa   : > { %2324 = vpow2.f32 %v1447_v45  ;;  %v1437_v12 = vsub.f32 %v2900_v39, %v2934_v48 }
 0x2fb   : > { %v2315_v24 = vpop.eup %2314  ;;  %v1453_v26 = vmul.f32 1.442695, %v1438_v47 }
 0x2fc   : > { %v2317_v43 = vpop.eup %2316  ;;  %v1451_v5 = vmul.f32 1.442695, %v1437_v12  ;;  %v1458_v8 = vsel %vm1406_vm8, %v2315_v24, 0.0 }
 0x2fd   : > { %2326 = vpow2.f32 %v1453_v26  ;;  %1459 = vadd.xlane.f32.xlu0 %v1458_v8  ;;  %v1455_v60 = vsel %vm1406_vm8, %v2317_v43, 0.0 }
 0x2fe   : > { %2328 = vpow2.f32 %v1451_v5  ;;  %1456 = vadd.xlane.f32.xlu1 %v1455_v60 }
 0x2ff   : > { %v2319_v63 = vpop.eup %2318 }
 0x300   : > { %v2321_v40 = vpop.eup %2320  ;;  %v1464_v52 = vsel %vm1406_vm8, %v2319_v63, 0.0 }
 0x301   : > { %1465 = vadd.xlane.f32.xlu0 %v1464_v52  ;;  %v1461_v7 = vsel %vm1406_vm8, %v2321_v40, 0.0 }
 0x302   : > { %1462 = vadd.xlane.f32.xlu1 %v1461_v7 }
 0x303   : > { %v2323_v61 = vpop.eup %2322 }
 0x304   : > { %v2325_v62 = vpop.eup %2324  ;;  %v1470_v31 = vsel %vm1406_vm8, %v2323_v61, 0.0 }
 0x305   : > { %1471 = vadd.xlane.f32.xlu0 %v1470_v31  ;;  %v1467_v2 = vsel %vm1406_vm8, %v2325_v62, 0.0 }
 0x306   : > { %1468 = vadd.xlane.f32.xlu1 %v1467_v2 }
 0x307   : > { %v2327_v11 = vpop.eup %2326 }
 0x308   : > { %v2329_v14 = vpop.eup %2328  ;;  %v1476_v16 = vsel %vm1406_vm8, %v2327_v11, 0.0 }
 0x309   : > { %1477 = vadd.xlane.f32.xlu0 %v1476_v16  ;;  %v1473_v55 = vsel %vm1406_vm8, %v2329_v14, 0.0 }
 0x30a   : > { %1474 = vadd.xlane.f32.xlu1 %v1473_v55 }
 0x38a   : > { %v1460_v6 = vpop.xlane.xlu0 %1459 }
 0x38b   : > { %2330 = vlog2.f32 %v1460_v6  ;;  %v1457_v35 = vpop.xlane.xlu1 %1456 }
 0x38c   : > { %2332 = vlog2.f32 %v1457_v35 }
 0x38e   : > { %v1466_v21 = vpop.xlane.xlu0 %1465 }
 0x38f   : > { %2334 = vlog2.f32 %v1466_v21  ;;  %v1463_v42 = vpop.xlane.xlu1 %1462 }
 0x390   : > { %2336 = vlog2.f32 %v1463_v42 }
 0x392   : > { %v1472_v4 = vpop.xlane.xlu0 %1471 }
 0x393   : > { %2338 = vlog2.f32 %v1472_v4  ;;  %v1469_v58 = vpop.xlane.xlu1 %1468 }
 0x394   : > { %2340 = vlog2.f32 %v1469_v58 }
 0x395   : > { %v2331_v59 = vpop.eup %2330 }
 0x396   : > { %v2333_v0 = vpop.eup %2332  ;;  %v1482_v57 = vmul.f32 0.6931472, %v2331_v59  ;;  %v1478_v36 = vpop.xlane.xlu0 %1477 }
 0x397   : > { %v1480_v1 = vmul.f32 0.6931472, %v2333_v0  ;;  %2342 = vlog2.f32 %v1478_v36  ;;  %v1475_v9 = vpop.xlane.xlu1 %1474 }
 0x398   : > { %v1496_v34 = vadd.f32 %v1482_v57, %v2906_v18  ;;  %2344 = vlog2.f32 %v1475_v9 }
 0x399   : > { %v2335_v49 = vpop.eup %2334  ;;  %v1495_v3 = vadd.f32 %v1480_v1, %v2910_v27 }
 0x39a   : > { %v2337_v17 = vpop.eup %2336  ;;  %v1504_v22 = vsub.f32 %v2874_v37, %v1496_v34  ;;  %v1486_v32 = vmul.f32 0.6931472, %v2335_v49 }
 0x39b   : > { %v1503_v18 = vsub.f32 %v2876_v56, %v1495_v3  ;;  %v1484_v38 = vmul.f32 0.6931472, %v2337_v17 }
 0x39c   : > { %1512 = vst.msk [vmem:[%s2952_s23 + $0x8] sm:$0xff] %vm1406_vm8, %v1504_v22  ;;  %v1498_v44 = vadd.f32 %v1486_v32, %v2914_v50 }
 0x39d   : > { %v2339_v19 = vpop.eup %2338  ;;  %1521 = vst.msk [vmem:[%s2952_s23 + $0x8] sm:$0xff] %vm1519_vm9, %v2355_v13  ;;  %v1497_v37 = vadd.f32 %v1484_v38, %v2918_v20 }
 0x39e   : > { %1511 = vst.msk [vmem:[%s2952_s23] sm:$0xff] %vm1406_vm8, %v1503_v18  ;;  %v2341_v27 = vpop.eup %2340  ;;  %v1506_v56 = vsub.f32 %v2882_v28, %v1498_v44  ;;  %v1490_v30 = vmul.f32 0.6931472, %v2339_v19 }
 0x39f   : > { %1520 = vst.msk [vmem:[%s2952_s23] sm:$0xff] %vm1519_vm9, %v2355_v13  ;;  %v1505_v53 = vsub.f32 %v2884_v15, %v1497_v37  ;;  %v1488_v50 = vmul.f32 0.6931472, %v2341_v27 }
 0x3a0   : > { %1514 = vst.msk [vmem:[%s2952_s23 + $0x18] sm:$0xff] %vm1406_vm8, %v1506_v56  ;;  %v1500_v25 = vadd.f32 %v1490_v30, %v2922_v33 }
 0x3a1   : > { %v2343_v29 = vpop.eup %2342  ;;  %1523 = vst.msk [vmem:[%s2952_s23 + $0x18] sm:$0xff] %vm1519_vm9, %v2355_v13  ;;  %v1499_v28 = vadd.f32 %v1488_v50, %v2926_v41 }
 0x3a2   : > { %1513 = vst.msk [vmem:[%s2952_s23 + $0x10] sm:$0xff] %vm1406_vm8, %v1505_v53  ;;  %v2345_v20 = vpop.eup %2344  ;;  %v1508_v15 = vsub.f32 %v2890_v51, %v1500_v25  ;;  %v1494_v54 = vmul.f32 0.6931472, %v2343_v29 }
 0x3a3   : > { %1522 = vst.msk [vmem:[%s2952_s23 + $0x10] sm:$0xff] %vm1519_vm9, %v2355_v13  ;;  %v1507_v33 = vsub.f32 %v2892_v23, %v1499_v28  ;;  %v1492_v45 = vmul.f32 0.6931472, %v2345_v20 }
 0x3a4   : > { %1516 = vst.msk [vmem:[%s2952_s23 + $0x28] sm:$0xff] %vm1406_vm8, %v1508_v15  ;;  %v1502_v47 = vadd.f32 %v1494_v54, %v2930_v46 }
 0x3a5   : > { %1525 = vst.msk [vmem:[%s2952_s23 + $0x28] sm:$0xff] %vm1519_vm9, %v2355_v13  ;;  %v1501_v41 = vadd.f32 %v1492_v45, %v2934_v48 }
 0x3a6   : > { %1515 = vst.msk [vmem:[%s2952_s23 + $0x20] sm:$0xff] %vm1406_vm8, %v1507_v33  ;;  %v1510_v12 = vsub.f32 %v2898_v10, %v1502_v47 }
 0x3a7   : > { %1524 = vst.msk [vmem:[%s2952_s23 + $0x20] sm:$0xff] %vm1519_vm9, %v2355_v13  ;;  %v1509_v51 = vsub.f32 %v2900_v39, %v1501_v41 }
 0x3a8   : > { %1518 = vst.msk [vmem:[%s2952_s23 + $0x38] sm:$0xff] %vm1406_vm8, %v1510_v12 }
 0x3a9   : > { %1527 = vst.msk [vmem:[%s2952_s23 + $0x38] sm:$0xff] %vm1519_vm9, %v2355_v13 }
 0x3aa   : > { %1517 = vst.msk [vmem:[%s2952_s23 + $0x30] sm:$0xff] %vm1406_vm8, %v1509_v51 }
 0x3ab   : > { %1526 = vst.msk [vmem:[%s2952_s23 + $0x30] sm:$0xff] %vm1519_vm9, %v2355_v13 }
 0x3ac PF: > { %s15_s18 = sadd.s32 1, %s2352_s18  }
 0x3ad   : > { %p12_p4 = scmp.ge.s32.totalorder %s15_s18, 4  }
 0x3af   :  { %14 = sbr.rel (!%p12_p4) target bundleno = 1 (0x1), region = 73 }

</bundles_post_ra>
